<compile_context>
chip_gen: v7x
topology: tpu7x:2x2x1
jax: 0.10.0
libtpu: 0.0.40
codegen_flags: <defaults>
</compile_context>

<pallas_src>
import jax
import jax.numpy as jnp
from jax.experimental import pallas as pl
from jax.experimental.pallas import tpu as pltpu


OUT_W = 128        # lane-dense packed output width (single unmasked store)
NEG_BIG = -1e30    # "mask out" bias for padded softmax lanes


# ----------------------------- math helpers ---------------------------------
def _sigmoid(z):
    return jnp.tanh(0.5 * z) * 0.5 + 0.5


def _softmax(z):
    z = z - jnp.max(z, axis=-1, keepdims=True)
    e = jnp.exp(z)
    return e / jnp.sum(e, axis=-1, keepdims=True)


# ----------------------------- reference (plain JAX) -------------------------
def reference_forward(x, p, cfg):
    """Faithful per-expert / per-task forward on the PyTorch-layout params."""
    B = x.shape[0]
    D, T, A = cfg["num_features"], cfg["num_assets"], cfg["num_assets"]
    H, L, E = cfg["hidden"], cfg["lstm_layers"], cfg["num_experts"]
    NT, TNL, FNL = cfg["num_tasks"], cfg["task_nl"], cfg["final_nl"]

    def dot(a, b):
        return jnp.dot(a, b, preferred_element_type=jnp.float32)

    x = x.astype(jnp.float32)
    x_flat = x.reshape(B, T * D)

    expert_h = []
    for e in range(E):
        h = [jnp.zeros((B, H), jnp.float32) for _ in range(L)]
        c = [jnp.zeros((B, H), jnp.float32) for _ in range(L)]
        for t in range(T):
            inp = x[:, t, :]
            for l in range(L):
                if l == 0:
                    Wih, Whh = p["Wih0"][e], p["Whh0"][e]
                    b = p["bih0"][e] + p["bhh0"][e]
                else:
                    Wih, Whh = p["WihU"][e, l - 1], p["WhhU"][e, l - 1]
                    b = p["bihU"][e, l - 1] + p["bhhU"][e, l - 1]
                z = dot(inp, Wih.T) + dot(h[l], Whh.T) + b
                i_g = _sigmoid(z[:, 0:H])
                f_g = _sigmoid(z[:, H:2 * H])
                g_g = jnp.tanh(z[:, 2 * H:3 * H])
                o_g = _sigmoid(z[:, 3 * H:4 * H])
                c[l] = f_g * c[l] + i_g * g_g
                h[l] = o_g * jnp.tanh(c[l])
                inp = h[l]
        expert_h.append(h[L - 1])

    wf = _softmax(dot(x_flat, p["GWf"].T) + p["Gbf"])
    task_ys = []
    for k in range(NT):                       # zip(gates, nets) -> first NT gates
        wk = _softmax(dot(x_flat, p["GW"][k].T) + p["Gb"][k])
        mix = jnp.zeros((B, H), jnp.float32)
        for e in range(E):
            mix = mix + expert_h[e] * wk[:, e:e + 1]
        y = dot(mix, p["TW0"][k].T) + p["Tb0"][k]
        if TNL > 1:
            y = jnp.tanh(y)
            for j in range(TNL - 1):
                y = dot(y, p["TWr"][k, j].T) + p["Tbr"][k, j]
                if j < TNL - 2:
                    y = jnp.tanh(y)
        task_ys.append(y)

    wfin = jnp.zeros((B, A), jnp.float32)
    for k in range(NT):
        wfin = wfin + task_ys[k] * wf[:, k:k + 1]

    yf = dot(wfin, p["FW0"].T) + p["Fb0"]
    if FNL > 1:
        yf = jnp.tanh(yf)
        for j in range(FNL - 1):
            yf = dot(yf, p["FWr"][j].T) + p["Fbr"][j]
            if j < FNL - 2:
                yf = jnp.tanh(yf)
    yf = _softmax(yf)
    return jnp.stack(task_ys, axis=1), yf


# ------------------- wrapper-side weight re-layout (one-time) ----------------
def prepare_kernel_params(p, cfg):
    D, T, A = cfg["num_features"], cfg["num_assets"], cfg["num_assets"]
    H, L, E = cfg["hidden"], cfg["lstm_layers"], cfg["num_experts"]
    NT, TNL, FNL = cfg["num_tasks"], cfg["task_nl"], cfg["final_nl"]
    FA = D * T
    EH = E * H
    GP = ((EH + 127) // 128) * 128           # per-gate lane width, 128-aligned
    pad_g = GP - EH
    assert NT * A + NT <= OUT_W

    # fold the 0.5 sigmoid pre-scale into the i/f/o gate weights & biases
    gate_scale = jnp.array([0.5, 0.5, 1.0, 0.5], jnp.float32)

    def fuse_input_w(Wih):                   # (E, 4H, in) -> (in, 4*GP) gate-major
        ind = Wih.shape[-1]
        w = Wih.reshape(E, 4, H, ind)
        w = jnp.transpose(w, (1, 3, 0, 2)).reshape(4, ind, EH)
        w = w * gate_scale[:, None, None]
        w = jnp.pad(w, ((0, 0), (0, 0), (0, pad_g)))
        return jnp.transpose(w, (1, 0, 2)).reshape(ind, 4 * GP).astype(jnp.bfloat16)

    def fuse_blockdiag_w(Wm):                # (E, 4H, H) -> (GP, 4*GP) block-diag
        w = Wm.reshape(E, 4, H, H)           # (E, gate, out, in)
        w = jnp.transpose(w, (1, 0, 3, 2))   # (gate, E, in, out)
        w = w * gate_scale[:, None, None, None]
        blk = jnp.zeros((4, GP, GP), jnp.float32)
        for e in range(E):
            blk = blk.at[:, e * H:(e + 1) * H, e * H:(e + 1) * H].set(w[:, e])
        return jnp.transpose(blk, (1, 0, 2)).reshape(GP, 4 * GP).astype(jnp.bfloat16)

    def fuse_bias(b):                        # (E, 4H) -> (1, 4*GP)
        bb = b.reshape(E, 4, H)
        bb = jnp.transpose(bb, (1, 0, 2)).reshape(4, EH)
        bb = bb * gate_scale[:, None]
        bb = jnp.pad(bb, ((0, 0), (0, pad_g)))
        return bb.reshape(1, 4 * GP)

    kp = {}
    # ---- fused multi-expert LSTM weights (bf16, sigmoid-scale folded) ----
    kp["Wx0"] = fuse_input_w(p["Wih0"])
    wh = [fuse_blockdiag_w(p["Whh0"])]
    bls = [fuse_bias((p["bih0"] + p["bhh0"]).reshape(E, 4 * H))]
    wxu = []
    for l in range(1, L):
        wxu.append(fuse_blockdiag_w(p["WihU"][:, l - 1]))
        wh.append(fuse_blockdiag_w(p["WhhU"][:, l - 1]))
        bls.append(fuse_bias((p["bihU"][:, l - 1] + p["bhhU"][:, l - 1]).reshape(E, 4 * H)))
    kp["Wh"] = jnp.stack(wh)                 # (L, GP, 4GP)  bf16
    kp["Bl"] = jnp.stack(bls)                # (L, 1, 4GP)   f32
    if L > 1:
        kp["WxU"] = jnp.stack(wxu)           # (L-1, GP, 4GP) bf16

    # ---- task gates (broadcast layout) + final gate fused into one matmul ----
    GW = p["GW"][:NT]                        # only the first NT gates are used (zip)
    g = jnp.transpose(GW, (0, 2, 1))         # (NT, FA, E)
    g = jnp.repeat(g, H, axis=2)             # (NT, FA, EH)
    g = jnp.pad(g, ((0, 0), (0, 0), (0, pad_g)))
    gwb = jnp.transpose(g, (1, 0, 2)).reshape(FA, NT * GP)
    gwf = jnp.pad(jnp.transpose(p["GWf"]), ((0, 0), (0, GP - NT)))       # (FA, GP)
    kp["GWall"] = jnp.concatenate([gwb, gwf], axis=1).astype(jnp.bfloat16)

    gbb = jnp.repeat(p["Gb"][:NT].reshape(NT, E), H, axis=1)
    gbb = jnp.pad(gbb, ((0, 0), (0, pad_g)), constant_values=NEG_BIG).reshape(1, NT * GP)
    gbf = jnp.pad(p["Gbf"], ((0, 0), (0, GP - NT)), constant_values=NEG_BIG)  # (1, GP)
    kp["Gball"] = jnp.concatenate([gbb, gbf], axis=1)                    # f32

    # ---- task nets: first layer replicated per expert (fuses expert mixing),
    #      LAST layer "placed" into its column block of the packed output slab ----
    w0 = jnp.transpose(p["TW0"], (0, 2, 1))                              # (NT, H, A)
    TW0_rep = jnp.pad(jnp.tile(w0, (1, E, 1)), ((0, 0), (0, pad_g), (0, 0)))  # (NT, GP, A)
    if TNL == 1:
        tw0p = jnp.zeros((NT, GP, OUT_W), jnp.float32)
        tb0p = jnp.zeros((NT, 1, OUT_W), jnp.float32)
        for k in range(NT):
            tw0p = tw0p.at[k, :, k * A:(k + 1) * A].set(TW0_rep[k])
            tb0p = tb0p.at[k, :, k * A:(k + 1) * A].set(p["Tb0"][k])
        kp["TW0p"] = tw0p.astype(jnp.bfloat16)
        kp["Tb0p"] = tb0p
    else:
        kp["TW0"] = TW0_rep.astype(jnp.bfloat16)
        kp["Tb0"] = p["Tb0"]                                             # (NT,1,A)
        if TNL > 2:
            twr = jnp.transpose(p["TWr"], (1, 0, 3, 2))                  # (TNL-1,NT,in,out)
            kp["TWm"] = twr[:TNL - 2]
            kp["Tbm"] = jnp.transpose(p["Tbr"], (1, 0, 2, 3))[:TNL - 2]
        wl = jnp.transpose(p["TWr"][:, TNL - 2], (0, 2, 1))              # (NT, in, out)
        bl_ = p["Tbr"][:, TNL - 2]                                       # (NT, 1, A)
        twl = jnp.zeros((NT, A, OUT_W), jnp.float32)
        tbl = jnp.zeros((NT, 1, OUT_W), jnp.float32)
        for k in range(NT):
            twl = twl.at[k, :, k * A:(k + 1) * A].set(wl[k])
            tbl = tbl.at[k, :, k * A:(k + 1) * A].set(bl_[k])
        kp["TWlast"] = twl
        kp["Tblast"] = tbl

    # ---- final net: first layer folds the segment-sum of the weighted slab,
    #      LAST layer placed at columns [NT*A, NT*A+NT) with -inf pads (softmax) ----
    fw0 = jnp.transpose(p["FW0"])                                        # (A, NT)
    FW0_rep = jnp.zeros((OUT_W, NT), jnp.float32)
    for k in range(NT):
        FW0_rep = FW0_rep.at[k * A:(k + 1) * A, :].set(fw0)
    fstart = NT * A
    if FNL == 1:
        fwp = jnp.zeros((OUT_W, OUT_W), jnp.float32)
        fwp = fwp.at[:, fstart:fstart + NT].set(FW0_rep)
        fbp = jnp.full((1, OUT_W), NEG_BIG, jnp.float32)
        fbp = fbp.at[:, fstart:fstart + NT].set(p["Fb0"])
        kp["FW0p"] = fwp
        kp["Fb0p"] = fbp
    else:
        kp["FW0"] = FW0_rep                                              # (OUT_W, NT)
        kp["Fb0"] = p["Fb0"]                                             # (1, NT)
        if FNL > 2:
            fwr = jnp.transpose(p["FWr"], (0, 2, 1))                     # (FNL-1,NT,NT)
            kp["FWm"] = fwr[:FNL - 2]
            kp["Fbm"] = p["Fbr"][:FNL - 2]
        wlast = jnp.transpose(p["FWr"][FNL - 2])                         # (NT_in, NT_out)
        blast = p["Fbr"][FNL - 2]                                        # (1, NT)
        fwl = jnp.zeros((NT, OUT_W), jnp.float32)
        fwl = fwl.at[:, fstart:fstart + NT].set(wlast)
        fbl = jnp.full((1, OUT_W), NEG_BIG, jnp.float32)
        fbl = fbl.at[:, fstart:fstart + NT].set(blast)
        kp["FWlast"] = fwl
        kp["Fblast"] = fbl
    return kp, GP


# ----------------------------- Pallas kernel --------------------------------
def build_kernel(names, cfg, GP, B):
    A = cfg["num_assets"]
    T = cfg["num_assets"]
    H, L = cfg["hidden"], cfg["lstm_layers"]
    NT, TNL, FNL = cfg["num_tasks"], cfg["task_nl"], cfg["final_nl"]

    def bdot(a, b):                          # bf16 x bf16 -> f32 accumulate (MXU)
        return jnp.dot(a.astype(jnp.bfloat16), b, preferred_element_type=jnp.float32)

    def fdot(a, b):                          # small f32 matmuls, DEFAULT precision
        return jnp.dot(a, b, preferred_element_type=jnp.float32)

    def kernel(*refs):
        xstk_ref, xflat_ref = refs[0], refs[1]
        pref = {name: refs[2 + i] for i, name in enumerate(names)}
        out_ref = refs[2 + len(names)]

        # -------- fused multi-expert LSTM; input projection hoisted off the
        # serial recurrence (one stacked (T*B, in) @ (in, 4GP) matmul / layer) ----
        zx = bdot(xstk_ref[...], pref["Wx0"][...]) + pref["Bl"][0]       # (T*B, 4GP)
        seq_stk = None
        h = jnp.zeros((B, GP), jnp.float32)
        for l in range(L):
            if l > 0:
                zx = bdot(seq_stk, pref["WxU"][l - 1]) + pref["Bl"][l]
            Wh_l = pref["Wh"][l]             # hoisted out of the t-loop
            # TODO(synk): could pin Wh_l in MXU weight regs via pltpu.matmul_push_rhs.
            h = jnp.zeros((B, GP), jnp.float32)
            c = jnp.zeros((B, GP), jnp.float32)
            outs = []
            for t in range(T):
                z = zx[t * B:(t + 1) * B, :] + bdot(h, Wh_l)             # (B, 4GP)
                # 0.5 pre-scale of the sigmoid is folded into weights/biases
                i_g = jnp.tanh(z[:, 0 * GP:1 * GP]) * 0.5 + 0.5
                f_g = jnp.tanh(z[:, 1 * GP:2 * GP]) * 0.5 + 0.5
                g_g = jnp.tanh(z[:, 2 * GP:3 * GP])
                o_g = jnp.tanh(z[:, 3 * GP:4 * GP]) * 0.5 + 0.5
                c = f_g * c + i_g * g_g
                h = o_g * jnp.tanh(c)
                outs.append(h)
            if l < L - 1:
                seq_stk = jnp.concatenate(outs, axis=0)                  # (T*B, GP)
        h_last = h                                                       # (B, GP)

        # -------- all gates (NT task gates + final gate) from ONE matmul --------
        glog = bdot(xflat_ref[...], pref["GWall"][...]) + pref["Gball"][...]

        # final gate softmax (its 128-wide block; -1e30 pads -> exactly 0)
        flog = glog[:, NT * GP:(NT + 1) * GP]
        fm = jnp.max(flog, axis=-1, keepdims=True)
        fe = jnp.exp(flog - fm)
        wf = fe * pl.reciprocal(jnp.sum(fe, axis=-1, keepdims=True), approx=True)

        # -------- task nets; last layer lands directly in the packed output slab ----
        tasks_slab = jnp.zeros((B, OUT_W), jnp.float32)   # columns [0, NT*A)
        wsum_slab = jnp.zeros((B, OUT_W), jnp.float32)    # final-gate-weighted mix
        for k in range(NT):
            gk = glog[:, k * GP:(k + 1) * GP]
            m = jnp.max(gk, axis=-1, keepdims=True)
            pex = jnp.exp(gk - m)
            s = jnp.sum(pex, axis=-1, keepdims=True)      # = H * sum_e exp(.)
            w_bc = pex * (float(H) * pl.reciprocal(s, approx=True))
            hw = h_last * w_bc                            # expert mixing fused in
            if TNL == 1:
                yk_slab = bdot(hw, pref["TW0p"][k]) + pref["Tb0p"][k]    # (B, OUT_W)
            else:
                y = bdot(hw, pref["TW0"][k]) + pref["Tb0"][k]            # (B, A)
                y = jnp.tanh(y)
                for j in range(TNL - 2):
                    y = fdot(y, pref["TWm"][j, k]) + pref["Tbm"][j, k]
                    y = jnp.tanh(y)
                yk_slab = fdot(y, pref["TWlast"][k]) + pref["Tblast"][k]  # (B, OUT_W)
            tasks_slab = tasks_slab + yk_slab
            wsum_slab = wsum_slab + yk_slab * wf[:, k:k + 1]

        # -------- final task network (first layer folds the slab segment-sum) ----
        if FNL == 1:
            ylog = fdot(wsum_slab, pref["FW0p"][...]) + pref["Fb0p"][...]
        else:
            yf = fdot(wsum_slab, pref["FW0"][...]) + pref["Fb0"][...]    # (B, NT)
            yf = jnp.tanh(yf)
            for j in range(FNL - 2):
                yf = fdot(yf, pref["FWm"][j]) + pref["Fbm"][j]
                yf = jnp.tanh(yf)
            ylog = fdot(yf, pref["FWlast"][...]) + pref["Fblast"][...]   # (B, OUT_W)
        ym = jnp.max(ylog, axis=-1, keepdims=True)
        ye = jnp.exp(ylog - ym)
        yfs = ye * pl.reciprocal(jnp.sum(ye, axis=-1, keepdims=True), approx=True)

        # tasks occupy cols [0, NT*A); final softmax occupies [NT*A, NT*A+NT);
        # everything else is exactly 0 -> one lane-dense unmasked (B,128) store.
        out_ref[...] = tasks_slab + yfs

    return kernel


# ------------------------ forward factory (prep hoisted) ---------------------
def make_mmoe_forward(params, cfg):
    T, D, A = cfg["num_assets"], cfg["num_features"], cfg["num_assets"]
    NT = cfg["num_tasks"]

    kp, GP = prepare_kernel_params(params, cfg)          # one-time weight re-layout
    names = list(kp.keys())
    kvals = [kp[n] for n in names]                        # closed over as constants
    vmem = pl.BlockSpec(memory_space=pltpu.MemorySpace.VMEM)

    @jax.jit
    def fwd(x):
        B = x.shape[0]
        x32 = x.astype(jnp.float32)
        xstk = jnp.transpose(x32, (1, 0, 2)).reshape(T * B, D)   # (T*B, D), time-major
        x_flat = x32.reshape(B, T * D)
        kernel = build_kernel(names, cfg, GP, B)
        out = pl.pallas_call(
            kernel,
            out_shape=jax.ShapeDtypeStruct((B, OUT_W), jnp.float32),
            in_specs=[vmem] * (2 + len(names)),
            out_specs=vmem,
        )(xstk, x_flat, *kvals)
        tasks = out[:, :NT * A].reshape(B, NT, A)
        final = out[:, NT * A:NT * A + NT]
        return tasks, final

    return fwd


# ----------------------------- parameter init -------------------------------
def init_params(key, cfg):
    D = cfg["num_features"]
    A = cfg["num_assets"]
    T = cfg["num_assets"]
    H = cfg["hidden"]
    L = cfg["lstm_layers"]
    E = cfg["num_experts"]
    NT = cfg["num_tasks"]
    TNL = cfg["task_nl"]
    FNL = cfg["final_nl"]
    FA = D * T

    keys = iter(jax.random.split(key, 64))

    def nrm(shape, scale=0.2):
        return scale * jax.random.normal(next(keys), shape, jnp.float32)

    p = {}
    # LSTM experts, layer 0 (input_dim -> H), PyTorch gate order (i, f, g, o)
    p["Wih0"] = nrm((E, 4 * H, D))
    p["Whh0"] = nrm((E, 4 * H, H))
    p["bih0"] = nrm((E, 1, 4 * H))
    p["bhh0"] = nrm((E, 1, 4 * H))
    if L > 1:                                   # upper LSTM layers (H -> H)
        p["WihU"] = nrm((E, L - 1, 4 * H, H))
        p["WhhU"] = nrm((E, L - 1, 4 * H, H))
        p["bihU"] = nrm((E, L - 1, 1, 4 * H))
        p["bhhU"] = nrm((E, L - 1, 1, 4 * H))
    # per-expert task gates (FA -> E) and final gate (FA -> NT)
    p["GW"] = nrm((E, E, FA))
    p["Gb"] = nrm((E, 1, E))
    p["GWf"] = nrm((NT, FA))
    p["Gbf"] = nrm((1, NT))
    # task-specific networks (H -> A [-> A ...])
    p["TW0"] = nrm((NT, A, H))
    p["Tb0"] = nrm((NT, 1, A))
    if TNL > 1:
        p["TWr"] = nrm((NT, TNL - 1, A, A))
        p["Tbr"] = nrm((NT, TNL - 1, 1, A))
    # final task network (A -> NT [-> NT ...], softmax)
    p["FW0"] = nrm((NT, A))
    p["Fb0"] = nrm((1, NT))
    if FNL > 1:
        p["FWr"] = nrm((FNL - 1, NT, NT))
        p["Fbr"] = nrm((FNL - 1, 1, NT))
    return p


# --------------------------------- main --------------------------------------
if __name__ == "__main__":
    cfg = dict(
        num_features=4,      # = input_dim of each LSTM expert
        num_assets=8,        # = LSTM sequence length and task-net output dim
        hidden=32,           # lstm_expert_hidden_dim
        lstm_layers=2,       # lstm_expert_num_layers
        num_experts=3,
        task_nl=2,           # task_specific_num_layers
        num_tasks=3,         # module forward only consistent when num_experts >= num_tasks
        final_nl=2,          # task_specific_final_num_layers
    )
    assert cfg["num_experts"] >= cfg["num_tasks"]

    key = jax.random.PRNGKey(0)
    kx, kparam = jax.random.split(key)
    B = 8                                     # full sublane occupancy (perf review)
    x = jax.random.normal(
        kx, (B, cfg["num_assets"], cfg["num_features"]), jnp.float32)
    params = init_params(kparam, cfg)

    fwd = make_mmoe_forward(params, cfg)      # weight re-layout happens exactly once
    tasks, final = fwd(x)
    jax.block_until_ready((tasks, final))

    ref_tasks, ref_final = reference_forward(x, params, cfg)
    assert tasks.shape == (B, cfg["num_tasks"], cfg["num_assets"])
    assert final.shape == (B, cfg["num_tasks"])
    # Tolerance relaxed because the kernel intentionally uses bf16 weights /
    # single-pass bf16 MXU passes and approximate EUP reciprocals (fast path,
    # per the performance review) instead of HIGHEST-precision f32 matmuls.
    assert jnp.allclose(tasks, ref_tasks, atol=3e-2, rtol=3e-2)
    assert jnp.allclose(final, ref_final, atol=3e-2, rtol=3e-2)

    print("KERNEL_OK")
</pallas_src>

<mosaic_0001>
module attributes {stable_mosaic.version = 11 : i64} {
  func.func @kernel(%arg0: memref<64x4xf32, #tpu.memory_space<vmem>>, %arg1: memref<8x32xf32, #tpu.memory_space<vmem>>, %arg2: memref<4x512xbf16, #tpu.memory_space<vmem>>, %arg3: memref<2x128x512xbf16, #tpu.memory_space<vmem>>, %arg4: memref<2x1x512xf32, #tpu.memory_space<vmem>>, %arg5: memref<1x128x512xbf16, #tpu.memory_space<vmem>>, %arg6: memref<32x512xbf16, #tpu.memory_space<vmem>>, %arg7: memref<1x512xf32, #tpu.memory_space<vmem>>, %arg8: memref<3x128x8xbf16, #tpu.memory_space<vmem>>, %arg9: memref<3x1x8xf32, #tpu.memory_space<vmem>>, %arg10: memref<3x8x128xf32, #tpu.memory_space<vmem>>, %arg11: memref<3x1x128xf32, #tpu.memory_space<vmem>>, %arg12: memref<128x3xf32, #tpu.memory_space<vmem>>, %arg13: memref<1x3xf32, #tpu.memory_space<vmem>>, %arg14: memref<3x128xf32, #tpu.memory_space<vmem>>, %arg15: memref<1x128xf32, #tpu.memory_space<vmem>>, %arg16: memref<8x128xf32, #tpu.memory_space<vmem>>) attributes {dimension_semantics = [], scalar_prefetch = 0 : i64, scratch_operands = 0 : i64, tpu.core_type = #tpu.core_type<tc>} {
    %c0 = arith.constant 0 : index
    %c0_0 = arith.constant 0 : index
    %0 = vector.load %arg0[%c0, %c0_0] : memref<64x4xf32, #tpu.memory_space<vmem>>, vector<64x4xf32>
    %c0_1 = arith.constant 0 : index
    %c0_2 = arith.constant 0 : index
    %1 = vector.load %arg2[%c0_1, %c0_2] : memref<4x512xbf16, #tpu.memory_space<vmem>>, vector<4x512xbf16>
    %2 = arith.truncf %0 : vector<64x4xf32> to vector<64x4xbf16>
    %cst = arith.constant dense<0.000000e+00> : vector<64x512xf32>
    %3 = tpu.matmul %2, %1, %cst {dimension_numbers = #tpu.dot_dimension_numbers<[1], [0], [0], [1], [0, 0, 1, 1], [], []>} : vector<64x4xbf16>, vector<4x512xbf16>, vector<64x512xf32> -> vector<64x512xf32>
    %c0_3 = arith.constant 0 : index
    %c0_4 = arith.constant 0 : index
    %c0_5 = arith.constant 0 : index
    %4 = vector.load %arg4[%c0_3, %c0_4, %c0_5] : memref<2x1x512xf32, #tpu.memory_space<vmem>>, vector<1x1x512xf32>
    %5 = vector.shape_cast %4 : vector<1x1x512xf32> to vector<1x512xf32>
    %6 = vector.broadcast %5 : vector<1x512xf32> to vector<64x512xf32>
    %7 = arith.addf %3, %6 : vector<64x512xf32>
    %c0_6 = arith.constant 0 : index
    %c0_7 = arith.constant 0 : index
    %c0_8 = arith.constant 0 : index
    %8 = vector.load %arg3[%c0_6, %c0_7, %c0_8] : memref<2x128x512xbf16, #tpu.memory_space<vmem>>, vector<1x128x512xbf16>
    %9 = vector.shape_cast %8 : vector<1x128x512xbf16> to vector<128x512xbf16>
    %cst_9 = arith.constant 0.000000e+00 : f32
    %10 = vector.broadcast %cst_9 : f32 to vector<8x128xf32>
    %cst_10 = arith.constant 0.000000e+00 : f32
    %11 = vector.broadcast %cst_10 : f32 to vector<8x128xf32>
    %12 = vector.extract_strided_slice %7 {offsets = [0, 0], sizes = [8, 512], strides = [1, 1]} : vector<64x512xf32> to vector<8x512xf32>
    %13 = arith.truncf %10 : vector<8x128xf32> to vector<8x128xbf16>
    %cst_11 = arith.constant dense<0.000000e+00> : vector<8x512xf32>
    %14 = tpu.matmul %13, %9, %cst_11 {dimension_numbers = #tpu.dot_dimension_numbers<[1], [0], [0], [1], [0, 0, 1, 1], [], []>} : vector<8x128xbf16>, vector<128x512xbf16>, vector<8x512xf32> -> vector<8x512xf32>
    %15 = arith.addf %12, %14 : vector<8x512xf32>
    %16 = vector.extract_strided_slice %15 {offsets = [0, 0], sizes = [8, 128], strides = [1, 1]} : vector<8x512xf32> to vector<8x128xf32>
    %17 = math.tanh %16 : vector<8x128xf32>
    %cst_12 = arith.constant 5.000000e-01 : f32
    %18 = vector.broadcast %cst_12 : f32 to vector<8x128xf32>
    %19 = arith.mulf %17, %18 : vector<8x128xf32>
    %cst_13 = arith.constant 5.000000e-01 : f32
    %20 = vector.broadcast %cst_13 : f32 to vector<8x128xf32>
    %21 = arith.addf %19, %20 : vector<8x128xf32>
    %22 = vector.extract_strided_slice %15 {offsets = [0, 128], sizes = [8, 128], strides = [1, 1]} : vector<8x512xf32> to vector<8x128xf32>
    %23 = math.tanh %22 : vector<8x128xf32>
    %cst_14 = arith.constant 5.000000e-01 : f32
    %24 = vector.broadcast %cst_14 : f32 to vector<8x128xf32>
    %25 = arith.mulf %23, %24 : vector<8x128xf32>
    %cst_15 = arith.constant 5.000000e-01 : f32
    %26 = vector.broadcast %cst_15 : f32 to vector<8x128xf32>
    %27 = arith.addf %25, %26 : vector<8x128xf32>
    %28 = vector.extract_strided_slice %15 {offsets = [0, 256], sizes = [8, 128], strides = [1, 1]} : vector<8x512xf32> to vector<8x128xf32>
    %29 = math.tanh %28 : vector<8x128xf32>
    %30 = vector.extract_strided_slice %15 {offsets = [0, 384], sizes = [8, 128], strides = [1, 1]} : vector<8x512xf32> to vector<8x128xf32>
    %31 = math.tanh %30 : vector<8x128xf32>
    %cst_16 = arith.constant 5.000000e-01 : f32
    %32 = vector.broadcast %cst_16 : f32 to vector<8x128xf32>
    %33 = arith.mulf %31, %32 : vector<8x128xf32>
    %cst_17 = arith.constant 5.000000e-01 : f32
    %34 = vector.broadcast %cst_17 : f32 to vector<8x128xf32>
    %35 = arith.addf %33, %34 : vector<8x128xf32>
    %36 = arith.mulf %27, %11 : vector<8x128xf32>
    %37 = arith.mulf %21, %29 : vector<8x128xf32>
    %38 = arith.addf %36, %37 : vector<8x128xf32>
    %39 = math.tanh %38 : vector<8x128xf32>
    %40 = arith.mulf %35, %39 : vector<8x128xf32>
    %41 = vector.extract_strided_slice %7 {offsets = [8, 0], sizes = [8, 512], strides = [1, 1]} : vector<64x512xf32> to vector<8x512xf32>
    %42 = arith.truncf %40 : vector<8x128xf32> to vector<8x128xbf16>
    %cst_18 = arith.constant dense<0.000000e+00> : vector<8x512xf32>
    %43 = tpu.matmul %42, %9, %cst_18 {dimension_numbers = #tpu.dot_dimension_numbers<[1], [0], [0], [1], [0, 0, 1, 1], [], []>} : vector<8x128xbf16>, vector<128x512xbf16>, vector<8x512xf32> -> vector<8x512xf32>
    %44 = arith.addf %41, %43 : vector<8x512xf32>
    %45 = vector.extract_strided_slice %44 {offsets = [0, 0], sizes = [8, 128], strides = [1, 1]} : vector<8x512xf32> to vector<8x128xf32>
    %46 = math.tanh %45 : vector<8x128xf32>
    %cst_19 = arith.constant 5.000000e-01 : f32
    %47 = vector.broadcast %cst_19 : f32 to vector<8x128xf32>
    %48 = arith.mulf %46, %47 : vector<8x128xf32>
    %cst_20 = arith.constant 5.000000e-01 : f32
    %49 = vector.broadcast %cst_20 : f32 to vector<8x128xf32>
    %50 = arith.addf %48, %49 : vector<8x128xf32>
    %51 = vector.extract_strided_slice %44 {offsets = [0, 128], sizes = [8, 128], strides = [1, 1]} : vector<8x512xf32> to vector<8x128xf32>
    %52 = math.tanh %51 : vector<8x128xf32>
    %cst_21 = arith.constant 5.000000e-01 : f32
    %53 = vector.broadcast %cst_21 : f32 to vector<8x128xf32>
    %54 = arith.mulf %52, %53 : vector<8x128xf32>
    %cst_22 = arith.constant 5.000000e-01 : f32
    %55 = vector.broadcast %cst_22 : f32 to vector<8x128xf32>
    %56 = arith.addf %54, %55 : vector<8x128xf32>
    %57 = vector.extract_strided_slice %44 {offsets = [0, 256], sizes = [8, 128], strides = [1, 1]} : vector<8x512xf32> to vector<8x128xf32>
    %58 = math.tanh %57 : vector<8x128xf32>
    %59 = vector.extract_strided_slice %44 {offsets = [0, 384], sizes = [8, 128], strides = [1, 1]} : vector<8x512xf32> to vector<8x128xf32>
    %60 = math.tanh %59 : vector<8x128xf32>
    %cst_23 = arith.constant 5.000000e-01 : f32
    %61 = vector.broadcast %cst_23 : f32 to vector<8x128xf32>
    %62 = arith.mulf %60, %61 : vector<8x128xf32>
    %cst_24 = arith.constant 5.000000e-01 : f32
    %63 = vector.broadcast %cst_24 : f32 to vector<8x128xf32>
    %64 = arith.addf %62, %63 : vector<8x128xf32>
    %65 = arith.mulf %56, %38 : vector<8x128xf32>
    %66 = arith.mulf %50, %58 : vector<8x128xf32>
    %67 = arith.addf %65, %66 : vector<8x128xf32>
    %68 = math.tanh %67 : vector<8x128xf32>
    %69 = arith.mulf %64, %68 : vector<8x128xf32>
    %70 = vector.extract_strided_slice %7 {offsets = [16, 0], sizes = [8, 512], strides = [1, 1]} : vector<64x512xf32> to vector<8x512xf32>
    %71 = arith.truncf %69 : vector<8x128xf32> to vector<8x128xbf16>
    %cst_25 = arith.constant dense<0.000000e+00> : vector<8x512xf32>
    %72 = tpu.matmul %71, %9, %cst_25 {dimension_numbers = #tpu.dot_dimension_numbers<[1], [0], [0], [1], [0, 0, 1, 1], [], []>} : vector<8x128xbf16>, vector<128x512xbf16>, vector<8x512xf32> -> vector<8x512xf32>
    %73 = arith.addf %70, %72 : vector<8x512xf32>
    %74 = vector.extract_strided_slice %73 {offsets = [0, 0], sizes = [8, 128], strides = [1, 1]} : vector<8x512xf32> to vector<8x128xf32>
    %75 = math.tanh %74 : vector<8x128xf32>
    %cst_26 = arith.constant 5.000000e-01 : f32
    %76 = vector.broadcast %cst_26 : f32 to vector<8x128xf32>
    %77 = arith.mulf %75, %76 : vector<8x128xf32>
    %cst_27 = arith.constant 5.000000e-01 : f32
    %78 = vector.broadcast %cst_27 : f32 to vector<8x128xf32>
    %79 = arith.addf %77, %78 : vector<8x128xf32>
    %80 = vector.extract_strided_slice %73 {offsets = [0, 128], sizes = [8, 128], strides = [1, 1]} : vector<8x512xf32> to vector<8x128xf32>
    %81 = math.tanh %80 : vector<8x128xf32>
    %cst_28 = arith.constant 5.000000e-01 : f32
    %82 = vector.broadcast %cst_28 : f32 to vector<8x128xf32>
    %83 = arith.mulf %81, %82 : vector<8x128xf32>
    %cst_29 = arith.constant 5.000000e-01 : f32
    %84 = vector.broadcast %cst_29 : f32 to vector<8x128xf32>
    %85 = arith.addf %83, %84 : vector<8x128xf32>
    %86 = vector.extract_strided_slice %73 {offsets = [0, 256], sizes = [8, 128], strides = [1, 1]} : vector<8x512xf32> to vector<8x128xf32>
    %87 = math.tanh %86 : vector<8x128xf32>
    %88 = vector.extract_strided_slice %73 {offsets = [0, 384], sizes = [8, 128], strides = [1, 1]} : vector<8x512xf32> to vector<8x128xf32>
    %89 = math.tanh %88 : vector<8x128xf32>
    %cst_30 = arith.constant 5.000000e-01 : f32
    %90 = vector.broadcast %cst_30 : f32 to vector<8x128xf32>
    %91 = arith.mulf %89, %90 : vector<8x128xf32>
    %cst_31 = arith.constant 5.000000e-01 : f32
    %92 = vector.broadcast %cst_31 : f32 to vector<8x128xf32>
    %93 = arith.addf %91, %92 : vector<8x128xf32>
    %94 = arith.mulf %85, %67 : vector<8x128xf32>
    %95 = arith.mulf %79, %87 : vector<8x128xf32>
    %96 = arith.addf %94, %95 : vector<8x128xf32>
    %97 = math.tanh %96 : vector<8x128xf32>
    %98 = arith.mulf %93, %97 : vector<8x128xf32>
    %99 = vector.extract_strided_slice %7 {offsets = [24, 0], sizes = [8, 512], strides = [1, 1]} : vector<64x512xf32> to vector<8x512xf32>
    %100 = arith.truncf %98 : vector<8x128xf32> to vector<8x128xbf16>
    %cst_32 = arith.constant dense<0.000000e+00> : vector<8x512xf32>
    %101 = tpu.matmul %100, %9, %cst_32 {dimension_numbers = #tpu.dot_dimension_numbers<[1], [0], [0], [1], [0, 0, 1, 1], [], []>} : vector<8x128xbf16>, vector<128x512xbf16>, vector<8x512xf32> -> vector<8x512xf32>
    %102 = arith.addf %99, %101 : vector<8x512xf32>
    %103 = vector.extract_strided_slice %102 {offsets = [0, 0], sizes = [8, 128], strides = [1, 1]} : vector<8x512xf32> to vector<8x128xf32>
    %104 = math.tanh %103 : vector<8x128xf32>
    %cst_33 = arith.constant 5.000000e-01 : f32
    %105 = vector.broadcast %cst_33 : f32 to vector<8x128xf32>
    %106 = arith.mulf %104, %105 : vector<8x128xf32>
    %cst_34 = arith.constant 5.000000e-01 : f32
    %107 = vector.broadcast %cst_34 : f32 to vector<8x128xf32>
    %108 = arith.addf %106, %107 : vector<8x128xf32>
    %109 = vector.extract_strided_slice %102 {offsets = [0, 128], sizes = [8, 128], strides = [1, 1]} : vector<8x512xf32> to vector<8x128xf32>
    %110 = math.tanh %109 : vector<8x128xf32>
    %cst_35 = arith.constant 5.000000e-01 : f32
    %111 = vector.broadcast %cst_35 : f32 to vector<8x128xf32>
    %112 = arith.mulf %110, %111 : vector<8x128xf32>
    %cst_36 = arith.constant 5.000000e-01 : f32
    %113 = vector.broadcast %cst_36 : f32 to vector<8x128xf32>
    %114 = arith.addf %112, %113 : vector<8x128xf32>
    %115 = vector.extract_strided_slice %102 {offsets = [0, 256], sizes = [8, 128], strides = [1, 1]} : vector<8x512xf32> to vector<8x128xf32>
    %116 = math.tanh %115 : vector<8x128xf32>
    %117 = vector.extract_strided_slice %102 {offsets = [0, 384], sizes = [8, 128], strides = [1, 1]} : vector<8x512xf32> to vector<8x128xf32>
    %118 = math.tanh %117 : vector<8x128xf32>
    %cst_37 = arith.constant 5.000000e-01 : f32
    %119 = vector.broadcast %cst_37 : f32 to vector<8x128xf32>
    %120 = arith.mulf %118, %119 : vector<8x128xf32>
    %cst_38 = arith.constant 5.000000e-01 : f32
    %121 = vector.broadcast %cst_38 : f32 to vector<8x128xf32>
    %122 = arith.addf %120, %121 : vector<8x128xf32>
    %123 = arith.mulf %114, %96 : vector<8x128xf32>
    %124 = arith.mulf %108, %116 : vector<8x128xf32>
    %125 = arith.addf %123, %124 : vector<8x128xf32>
    %126 = math.tanh %125 : vector<8x128xf32>
    %127 = arith.mulf %122, %126 : vector<8x128xf32>
    %128 = vector.extract_strided_slice %7 {offsets = [32, 0], sizes = [8, 512], strides = [1, 1]} : vector<64x512xf32> to vector<8x512xf32>
    %129 = arith.truncf %127 : vector<8x128xf32> to vector<8x128xbf16>
    %cst_39 = arith.constant dense<0.000000e+00> : vector<8x512xf32>
    %130 = tpu.matmul %129, %9, %cst_39 {dimension_numbers = #tpu.dot_dimension_numbers<[1], [0], [0], [1], [0, 0, 1, 1], [], []>} : vector<8x128xbf16>, vector<128x512xbf16>, vector<8x512xf32> -> vector<8x512xf32>
    %131 = arith.addf %128, %130 : vector<8x512xf32>
    %132 = vector.extract_strided_slice %131 {offsets = [0, 0], sizes = [8, 128], strides = [1, 1]} : vector<8x512xf32> to vector<8x128xf32>
    %133 = math.tanh %132 : vector<8x128xf32>
    %cst_40 = arith.constant 5.000000e-01 : f32
    %134 = vector.broadcast %cst_40 : f32 to vector<8x128xf32>
    %135 = arith.mulf %133, %134 : vector<8x128xf32>
    %cst_41 = arith.constant 5.000000e-01 : f32
    %136 = vector.broadcast %cst_41 : f32 to vector<8x128xf32>
    %137 = arith.addf %135, %136 : vector<8x128xf32>
    %138 = vector.extract_strided_slice %131 {offsets = [0, 128], sizes = [8, 128], strides = [1, 1]} : vector<8x512xf32> to vector<8x128xf32>
    %139 = math.tanh %138 : vector<8x128xf32>
    %cst_42 = arith.constant 5.000000e-01 : f32
    %140 = vector.broadcast %cst_42 : f32 to vector<8x128xf32>
    %141 = arith.mulf %139, %140 : vector<8x128xf32>
    %cst_43 = arith.constant 5.000000e-01 : f32
    %142 = vector.broadcast %cst_43 : f32 to vector<8x128xf32>
    %143 = arith.addf %141, %142 : vector<8x128xf32>
    %144 = vector.extract_strided_slice %131 {offsets = [0, 256], sizes = [8, 128], strides = [1, 1]} : vector<8x512xf32> to vector<8x128xf32>
    %145 = math.tanh %144 : vector<8x128xf32>
    %146 = vector.extract_strided_slice %131 {offsets = [0, 384], sizes = [8, 128], strides = [1, 1]} : vector<8x512xf32> to vector<8x128xf32>
    %147 = math.tanh %146 : vector<8x128xf32>
    %cst_44 = arith.constant 5.000000e-01 : f32
    %148 = vector.broadcast %cst_44 : f32 to vector<8x128xf32>
    %149 = arith.mulf %147, %148 : vector<8x128xf32>
    %cst_45 = arith.constant 5.000000e-01 : f32
    %150 = vector.broadcast %cst_45 : f32 to vector<8x128xf32>
    %151 = arith.addf %149, %150 : vector<8x128xf32>
    %152 = arith.mulf %143, %125 : vector<8x128xf32>
    %153 = arith.mulf %137, %145 : vector<8x128xf32>
    %154 = arith.addf %152, %153 : vector<8x128xf32>
    %155 = math.tanh %154 : vector<8x128xf32>
    %156 = arith.mulf %151, %155 : vector<8x128xf32>
    %157 = vector.extract_strided_slice %7 {offsets = [40, 0], sizes = [8, 512], strides = [1, 1]} : vector<64x512xf32> to vector<8x512xf32>
    %158 = arith.truncf %156 : vector<8x128xf32> to vector<8x128xbf16>
    %cst_46 = arith.constant dense<0.000000e+00> : vector<8x512xf32>
    %159 = tpu.matmul %158, %9, %cst_46 {dimension_numbers = #tpu.dot_dimension_numbers<[1], [0], [0], [1], [0, 0, 1, 1], [], []>} : vector<8x128xbf16>, vector<128x512xbf16>, vector<8x512xf32> -> vector<8x512xf32>
    %160 = arith.addf %157, %159 : vector<8x512xf32>
    %161 = vector.extract_strided_slice %160 {offsets = [0, 0], sizes = [8, 128], strides = [1, 1]} : vector<8x512xf32> to vector<8x128xf32>
    %162 = math.tanh %161 : vector<8x128xf32>
    %cst_47 = arith.constant 5.000000e-01 : f32
    %163 = vector.broadcast %cst_47 : f32 to vector<8x128xf32>
    %164 = arith.mulf %162, %163 : vector<8x128xf32>
    %cst_48 = arith.constant 5.000000e-01 : f32
    %165 = vector.broadcast %cst_48 : f32 to vector<8x128xf32>
    %166 = arith.addf %164, %165 : vector<8x128xf32>
    %167 = vector.extract_strided_slice %160 {offsets = [0, 128], sizes = [8, 128], strides = [1, 1]} : vector<8x512xf32> to vector<8x128xf32>
    %168 = math.tanh %167 : vector<8x128xf32>
    %cst_49 = arith.constant 5.000000e-01 : f32
    %169 = vector.broadcast %cst_49 : f32 to vector<8x128xf32>
    %170 = arith.mulf %168, %169 : vector<8x128xf32>
    %cst_50 = arith.constant 5.000000e-01 : f32
    %171 = vector.broadcast %cst_50 : f32 to vector<8x128xf32>
    %172 = arith.addf %170, %171 : vector<8x128xf32>
    %173 = vector.extract_strided_slice %160 {offsets = [0, 256], sizes = [8, 128], strides = [1, 1]} : vector<8x512xf32> to vector<8x128xf32>
    %174 = math.tanh %173 : vector<8x128xf32>
    %175 = vector.extract_strided_slice %160 {offsets = [0, 384], sizes = [8, 128], strides = [1, 1]} : vector<8x512xf32> to vector<8x128xf32>
    %176 = math.tanh %175 : vector<8x128xf32>
    %cst_51 = arith.constant 5.000000e-01 : f32
    %177 = vector.broadcast %cst_51 : f32 to vector<8x128xf32>
    %178 = arith.mulf %176, %177 : vector<8x128xf32>
    %cst_52 = arith.constant 5.000000e-01 : f32
    %179 = vector.broadcast %cst_52 : f32 to vector<8x128xf32>
    %180 = arith.addf %178, %179 : vector<8x128xf32>
    %181 = arith.mulf %172, %154 : vector<8x128xf32>
    %182 = arith.mulf %166, %174 : vector<8x128xf32>
    %183 = arith.addf %181, %182 : vector<8x128xf32>
    %184 = math.tanh %183 : vector<8x128xf32>
    %185 = arith.mulf %180, %184 : vector<8x128xf32>
    %186 = vector.extract_strided_slice %7 {offsets = [48, 0], sizes = [8, 512], strides = [1, 1]} : vector<64x512xf32> to vector<8x512xf32>
    %187 = arith.truncf %185 : vector<8x128xf32> to vector<8x128xbf16>
    %cst_53 = arith.constant dense<0.000000e+00> : vector<8x512xf32>
    %188 = tpu.matmul %187, %9, %cst_53 {dimension_numbers = #tpu.dot_dimension_numbers<[1], [0], [0], [1], [0, 0, 1, 1], [], []>} : vector<8x128xbf16>, vector<128x512xbf16>, vector<8x512xf32> -> vector<8x512xf32>
    %189 = arith.addf %186, %188 : vector<8x512xf32>
    %190 = vector.extract_strided_slice %189 {offsets = [0, 0], sizes = [8, 128], strides = [1, 1]} : vector<8x512xf32> to vector<8x128xf32>
    %191 = math.tanh %190 : vector<8x128xf32>
    %cst_54 = arith.constant 5.000000e-01 : f32
    %192 = vector.broadcast %cst_54 : f32 to vector<8x128xf32>
    %193 = arith.mulf %191, %192 : vector<8x128xf32>
    %cst_55 = arith.constant 5.000000e-01 : f32
    %194 = vector.broadcast %cst_55 : f32 to vector<8x128xf32>
    %195 = arith.addf %193, %194 : vector<8x128xf32>
    %196 = vector.extract_strided_slice %189 {offsets = [0, 128], sizes = [8, 128], strides = [1, 1]} : vector<8x512xf32> to vector<8x128xf32>
    %197 = math.tanh %196 : vector<8x128xf32>
    %cst_56 = arith.constant 5.000000e-01 : f32
    %198 = vector.broadcast %cst_56 : f32 to vector<8x128xf32>
    %199 = arith.mulf %197, %198 : vector<8x128xf32>
    %cst_57 = arith.constant 5.000000e-01 : f32
    %200 = vector.broadcast %cst_57 : f32 to vector<8x128xf32>
    %201 = arith.addf %199, %200 : vector<8x128xf32>
    %202 = vector.extract_strided_slice %189 {offsets = [0, 256], sizes = [8, 128], strides = [1, 1]} : vector<8x512xf32> to vector<8x128xf32>
    %203 = math.tanh %202 : vector<8x128xf32>
    %204 = vector.extract_strided_slice %189 {offsets = [0, 384], sizes = [8, 128], strides = [1, 1]} : vector<8x512xf32> to vector<8x128xf32>
    %205 = math.tanh %204 : vector<8x128xf32>
    %cst_58 = arith.constant 5.000000e-01 : f32
    %206 = vector.broadcast %cst_58 : f32 to vector<8x128xf32>
    %207 = arith.mulf %205, %206 : vector<8x128xf32>
    %cst_59 = arith.constant 5.000000e-01 : f32
    %208 = vector.broadcast %cst_59 : f32 to vector<8x128xf32>
    %209 = arith.addf %207, %208 : vector<8x128xf32>
    %210 = arith.mulf %201, %183 : vector<8x128xf32>
    %211 = arith.mulf %195, %203 : vector<8x128xf32>
    %212 = arith.addf %210, %211 : vector<8x128xf32>
    %213 = math.tanh %212 : vector<8x128xf32>
    %214 = arith.mulf %209, %213 : vector<8x128xf32>
    %215 = vector.extract_strided_slice %7 {offsets = [56, 0], sizes = [8, 512], strides = [1, 1]} : vector<64x512xf32> to vector<8x512xf32>
    %216 = arith.truncf %214 : vector<8x128xf32> to vector<8x128xbf16>
    %cst_60 = arith.constant dense<0.000000e+00> : vector<8x512xf32>
    %217 = tpu.matmul %216, %9, %cst_60 {dimension_numbers = #tpu.dot_dimension_numbers<[1], [0], [0], [1], [0, 0, 1, 1], [], []>} : vector<8x128xbf16>, vector<128x512xbf16>, vector<8x512xf32> -> vector<8x512xf32>
    %218 = arith.addf %215, %217 : vector<8x512xf32>
    %219 = vector.extract_strided_slice %218 {offsets = [0, 0], sizes = [8, 128], strides = [1, 1]} : vector<8x512xf32> to vector<8x128xf32>
    %220 = math.tanh %219 : vector<8x128xf32>
    %cst_61 = arith.constant 5.000000e-01 : f32
    %221 = vector.broadcast %cst_61 : f32 to vector<8x128xf32>
    %222 = arith.mulf %220, %221 : vector<8x128xf32>
    %cst_62 = arith.constant 5.000000e-01 : f32
    %223 = vector.broadcast %cst_62 : f32 to vector<8x128xf32>
    %224 = arith.addf %222, %223 : vector<8x128xf32>
    %225 = vector.extract_strided_slice %218 {offsets = [0, 128], sizes = [8, 128], strides = [1, 1]} : vector<8x512xf32> to vector<8x128xf32>
    %226 = math.tanh %225 : vector<8x128xf32>
    %cst_63 = arith.constant 5.000000e-01 : f32
    %227 = vector.broadcast %cst_63 : f32 to vector<8x128xf32>
    %228 = arith.mulf %226, %227 : vector<8x128xf32>
    %cst_64 = arith.constant 5.000000e-01 : f32
    %229 = vector.broadcast %cst_64 : f32 to vector<8x128xf32>
    %230 = arith.addf %228, %229 : vector<8x128xf32>
    %231 = vector.extract_strided_slice %218 {offsets = [0, 256], sizes = [8, 128], strides = [1, 1]} : vector<8x512xf32> to vector<8x128xf32>
    %232 = math.tanh %231 : vector<8x128xf32>
    %233 = vector.extract_strided_slice %218 {offsets = [0, 384], sizes = [8, 128], strides = [1, 1]} : vector<8x512xf32> to vector<8x128xf32>
    %234 = math.tanh %233 : vector<8x128xf32>
    %cst_65 = arith.constant 5.000000e-01 : f32
    %235 = vector.broadcast %cst_65 : f32 to vector<8x128xf32>
    %236 = arith.mulf %234, %235 : vector<8x128xf32>
    %cst_66 = arith.constant 5.000000e-01 : f32
    %237 = vector.broadcast %cst_66 : f32 to vector<8x128xf32>
    %238 = arith.addf %236, %237 : vector<8x128xf32>
    %239 = arith.mulf %230, %212 : vector<8x128xf32>
    %240 = arith.mulf %224, %232 : vector<8x128xf32>
    %241 = arith.addf %239, %240 : vector<8x128xf32>
    %242 = math.tanh %241 : vector<8x128xf32>
    %243 = arith.mulf %238, %242 : vector<8x128xf32>
    %244 = tpu.concatenate %40, %69, %98, %127, %156, %185, %214, %243 in 0 : vector<8x128xf32>, vector<8x128xf32>, vector<8x128xf32>, vector<8x128xf32>, vector<8x128xf32>, vector<8x128xf32>, vector<8x128xf32>, vector<8x128xf32> -> vector<64x128xf32>
    %c0_67 = arith.constant 0 : index
    %c0_68 = arith.constant 0 : index
    %c0_69 = arith.constant 0 : index
    %245 = vector.load %arg5[%c0_67, %c0_68, %c0_69] : memref<1x128x512xbf16, #tpu.memory_space<vmem>>, vector<1x128x512xbf16>
    %246 = vector.shape_cast %245 : vector<1x128x512xbf16> to vector<128x512xbf16>
    %247 = arith.truncf %244 : vector<64x128xf32> to vector<64x128xbf16>
    %cst_70 = arith.constant dense<0.000000e+00> : vector<64x512xf32>
    %248 = tpu.matmul %247, %246, %cst_70 {dimension_numbers = #tpu.dot_dimension_numbers<[1], [0], [0], [1], [0, 0, 1, 1], [], []>} : vector<64x128xbf16>, vector<128x512xbf16>, vector<64x512xf32> -> vector<64x512xf32>
    %c1 = arith.constant 1 : index
    %c0_71 = arith.constant 0 : index
    %c0_72 = arith.constant 0 : index
    %249 = vector.load %arg4[%c1, %c0_71, %c0_72] : memref<2x1x512xf32, #tpu.memory_space<vmem>>, vector<1x1x512xf32>
    %250 = vector.shape_cast %249 : vector<1x1x512xf32> to vector<1x512xf32>
    %251 = vector.broadcast %250 : vector<1x512xf32> to vector<64x512xf32>
    %252 = arith.addf %248, %251 : vector<64x512xf32>
    %c1_73 = arith.constant 1 : index
    %c0_74 = arith.constant 0 : index
    %c0_75 = arith.constant 0 : index
    %253 = vector.load %arg3[%c1_73, %c0_74, %c0_75] : memref<2x128x512xbf16, #tpu.memory_space<vmem>>, vector<1x128x512xbf16>
    %254 = vector.shape_cast %253 : vector<1x128x512xbf16> to vector<128x512xbf16>
    %cst_76 = arith.constant 0.000000e+00 : f32
    %255 = vector.broadcast %cst_76 : f32 to vector<8x128xf32>
    %cst_77 = arith.constant 0.000000e+00 : f32
    %256 = vector.broadcast %cst_77 : f32 to vector<8x128xf32>
    %257 = vector.extract_strided_slice %252 {offsets = [0, 0], sizes = [8, 512], strides = [1, 1]} : vector<64x512xf32> to vector<8x512xf32>
    %258 = arith.truncf %255 : vector<8x128xf32> to vector<8x128xbf16>
    %cst_78 = arith.constant dense<0.000000e+00> : vector<8x512xf32>
    %259 = tpu.matmul %258, %254, %cst_78 {dimension_numbers = #tpu.dot_dimension_numbers<[1], [0], [0], [1], [0, 0, 1, 1], [], []>} : vector<8x128xbf16>, vector<128x512xbf16>, vector<8x512xf32> -> vector<8x512xf32>
    %260 = arith.addf %257, %259 : vector<8x512xf32>
    %261 = vector.extract_strided_slice %260 {offsets = [0, 0], sizes = [8, 128], strides = [1, 1]} : vector<8x512xf32> to vector<8x128xf32>
    %262 = math.tanh %261 : vector<8x128xf32>
    %cst_79 = arith.constant 5.000000e-01 : f32
    %263 = vector.broadcast %cst_79 : f32 to vector<8x128xf32>
    %264 = arith.mulf %262, %263 : vector<8x128xf32>
    %cst_80 = arith.constant 5.000000e-01 : f32
    %265 = vector.broadcast %cst_80 : f32 to vector<8x128xf32>
    %266 = arith.addf %264, %265 : vector<8x128xf32>
    %267 = vector.extract_strided_slice %260 {offsets = [0, 128], sizes = [8, 128], strides = [1, 1]} : vector<8x512xf32> to vector<8x128xf32>
    %268 = math.tanh %267 : vector<8x128xf32>
    %cst_81 = arith.constant 5.000000e-01 : f32
    %269 = vector.broadcast %cst_81 : f32 to vector<8x128xf32>
    %270 = arith.mulf %268, %269 : vector<8x128xf32>
    %cst_82 = arith.constant 5.000000e-01 : f32
    %271 = vector.broadcast %cst_82 : f32 to vector<8x128xf32>
    %272 = arith.addf %270, %271 : vector<8x128xf32>
    %273 = vector.extract_strided_slice %260 {offsets = [0, 256], sizes = [8, 128], strides = [1, 1]} : vector<8x512xf32> to vector<8x128xf32>
    %274 = math.tanh %273 : vector<8x128xf32>
    %275 = vector.extract_strided_slice %260 {offsets = [0, 384], sizes = [8, 128], strides = [1, 1]} : vector<8x512xf32> to vector<8x128xf32>
    %276 = math.tanh %275 : vector<8x128xf32>
    %cst_83 = arith.constant 5.000000e-01 : f32
    %277 = vector.broadcast %cst_83 : f32 to vector<8x128xf32>
    %278 = arith.mulf %276, %277 : vector<8x128xf32>
    %cst_84 = arith.constant 5.000000e-01 : f32
    %279 = vector.broadcast %cst_84 : f32 to vector<8x128xf32>
    %280 = arith.addf %278, %279 : vector<8x128xf32>
    %281 = arith.mulf %272, %256 : vector<8x128xf32>
    %282 = arith.mulf %266, %274 : vector<8x128xf32>
    %283 = arith.addf %281, %282 : vector<8x128xf32>
    %284 = math.tanh %283 : vector<8x128xf32>
    %285 = arith.mulf %280, %284 : vector<8x128xf32>
    %286 = vector.extract_strided_slice %252 {offsets = [8, 0], sizes = [8, 512], strides = [1, 1]} : vector<64x512xf32> to vector<8x512xf32>
    %287 = arith.truncf %285 : vector<8x128xf32> to vector<8x128xbf16>
    %cst_85 = arith.constant dense<0.000000e+00> : vector<8x512xf32>
    %288 = tpu.matmul %287, %254, %cst_85 {dimension_numbers = #tpu.dot_dimension_numbers<[1], [0], [0], [1], [0, 0, 1, 1], [], []>} : vector<8x128xbf16>, vector<128x512xbf16>, vector<8x512xf32> -> vector<8x512xf32>
    %289 = arith.addf %286, %288 : vector<8x512xf32>
    %290 = vector.extract_strided_slice %289 {offsets = [0, 0], sizes = [8, 128], strides = [1, 1]} : vector<8x512xf32> to vector<8x128xf32>
    %291 = math.tanh %290 : vector<8x128xf32>
    %cst_86 = arith.constant 5.000000e-01 : f32
    %292 = vector.broadcast %cst_86 : f32 to vector<8x128xf32>
    %293 = arith.mulf %291, %292 : vector<8x128xf32>
    %cst_87 = arith.constant 5.000000e-01 : f32
    %294 = vector.broadcast %cst_87 : f32 to vector<8x128xf32>
    %295 = arith.addf %293, %294 : vector<8x128xf32>
    %296 = vector.extract_strided_slice %289 {offsets = [0, 128], sizes = [8, 128], strides = [1, 1]} : vector<8x512xf32> to vector<8x128xf32>
    %297 = math.tanh %296 : vector<8x128xf32>
    %cst_88 = arith.constant 5.000000e-01 : f32
    %298 = vector.broadcast %cst_88 : f32 to vector<8x128xf32>
    %299 = arith.mulf %297, %298 : vector<8x128xf32>
    %cst_89 = arith.constant 5.000000e-01 : f32
    %300 = vector.broadcast %cst_89 : f32 to vector<8x128xf32>
    %301 = arith.addf %299, %300 : vector<8x128xf32>
    %302 = vector.extract_strided_slice %289 {offsets = [0, 256], sizes = [8, 128], strides = [1, 1]} : vector<8x512xf32> to vector<8x128xf32>
    %303 = math.tanh %302 : vector<8x128xf32>
    %304 = vector.extract_strided_slice %289 {offsets = [0, 384], sizes = [8, 128], strides = [1, 1]} : vector<8x512xf32> to vector<8x128xf32>
    %305 = math.tanh %304 : vector<8x128xf32>
    %cst_90 = arith.constant 5.000000e-01 : f32
    %306 = vector.broadcast %cst_90 : f32 to vector<8x128xf32>
    %307 = arith.mulf %305, %306 : vector<8x128xf32>
    %cst_91 = arith.constant 5.000000e-01 : f32
    %308 = vector.broadcast %cst_91 : f32 to vector<8x128xf32>
    %309 = arith.addf %307, %308 : vector<8x128xf32>
    %310 = arith.mulf %301, %283 : vector<8x128xf32>
    %311 = arith.mulf %295, %303 : vector<8x128xf32>
    %312 = arith.addf %310, %311 : vector<8x128xf32>
    %313 = math.tanh %312 : vector<8x128xf32>
    %314 = arith.mulf %309, %313 : vector<8x128xf32>
    %315 = vector.extract_strided_slice %252 {offsets = [16, 0], sizes = [8, 512], strides = [1, 1]} : vector<64x512xf32> to vector<8x512xf32>
    %316 = arith.truncf %314 : vector<8x128xf32> to vector<8x128xbf16>
    %cst_92 = arith.constant dense<0.000000e+00> : vector<8x512xf32>
    %317 = tpu.matmul %316, %254, %cst_92 {dimension_numbers = #tpu.dot_dimension_numbers<[1], [0], [0], [1], [0, 0, 1, 1], [], []>} : vector<8x128xbf16>, vector<128x512xbf16>, vector<8x512xf32> -> vector<8x512xf32>
    %318 = arith.addf %315, %317 : vector<8x512xf32>
    %319 = vector.extract_strided_slice %318 {offsets = [0, 0], sizes = [8, 128], strides = [1, 1]} : vector<8x512xf32> to vector<8x128xf32>
    %320 = math.tanh %319 : vector<8x128xf32>
    %cst_93 = arith.constant 5.000000e-01 : f32
    %321 = vector.broadcast %cst_93 : f32 to vector<8x128xf32>
    %322 = arith.mulf %320, %321 : vector<8x128xf32>
    %cst_94 = arith.constant 5.000000e-01 : f32
    %323 = vector.broadcast %cst_94 : f32 to vector<8x128xf32>
    %324 = arith.addf %322, %323 : vector<8x128xf32>
    %325 = vector.extract_strided_slice %318 {offsets = [0, 128], sizes = [8, 128], strides = [1, 1]} : vector<8x512xf32> to vector<8x128xf32>
    %326 = math.tanh %325 : vector<8x128xf32>
    %cst_95 = arith.constant 5.000000e-01 : f32
    %327 = vector.broadcast %cst_95 : f32 to vector<8x128xf32>
    %328 = arith.mulf %326, %327 : vector<8x128xf32>
    %cst_96 = arith.constant 5.000000e-01 : f32
    %329 = vector.broadcast %cst_96 : f32 to vector<8x128xf32>
    %330 = arith.addf %328, %329 : vector<8x128xf32>
    %331 = vector.extract_strided_slice %318 {offsets = [0, 256], sizes = [8, 128], strides = [1, 1]} : vector<8x512xf32> to vector<8x128xf32>
    %332 = math.tanh %331 : vector<8x128xf32>
    %333 = vector.extract_strided_slice %318 {offsets = [0, 384], sizes = [8, 128], strides = [1, 1]} : vector<8x512xf32> to vector<8x128xf32>
    %334 = math.tanh %333 : vector<8x128xf32>
    %cst_97 = arith.constant 5.000000e-01 : f32
    %335 = vector.broadcast %cst_97 : f32 to vector<8x128xf32>
    %336 = arith.mulf %334, %335 : vector<8x128xf32>
    %cst_98 = arith.constant 5.000000e-01 : f32
    %337 = vector.broadcast %cst_98 : f32 to vector<8x128xf32>
    %338 = arith.addf %336, %337 : vector<8x128xf32>
    %339 = arith.mulf %330, %312 : vector<8x128xf32>
    %340 = arith.mulf %324, %332 : vector<8x128xf32>
    %341 = arith.addf %339, %340 : vector<8x128xf32>
    %342 = math.tanh %341 : vector<8x128xf32>
    %343 = arith.mulf %338, %342 : vector<8x128xf32>
    %344 = vector.extract_strided_slice %252 {offsets = [24, 0], sizes = [8, 512], strides = [1, 1]} : vector<64x512xf32> to vector<8x512xf32>
    %345 = arith.truncf %343 : vector<8x128xf32> to vector<8x128xbf16>
    %cst_99 = arith.constant dense<0.000000e+00> : vector<8x512xf32>
    %346 = tpu.matmul %345, %254, %cst_99 {dimension_numbers = #tpu.dot_dimension_numbers<[1], [0], [0], [1], [0, 0, 1, 1], [], []>} : vector<8x128xbf16>, vector<128x512xbf16>, vector<8x512xf32> -> vector<8x512xf32>
    %347 = arith.addf %344, %346 : vector<8x512xf32>
    %348 = vector.extract_strided_slice %347 {offsets = [0, 0], sizes = [8, 128], strides = [1, 1]} : vector<8x512xf32> to vector<8x128xf32>
    %349 = math.tanh %348 : vector<8x128xf32>
    %cst_100 = arith.constant 5.000000e-01 : f32
    %350 = vector.broadcast %cst_100 : f32 to vector<8x128xf32>
    %351 = arith.mulf %349, %350 : vector<8x128xf32>
    %cst_101 = arith.constant 5.000000e-01 : f32
    %352 = vector.broadcast %cst_101 : f32 to vector<8x128xf32>
    %353 = arith.addf %351, %352 : vector<8x128xf32>
    %354 = vector.extract_strided_slice %347 {offsets = [0, 128], sizes = [8, 128], strides = [1, 1]} : vector<8x512xf32> to vector<8x128xf32>
    %355 = math.tanh %354 : vector<8x128xf32>
    %cst_102 = arith.constant 5.000000e-01 : f32
    %356 = vector.broadcast %cst_102 : f32 to vector<8x128xf32>
    %357 = arith.mulf %355, %356 : vector<8x128xf32>
    %cst_103 = arith.constant 5.000000e-01 : f32
    %358 = vector.broadcast %cst_103 : f32 to vector<8x128xf32>
    %359 = arith.addf %357, %358 : vector<8x128xf32>
    %360 = vector.extract_strided_slice %347 {offsets = [0, 256], sizes = [8, 128], strides = [1, 1]} : vector<8x512xf32> to vector<8x128xf32>
    %361 = math.tanh %360 : vector<8x128xf32>
    %362 = vector.extract_strided_slice %347 {offsets = [0, 384], sizes = [8, 128], strides = [1, 1]} : vector<8x512xf32> to vector<8x128xf32>
    %363 = math.tanh %362 : vector<8x128xf32>
    %cst_104 = arith.constant 5.000000e-01 : f32
    %364 = vector.broadcast %cst_104 : f32 to vector<8x128xf32>
    %365 = arith.mulf %363, %364 : vector<8x128xf32>
    %cst_105 = arith.constant 5.000000e-01 : f32
    %366 = vector.broadcast %cst_105 : f32 to vector<8x128xf32>
    %367 = arith.addf %365, %366 : vector<8x128xf32>
    %368 = arith.mulf %359, %341 : vector<8x128xf32>
    %369 = arith.mulf %353, %361 : vector<8x128xf32>
    %370 = arith.addf %368, %369 : vector<8x128xf32>
    %371 = math.tanh %370 : vector<8x128xf32>
    %372 = arith.mulf %367, %371 : vector<8x128xf32>
    %373 = vector.extract_strided_slice %252 {offsets = [32, 0], sizes = [8, 512], strides = [1, 1]} : vector<64x512xf32> to vector<8x512xf32>
    %374 = arith.truncf %372 : vector<8x128xf32> to vector<8x128xbf16>
    %cst_106 = arith.constant dense<0.000000e+00> : vector<8x512xf32>
    %375 = tpu.matmul %374, %254, %cst_106 {dimension_numbers = #tpu.dot_dimension_numbers<[1], [0], [0], [1], [0, 0, 1, 1], [], []>} : vector<8x128xbf16>, vector<128x512xbf16>, vector<8x512xf32> -> vector<8x512xf32>
    %376 = arith.addf %373, %375 : vector<8x512xf32>
    %377 = vector.extract_strided_slice %376 {offsets = [0, 0], sizes = [8, 128], strides = [1, 1]} : vector<8x512xf32> to vector<8x128xf32>
    %378 = math.tanh %377 : vector<8x128xf32>
    %cst_107 = arith.constant 5.000000e-01 : f32
    %379 = vector.broadcast %cst_107 : f32 to vector<8x128xf32>
    %380 = arith.mulf %378, %379 : vector<8x128xf32>
    %cst_108 = arith.constant 5.000000e-01 : f32
    %381 = vector.broadcast %cst_108 : f32 to vector<8x128xf32>
    %382 = arith.addf %380, %381 : vector<8x128xf32>
    %383 = vector.extract_strided_slice %376 {offsets = [0, 128], sizes = [8, 128], strides = [1, 1]} : vector<8x512xf32> to vector<8x128xf32>
    %384 = math.tanh %383 : vector<8x128xf32>
    %cst_109 = arith.constant 5.000000e-01 : f32
    %385 = vector.broadcast %cst_109 : f32 to vector<8x128xf32>
    %386 = arith.mulf %384, %385 : vector<8x128xf32>
    %cst_110 = arith.constant 5.000000e-01 : f32
    %387 = vector.broadcast %cst_110 : f32 to vector<8x128xf32>
    %388 = arith.addf %386, %387 : vector<8x128xf32>
    %389 = vector.extract_strided_slice %376 {offsets = [0, 256], sizes = [8, 128], strides = [1, 1]} : vector<8x512xf32> to vector<8x128xf32>
    %390 = math.tanh %389 : vector<8x128xf32>
    %391 = vector.extract_strided_slice %376 {offsets = [0, 384], sizes = [8, 128], strides = [1, 1]} : vector<8x512xf32> to vector<8x128xf32>
    %392 = math.tanh %391 : vector<8x128xf32>
    %cst_111 = arith.constant 5.000000e-01 : f32
    %393 = vector.broadcast %cst_111 : f32 to vector<8x128xf32>
    %394 = arith.mulf %392, %393 : vector<8x128xf32>
    %cst_112 = arith.constant 5.000000e-01 : f32
    %395 = vector.broadcast %cst_112 : f32 to vector<8x128xf32>
    %396 = arith.addf %394, %395 : vector<8x128xf32>
    %397 = arith.mulf %388, %370 : vector<8x128xf32>
    %398 = arith.mulf %382, %390 : vector<8x128xf32>
    %399 = arith.addf %397, %398 : vector<8x128xf32>
    %400 = math.tanh %399 : vector<8x128xf32>
    %401 = arith.mulf %396, %400 : vector<8x128xf32>
    %402 = vector.extract_strided_slice %252 {offsets = [40, 0], sizes = [8, 512], strides = [1, 1]} : vector<64x512xf32> to vector<8x512xf32>
    %403 = arith.truncf %401 : vector<8x128xf32> to vector<8x128xbf16>
    %cst_113 = arith.constant dense<0.000000e+00> : vector<8x512xf32>
    %404 = tpu.matmul %403, %254, %cst_113 {dimension_numbers = #tpu.dot_dimension_numbers<[1], [0], [0], [1], [0, 0, 1, 1], [], []>} : vector<8x128xbf16>, vector<128x512xbf16>, vector<8x512xf32> -> vector<8x512xf32>
    %405 = arith.addf %402, %404 : vector<8x512xf32>
    %406 = vector.extract_strided_slice %405 {offsets = [0, 0], sizes = [8, 128], strides = [1, 1]} : vector<8x512xf32> to vector<8x128xf32>
    %407 = math.tanh %406 : vector<8x128xf32>
    %cst_114 = arith.constant 5.000000e-01 : f32
    %408 = vector.broadcast %cst_114 : f32 to vector<8x128xf32>
    %409 = arith.mulf %407, %408 : vector<8x128xf32>
    %cst_115 = arith.constant 5.000000e-01 : f32
    %410 = vector.broadcast %cst_115 : f32 to vector<8x128xf32>
    %411 = arith.addf %409, %410 : vector<8x128xf32>
    %412 = vector.extract_strided_slice %405 {offsets = [0, 128], sizes = [8, 128], strides = [1, 1]} : vector<8x512xf32> to vector<8x128xf32>
    %413 = math.tanh %412 : vector<8x128xf32>
    %cst_116 = arith.constant 5.000000e-01 : f32
    %414 = vector.broadcast %cst_116 : f32 to vector<8x128xf32>
    %415 = arith.mulf %413, %414 : vector<8x128xf32>
    %cst_117 = arith.constant 5.000000e-01 : f32
    %416 = vector.broadcast %cst_117 : f32 to vector<8x128xf32>
    %417 = arith.addf %415, %416 : vector<8x128xf32>
    %418 = vector.extract_strided_slice %405 {offsets = [0, 256], sizes = [8, 128], strides = [1, 1]} : vector<8x512xf32> to vector<8x128xf32>
    %419 = math.tanh %418 : vector<8x128xf32>
    %420 = vector.extract_strided_slice %405 {offsets = [0, 384], sizes = [8, 128], strides = [1, 1]} : vector<8x512xf32> to vector<8x128xf32>
    %421 = math.tanh %420 : vector<8x128xf32>
    %cst_118 = arith.constant 5.000000e-01 : f32
    %422 = vector.broadcast %cst_118 : f32 to vector<8x128xf32>
    %423 = arith.mulf %421, %422 : vector<8x128xf32>
    %cst_119 = arith.constant 5.000000e-01 : f32
    %424 = vector.broadcast %cst_119 : f32 to vector<8x128xf32>
    %425 = arith.addf %423, %424 : vector<8x128xf32>
    %426 = arith.mulf %417, %399 : vector<8x128xf32>
    %427 = arith.mulf %411, %419 : vector<8x128xf32>
    %428 = arith.addf %426, %427 : vector<8x128xf32>
    %429 = math.tanh %428 : vector<8x128xf32>
    %430 = arith.mulf %425, %429 : vector<8x128xf32>
    %431 = vector.extract_strided_slice %252 {offsets = [48, 0], sizes = [8, 512], strides = [1, 1]} : vector<64x512xf32> to vector<8x512xf32>
    %432 = arith.truncf %430 : vector<8x128xf32> to vector<8x128xbf16>
    %cst_120 = arith.constant dense<0.000000e+00> : vector<8x512xf32>
    %433 = tpu.matmul %432, %254, %cst_120 {dimension_numbers = #tpu.dot_dimension_numbers<[1], [0], [0], [1], [0, 0, 1, 1], [], []>} : vector<8x128xbf16>, vector<128x512xbf16>, vector<8x512xf32> -> vector<8x512xf32>
    %434 = arith.addf %431, %433 : vector<8x512xf32>
    %435 = vector.extract_strided_slice %434 {offsets = [0, 0], sizes = [8, 128], strides = [1, 1]} : vector<8x512xf32> to vector<8x128xf32>
    %436 = math.tanh %435 : vector<8x128xf32>
    %cst_121 = arith.constant 5.000000e-01 : f32
    %437 = vector.broadcast %cst_121 : f32 to vector<8x128xf32>
    %438 = arith.mulf %436, %437 : vector<8x128xf32>
    %cst_122 = arith.constant 5.000000e-01 : f32
    %439 = vector.broadcast %cst_122 : f32 to vector<8x128xf32>
    %440 = arith.addf %438, %439 : vector<8x128xf32>
    %441 = vector.extract_strided_slice %434 {offsets = [0, 128], sizes = [8, 128], strides = [1, 1]} : vector<8x512xf32> to vector<8x128xf32>
    %442 = math.tanh %441 : vector<8x128xf32>
    %cst_123 = arith.constant 5.000000e-01 : f32
    %443 = vector.broadcast %cst_123 : f32 to vector<8x128xf32>
    %444 = arith.mulf %442, %443 : vector<8x128xf32>
    %cst_124 = arith.constant 5.000000e-01 : f32
    %445 = vector.broadcast %cst_124 : f32 to vector<8x128xf32>
    %446 = arith.addf %444, %445 : vector<8x128xf32>
    %447 = vector.extract_strided_slice %434 {offsets = [0, 256], sizes = [8, 128], strides = [1, 1]} : vector<8x512xf32> to vector<8x128xf32>
    %448 = math.tanh %447 : vector<8x128xf32>
    %449 = vector.extract_strided_slice %434 {offsets = [0, 384], sizes = [8, 128], strides = [1, 1]} : vector<8x512xf32> to vector<8x128xf32>
    %450 = math.tanh %449 : vector<8x128xf32>
    %cst_125 = arith.constant 5.000000e-01 : f32
    %451 = vector.broadcast %cst_125 : f32 to vector<8x128xf32>
    %452 = arith.mulf %450, %451 : vector<8x128xf32>
    %cst_126 = arith.constant 5.000000e-01 : f32
    %453 = vector.broadcast %cst_126 : f32 to vector<8x128xf32>
    %454 = arith.addf %452, %453 : vector<8x128xf32>
    %455 = arith.mulf %446, %428 : vector<8x128xf32>
    %456 = arith.mulf %440, %448 : vector<8x128xf32>
    %457 = arith.addf %455, %456 : vector<8x128xf32>
    %458 = math.tanh %457 : vector<8x128xf32>
    %459 = arith.mulf %454, %458 : vector<8x128xf32>
    %460 = vector.extract_strided_slice %252 {offsets = [56, 0], sizes = [8, 512], strides = [1, 1]} : vector<64x512xf32> to vector<8x512xf32>
    %461 = arith.truncf %459 : vector<8x128xf32> to vector<8x128xbf16>
    %cst_127 = arith.constant dense<0.000000e+00> : vector<8x512xf32>
    %462 = tpu.matmul %461, %254, %cst_127 {dimension_numbers = #tpu.dot_dimension_numbers<[1], [0], [0], [1], [0, 0, 1, 1], [], []>} : vector<8x128xbf16>, vector<128x512xbf16>, vector<8x512xf32> -> vector<8x512xf32>
    %463 = arith.addf %460, %462 : vector<8x512xf32>
    %464 = vector.extract_strided_slice %463 {offsets = [0, 0], sizes = [8, 128], strides = [1, 1]} : vector<8x512xf32> to vector<8x128xf32>
    %465 = math.tanh %464 : vector<8x128xf32>
    %cst_128 = arith.constant 5.000000e-01 : f32
    %466 = vector.broadcast %cst_128 : f32 to vector<8x128xf32>
    %467 = arith.mulf %465, %466 : vector<8x128xf32>
    %cst_129 = arith.constant 5.000000e-01 : f32
    %468 = vector.broadcast %cst_129 : f32 to vector<8x128xf32>
    %469 = arith.addf %467, %468 : vector<8x128xf32>
    %470 = vector.extract_strided_slice %463 {offsets = [0, 128], sizes = [8, 128], strides = [1, 1]} : vector<8x512xf32> to vector<8x128xf32>
    %471 = math.tanh %470 : vector<8x128xf32>
    %cst_130 = arith.constant 5.000000e-01 : f32
    %472 = vector.broadcast %cst_130 : f32 to vector<8x128xf32>
    %473 = arith.mulf %471, %472 : vector<8x128xf32>
    %cst_131 = arith.constant 5.000000e-01 : f32
    %474 = vector.broadcast %cst_131 : f32 to vector<8x128xf32>
    %475 = arith.addf %473, %474 : vector<8x128xf32>
    %476 = vector.extract_strided_slice %463 {offsets = [0, 256], sizes = [8, 128], strides = [1, 1]} : vector<8x512xf32> to vector<8x128xf32>
    %477 = math.tanh %476 : vector<8x128xf32>
    %478 = vector.extract_strided_slice %463 {offsets = [0, 384], sizes = [8, 128], strides = [1, 1]} : vector<8x512xf32> to vector<8x128xf32>
    %479 = math.tanh %478 : vector<8x128xf32>
    %cst_132 = arith.constant 5.000000e-01 : f32
    %480 = vector.broadcast %cst_132 : f32 to vector<8x128xf32>
    %481 = arith.mulf %479, %480 : vector<8x128xf32>
    %cst_133 = arith.constant 5.000000e-01 : f32
    %482 = vector.broadcast %cst_133 : f32 to vector<8x128xf32>
    %483 = arith.addf %481, %482 : vector<8x128xf32>
    %484 = arith.mulf %475, %457 : vector<8x128xf32>
    %485 = arith.mulf %469, %477 : vector<8x128xf32>
    %486 = arith.addf %484, %485 : vector<8x128xf32>
    %487 = math.tanh %486 : vector<8x128xf32>
    %488 = arith.mulf %483, %487 : vector<8x128xf32>
    %c0_134 = arith.constant 0 : index
    %c0_135 = arith.constant 0 : index
    %489 = vector.load %arg1[%c0_134, %c0_135] : memref<8x32xf32, #tpu.memory_space<vmem>>, vector<8x32xf32>
    %c0_136 = arith.constant 0 : index
    %c0_137 = arith.constant 0 : index
    %490 = vector.load %arg6[%c0_136, %c0_137] : memref<32x512xbf16, #tpu.memory_space<vmem>>, vector<32x512xbf16>
    %491 = arith.truncf %489 : vector<8x32xf32> to vector<8x32xbf16>
    %cst_138 = arith.constant dense<0.000000e+00> : vector<8x512xf32>
    %492 = tpu.matmul %491, %490, %cst_138 {dimension_numbers = #tpu.dot_dimension_numbers<[1], [0], [0], [1], [0, 0, 1, 1], [], []>} : vector<8x32xbf16>, vector<32x512xbf16>, vector<8x512xf32> -> vector<8x512xf32>
    %c0_139 = arith.constant 0 : index
    %c0_140 = arith.constant 0 : index
    %493 = vector.load %arg7[%c0_139, %c0_140] : memref<1x512xf32, #tpu.memory_space<vmem>>, vector<1x512xf32>
    %494 = vector.broadcast %493 : vector<1x512xf32> to vector<8x512xf32>
    %495 = arith.addf %492, %494 : vector<8x512xf32>
    %496 = vector.extract_strided_slice %495 {offsets = [0, 384], sizes = [8, 128], strides = [1, 1]} : vector<8x512xf32> to vector<8x128xf32>
    %cst_141 = arith.constant dense<0xFF800000> : vector<8xf32>
    %497 = vector.multi_reduction <maximumf>, %496, %cst_141 [1] : vector<8x128xf32> to vector<8xf32>
    %498 = vector.shape_cast %497 : vector<8xf32> to vector<8x1xf32>
    %499 = vector.broadcast %498 : vector<8x1xf32> to vector<8x128xf32>
    %500 = arith.subf %496, %499 : vector<8x128xf32>
    %501 = math.exp %500 : vector<8x128xf32>
    %cst_142 = arith.constant dense<0.000000e+00> : vector<8xf32>
    %502 = vector.multi_reduction <add>, %501, %cst_142 [1] : vector<8x128xf32> to vector<8xf32>
    %503 = vector.shape_cast %502 : vector<8xf32> to vector<8x1xf32>
    %504 = tpu.reciprocal %503 {approx = true} : vector<8x1xf32> -> vector<8x1xf32>
    %505 = vector.broadcast %504 : vector<8x1xf32> to vector<8x128xf32>
    %506 = arith.mulf %501, %505 : vector<8x128xf32>
    %cst_143 = arith.constant 0.000000e+00 : f32
    %507 = vector.broadcast %cst_143 : f32 to vector<8x128xf32>
    %cst_144 = arith.constant 0.000000e+00 : f32
    %508 = vector.broadcast %cst_144 : f32 to vector<8x128xf32>
    %509 = vector.extract_strided_slice %495 {offsets = [0, 0], sizes = [8, 128], strides = [1, 1]} : vector<8x512xf32> to vector<8x128xf32>
    %cst_145 = arith.constant dense<0xFF800000> : vector<8xf32>
    %510 = vector.multi_reduction <maximumf>, %509, %cst_145 [1] : vector<8x128xf32> to vector<8xf32>
    %511 = vector.shape_cast %510 : vector<8xf32> to vector<8x1xf32>
    %512 = vector.broadcast %511 : vector<8x1xf32> to vector<8x128xf32>
    %513 = arith.subf %509, %512 : vector<8x128xf32>
    %514 = math.exp %513 : vector<8x128xf32>
    %cst_146 = arith.constant dense<0.000000e+00> : vector<8xf32>
    %515 = vector.multi_reduction <add>, %514, %cst_146 [1] : vector<8x128xf32> to vector<8xf32>
    %516 = vector.shape_cast %515 : vector<8xf32> to vector<8x1xf32>
    %517 = tpu.reciprocal %516 {approx = true} : vector<8x1xf32> -> vector<8x1xf32>
    %cst_147 = arith.constant 3.200000e+01 : f32
    %518 = vector.broadcast %cst_147 : f32 to vector<8x1xf32>
    %519 = arith.mulf %518, %517 : vector<8x1xf32>
    %520 = vector.broadcast %519 : vector<8x1xf32> to vector<8x128xf32>
    %521 = arith.mulf %514, %520 : vector<8x128xf32>
    %522 = arith.mulf %488, %521 : vector<8x128xf32>
    %c0_148 = arith.constant 0 : index
    %c0_149 = arith.constant 0 : index
    %c0_150 = arith.constant 0 : index
    %523 = vector.load %arg8[%c0_148, %c0_149, %c0_150] : memref<3x128x8xbf16, #tpu.memory_space<vmem>>, vector<1x128x8xbf16>
    %524 = vector.shape_cast %523 : vector<1x128x8xbf16> to vector<128x8xbf16>
    %525 = arith.truncf %522 : vector<8x128xf32> to vector<8x128xbf16>
    %cst_151 = arith.constant dense<0.000000e+00> : vector<8x8xf32>
    %526 = tpu.matmul %525, %524, %cst_151 {dimension_numbers = #tpu.dot_dimension_numbers<[1], [0], [0], [1], [0, 0, 1, 1], [], []>} : vector<8x128xbf16>, vector<128x8xbf16>, vector<8x8xf32> -> vector<8x8xf32>
    %c0_152 = arith.constant 0 : index
    %c0_153 = arith.constant 0 : index
    %c0_154 = arith.constant 0 : index
    %527 = vector.load %arg9[%c0_152, %c0_153, %c0_154] : memref<3x1x8xf32, #tpu.memory_space<vmem>>, vector<1x1x8xf32>
    %528 = vector.shape_cast %527 : vector<1x1x8xf32> to vector<1x8xf32>
    %529 = vector.broadcast %528 : vector<1x8xf32> to vector<8x8xf32>
    %530 = arith.addf %526, %529 : vector<8x8xf32>
    %531 = math.tanh %530 : vector<8x8xf32>
    %c0_155 = arith.constant 0 : index
    %c0_156 = arith.constant 0 : index
    %c0_157 = arith.constant 0 : index
    %532 = vector.load %arg10[%c0_155, %c0_156, %c0_157] : memref<3x8x128xf32, #tpu.memory_space<vmem>>, vector<1x8x128xf32>
    %533 = vector.shape_cast %532 : vector<1x8x128xf32> to vector<8x128xf32>
    %cst_158 = arith.constant dense<0.000000e+00> : vector<8x128xf32>
    %534 = tpu.matmul %531, %533, %cst_158 {dimension_numbers = #tpu.dot_dimension_numbers<[1], [0], [0], [1], [0, 0, 1, 1], [], []>} : vector<8x8xf32>, vector<8x128xf32>, vector<8x128xf32> -> vector<8x128xf32>
    %c0_159 = arith.constant 0 : index
    %c0_160 = arith.constant 0 : index
    %c0_161 = arith.constant 0 : index
    %535 = vector.load %arg11[%c0_159, %c0_160, %c0_161] : memref<3x1x128xf32, #tpu.memory_space<vmem>>, vector<1x1x128xf32>
    %536 = vector.shape_cast %535 : vector<1x1x128xf32> to vector<1x128xf32>
    %537 = vector.broadcast %536 : vector<1x128xf32> to vector<8x128xf32>
    %538 = arith.addf %534, %537 : vector<8x128xf32>
    %539 = arith.addf %507, %538 : vector<8x128xf32>
    %540 = vector.extract_strided_slice %506 {offsets = [0, 0], sizes = [8, 1], strides = [1, 1]} : vector<8x128xf32> to vector<8x1xf32>
    %541 = vector.broadcast %540 : vector<8x1xf32> to vector<8x128xf32>
    %542 = arith.mulf %538, %541 : vector<8x128xf32>
    %543 = arith.addf %508, %542 : vector<8x128xf32>
    %544 = vector.extract_strided_slice %495 {offsets = [0, 128], sizes = [8, 128], strides = [1, 1]} : vector<8x512xf32> to vector<8x128xf32>
    %cst_162 = arith.constant dense<0xFF800000> : vector<8xf32>
    %545 = vector.multi_reduction <maximumf>, %544, %cst_162 [1] : vector<8x128xf32> to vector<8xf32>
    %546 = vector.shape_cast %545 : vector<8xf32> to vector<8x1xf32>
    %547 = vector.broadcast %546 : vector<8x1xf32> to vector<8x128xf32>
    %548 = arith.subf %544, %547 : vector<8x128xf32>
    %549 = math.exp %548 : vector<8x128xf32>
    %cst_163 = arith.constant dense<0.000000e+00> : vector<8xf32>
    %550 = vector.multi_reduction <add>, %549, %cst_163 [1] : vector<8x128xf32> to vector<8xf32>
    %551 = vector.shape_cast %550 : vector<8xf32> to vector<8x1xf32>
    %552 = tpu.reciprocal %551 {approx = true} : vector<8x1xf32> -> vector<8x1xf32>
    %cst_164 = arith.constant 3.200000e+01 : f32
    %553 = vector.broadcast %cst_164 : f32 to vector<8x1xf32>
    %554 = arith.mulf %553, %552 : vector<8x1xf32>
    %555 = vector.broadcast %554 : vector<8x1xf32> to vector<8x128xf32>
    %556 = arith.mulf %549, %555 : vector<8x128xf32>
    %557 = arith.mulf %488, %556 : vector<8x128xf32>
    %c1_165 = arith.constant 1 : index
    %c0_166 = arith.constant 0 : index
    %c0_167 = arith.constant 0 : index
    %558 = vector.load %arg8[%c1_165, %c0_166, %c0_167] : memref<3x128x8xbf16, #tpu.memory_space<vmem>>, vector<1x128x8xbf16>
    %559 = vector.shape_cast %558 : vector<1x128x8xbf16> to vector<128x8xbf16>
    %560 = arith.truncf %557 : vector<8x128xf32> to vector<8x128xbf16>
    %cst_168 = arith.constant dense<0.000000e+00> : vector<8x8xf32>
    %561 = tpu.matmul %560, %559, %cst_168 {dimension_numbers = #tpu.dot_dimension_numbers<[1], [0], [0], [1], [0, 0, 1, 1], [], []>} : vector<8x128xbf16>, vector<128x8xbf16>, vector<8x8xf32> -> vector<8x8xf32>
    %c1_169 = arith.constant 1 : index
    %c0_170 = arith.constant 0 : index
    %c0_171 = arith.constant 0 : index
    %562 = vector.load %arg9[%c1_169, %c0_170, %c0_171] : memref<3x1x8xf32, #tpu.memory_space<vmem>>, vector<1x1x8xf32>
    %563 = vector.shape_cast %562 : vector<1x1x8xf32> to vector<1x8xf32>
    %564 = vector.broadcast %563 : vector<1x8xf32> to vector<8x8xf32>
    %565 = arith.addf %561, %564 : vector<8x8xf32>
    %566 = math.tanh %565 : vector<8x8xf32>
    %c1_172 = arith.constant 1 : index
    %c0_173 = arith.constant 0 : index
    %c0_174 = arith.constant 0 : index
    %567 = vector.load %arg10[%c1_172, %c0_173, %c0_174] : memref<3x8x128xf32, #tpu.memory_space<vmem>>, vector<1x8x128xf32>
    %568 = vector.shape_cast %567 : vector<1x8x128xf32> to vector<8x128xf32>
    %cst_175 = arith.constant dense<0.000000e+00> : vector<8x128xf32>
    %569 = tpu.matmul %566, %568, %cst_175 {dimension_numbers = #tpu.dot_dimension_numbers<[1], [0], [0], [1], [0, 0, 1, 1], [], []>} : vector<8x8xf32>, vector<8x128xf32>, vector<8x128xf32> -> vector<8x128xf32>
    %c1_176 = arith.constant 1 : index
    %c0_177 = arith.constant 0 : index
    %c0_178 = arith.constant 0 : index
    %570 = vector.load %arg11[%c1_176, %c0_177, %c0_178] : memref<3x1x128xf32, #tpu.memory_space<vmem>>, vector<1x1x128xf32>
    %571 = vector.shape_cast %570 : vector<1x1x128xf32> to vector<1x128xf32>
    %572 = vector.broadcast %571 : vector<1x128xf32> to vector<8x128xf32>
    %573 = arith.addf %569, %572 : vector<8x128xf32>
    %574 = arith.addf %539, %573 : vector<8x128xf32>
    %575 = vector.extract_strided_slice %506 {offsets = [0, 1], sizes = [8, 1], strides = [1, 1]} : vector<8x128xf32> to vector<8x1xf32>
    %576 = vector.broadcast %575 : vector<8x1xf32> to vector<8x128xf32>
    %577 = arith.mulf %573, %576 : vector<8x128xf32>
    %578 = arith.addf %543, %577 : vector<8x128xf32>
    %579 = vector.extract_strided_slice %495 {offsets = [0, 256], sizes = [8, 128], strides = [1, 1]} : vector<8x512xf32> to vector<8x128xf32>
    %cst_179 = arith.constant dense<0xFF800000> : vector<8xf32>
    %580 = vector.multi_reduction <maximumf>, %579, %cst_179 [1] : vector<8x128xf32> to vector<8xf32>
    %581 = vector.shape_cast %580 : vector<8xf32> to vector<8x1xf32>
    %582 = vector.broadcast %581 : vector<8x1xf32> to vector<8x128xf32>
    %583 = arith.subf %579, %582 : vector<8x128xf32>
    %584 = math.exp %583 : vector<8x128xf32>
    %cst_180 = arith.constant dense<0.000000e+00> : vector<8xf32>
    %585 = vector.multi_reduction <add>, %584, %cst_180 [1] : vector<8x128xf32> to vector<8xf32>
    %586 = vector.shape_cast %585 : vector<8xf32> to vector<8x1xf32>
    %587 = tpu.reciprocal %586 {approx = true} : vector<8x1xf32> -> vector<8x1xf32>
    %cst_181 = arith.constant 3.200000e+01 : f32
    %588 = vector.broadcast %cst_181 : f32 to vector<8x1xf32>
    %589 = arith.mulf %588, %587 : vector<8x1xf32>
    %590 = vector.broadcast %589 : vector<8x1xf32> to vector<8x128xf32>
    %591 = arith.mulf %584, %590 : vector<8x128xf32>
    %592 = arith.mulf %488, %591 : vector<8x128xf32>
    %c2 = arith.constant 2 : index
    %c0_182 = arith.constant 0 : index
    %c0_183 = arith.constant 0 : index
    %593 = vector.load %arg8[%c2, %c0_182, %c0_183] : memref<3x128x8xbf16, #tpu.memory_space<vmem>>, vector<1x128x8xbf16>
    %594 = vector.shape_cast %593 : vector<1x128x8xbf16> to vector<128x8xbf16>
    %595 = arith.truncf %592 : vector<8x128xf32> to vector<8x128xbf16>
    %cst_184 = arith.constant dense<0.000000e+00> : vector<8x8xf32>
    %596 = tpu.matmul %595, %594, %cst_184 {dimension_numbers = #tpu.dot_dimension_numbers<[1], [0], [0], [1], [0, 0, 1, 1], [], []>} : vector<8x128xbf16>, vector<128x8xbf16>, vector<8x8xf32> -> vector<8x8xf32>
    %c2_185 = arith.constant 2 : index
    %c0_186 = arith.constant 0 : index
    %c0_187 = arith.constant 0 : index
    %597 = vector.load %arg9[%c2_185, %c0_186, %c0_187] : memref<3x1x8xf32, #tpu.memory_space<vmem>>, vector<1x1x8xf32>
    %598 = vector.shape_cast %597 : vector<1x1x8xf32> to vector<1x8xf32>
    %599 = vector.broadcast %598 : vector<1x8xf32> to vector<8x8xf32>
    %600 = arith.addf %596, %599 : vector<8x8xf32>
    %601 = math.tanh %600 : vector<8x8xf32>
    %c2_188 = arith.constant 2 : index
    %c0_189 = arith.constant 0 : index
    %c0_190 = arith.constant 0 : index
    %602 = vector.load %arg10[%c2_188, %c0_189, %c0_190] : memref<3x8x128xf32, #tpu.memory_space<vmem>>, vector<1x8x128xf32>
    %603 = vector.shape_cast %602 : vector<1x8x128xf32> to vector<8x128xf32>
    %cst_191 = arith.constant dense<0.000000e+00> : vector<8x128xf32>
    %604 = tpu.matmul %601, %603, %cst_191 {dimension_numbers = #tpu.dot_dimension_numbers<[1], [0], [0], [1], [0, 0, 1, 1], [], []>} : vector<8x8xf32>, vector<8x128xf32>, vector<8x128xf32> -> vector<8x128xf32>
    %c2_192 = arith.constant 2 : index
    %c0_193 = arith.constant 0 : index
    %c0_194 = arith.constant 0 : index
    %605 = vector.load %arg11[%c2_192, %c0_193, %c0_194] : memref<3x1x128xf32, #tpu.memory_space<vmem>>, vector<1x1x128xf32>
    %606 = vector.shape_cast %605 : vector<1x1x128xf32> to vector<1x128xf32>
    %607 = vector.broadcast %606 : vector<1x128xf32> to vector<8x128xf32>
    %608 = arith.addf %604, %607 : vector<8x128xf32>
    %609 = arith.addf %574, %608 : vector<8x128xf32>
    %610 = vector.extract_strided_slice %506 {offsets = [0, 2], sizes = [8, 1], strides = [1, 1]} : vector<8x128xf32> to vector<8x1xf32>
    %611 = vector.broadcast %610 : vector<8x1xf32> to vector<8x128xf32>
    %612 = arith.mulf %608, %611 : vector<8x128xf32>
    %613 = arith.addf %578, %612 : vector<8x128xf32>
    %c0_195 = arith.constant 0 : index
    %c0_196 = arith.constant 0 : index
    %614 = vector.load %arg12[%c0_195, %c0_196] : memref<128x3xf32, #tpu.memory_space<vmem>>, vector<128x3xf32>
    %cst_197 = arith.constant dense<0.000000e+00> : vector<8x3xf32>
    %615 = tpu.matmul %613, %614, %cst_197 {dimension_numbers = #tpu.dot_dimension_numbers<[1], [0], [0], [1], [0, 0, 1, 1], [], []>} : vector<8x128xf32>, vector<128x3xf32>, vector<8x3xf32> -> vector<8x3xf32>
    %c0_198 = arith.constant 0 : index
    %c0_199 = arith.constant 0 : index
    %616 = vector.load %arg13[%c0_198, %c0_199] : memref<1x3xf32, #tpu.memory_space<vmem>>, vector<1x3xf32>
    %617 = vector.broadcast %616 : vector<1x3xf32> to vector<8x3xf32>
    %618 = arith.addf %615, %617 : vector<8x3xf32>
    %619 = math.tanh %618 : vector<8x3xf32>
    %c0_200 = arith.constant 0 : index
    %c0_201 = arith.constant 0 : index
    %620 = vector.load %arg14[%c0_200, %c0_201] : memref<3x128xf32, #tpu.memory_space<vmem>>, vector<3x128xf32>
    %cst_202 = arith.constant dense<0.000000e+00> : vector<8x128xf32>
    %621 = tpu.matmul %619, %620, %cst_202 {dimension_numbers = #tpu.dot_dimension_numbers<[1], [0], [0], [1], [0, 0, 1, 1], [], []>} : vector<8x3xf32>, vector<3x128xf32>, vector<8x128xf32> -> vector<8x128xf32>
    %c0_203 = arith.constant 0 : index
    %c0_204 = arith.constant 0 : index
    %622 = vector.load %arg15[%c0_203, %c0_204] : memref<1x128xf32, #tpu.memory_space<vmem>>, vector<1x128xf32>
    %623 = vector.broadcast %622 : vector<1x128xf32> to vector<8x128xf32>
    %624 = arith.addf %621, %623 : vector<8x128xf32>
    %cst_205 = arith.constant dense<0xFF800000> : vector<8xf32>
    %625 = vector.multi_reduction <maximumf>, %624, %cst_205 [1] : vector<8x128xf32> to vector<8xf32>
    %626 = vector.shape_cast %625 : vector<8xf32> to vector<8x1xf32>
    %627 = vector.broadcast %626 : vector<8x1xf32> to vector<8x128xf32>
    %628 = arith.subf %624, %627 : vector<8x128xf32>
    %629 = math.exp %628 : vector<8x128xf32>
    %cst_206 = arith.constant dense<0.000000e+00> : vector<8xf32>
    %630 = vector.multi_reduction <add>, %629, %cst_206 [1] : vector<8x128xf32> to vector<8xf32>
    %631 = vector.shape_cast %630 : vector<8xf32> to vector<8x1xf32>
    %632 = tpu.reciprocal %631 {approx = true} : vector<8x1xf32> -> vector<8x1xf32>
    %633 = vector.broadcast %632 : vector<8x1xf32> to vector<8x128xf32>
    %634 = arith.mulf %629, %633 : vector<8x128xf32>
    %635 = arith.addf %609, %634 : vector<8x128xf32>
    %c0_207 = arith.constant 0 : index
    %c0_208 = arith.constant 0 : index
    %636 = vector.load %arg16[%c0_207, %c0_208] : memref<8x128xf32, #tpu.memory_space<vmem>>, vector<8x128xf32>
    tpu.vector_store %arg16[%c0_207, %c0_208], %635 {strides = array<i32>} : memref<8x128xf32, #tpu.memory_space<vmem>>, vector<8x128xf32>,
    return
  }
}

</mosaic_0001>

<bundles_post_ra>
// kernel: fwd.1
= control target key start
LH: loop header
LB: loop body
LE: loop exit
PB: predicated region body
PF: predicated region fallthrough
CT: control target
= control target key end

     0   :  { %v69_v0 = vlaneseq  ;;  %v4526_v2 = vmov 1983009808   ;;  %v6478_v4 = vmov 0   ;;  %vm120_vm0 = vcmask 1041408   ;;  %s6461_s2 = inlined_call_operand.vmem [shape: bf16[4,512], index: 2, kind: input, shape index: {}]   ;;  %s6462_s3 = inlined_call_operand.vmem [shape: bf16[2,128,512], index: 3, kind: input, shape index: {}]   ;;  %s6463_s0 = inlined_call_operand.vmem [shape: f32[64,4], index: 0, kind: input, shape index: {}]   ;;  %s6464_s4 = inlined_call_operand.vmem [shape: f32[2,1,512], index: 4, kind: input, shape index: {}]   ;;  %s6465_s5 = inlined_call_operand.vmem [shape: bf16[1,128,512], index: 5, kind: input, shape index: {}]   ;;  %s6466_s6 = inlined_call_operand.vmem [shape: bf16[32,512], index: 6, kind: input, shape index: {}]   ;;  %s6467_s1 = inlined_call_operand.vmem [shape: f32[8,32], index: 1, kind: input, shape index: {}]   ;;  %s6468_s7 = inlined_call_operand.vmem [shape: f32[1,512], index: 7, kind: input, shape index: {}]   ;;  %s6469_s8 = inlined_call_operand.vmem [shape: bf16[3,128,8], index: 8, kind: input, shape index: {}]   ;;  %s6470_s10 = inlined_call_operand.vmem [shape: f32[3,8,128], index: 10, kind: input, shape index: {}]   ;;  %s6471_s9 = inlined_call_operand.vmem [shape: f32[3,1,8], index: 9, kind: input, shape index: {}]   ;;  %s6472_s12 = inlined_call_operand.vmem [shape: f32[128,3], index: 12, kind: input, shape index: {}]   ;;  %s6473_s11 = inlined_call_operand.vmem [shape: f32[3,1,128], index: 11, kind: input, shape index: {}]   ;;  %s6474_s14 = inlined_call_operand.vmem [shape: f32[3,128], index: 14, kind: input, shape index: {}]   ;;  %s6475_s13 = inlined_call_operand.vmem [shape: f32[1,3], index: 13, kind: input, shape index: {}]   ;;  %s6476_s15 = inlined_call_operand.vmem [shape: f32[1,128], index: 15, kind: input, shape index: {}]   ;;  %s6477_s16 = inlined_call_operand.vmem [shape: f32[8,128], index: 16, kind: output, shape index: {}]  }
   0x1   :  { %6488 = sst [smem:[#allocation29_spill]] %s6461_s2  ;;  %v92_v3 = vunpack.c.l.s4 %v4526_v2  ;;  %165 = vmatprep.mubr.bf16.mxu0 %v6478_v4  ;;  %238 = vmatprep.mubr.bf16.mxu1 %v6478_v4  ;;  %v54_v11 = vld [vmem:[%s6463_s0] sm:$0xff]  ;;  %v55_v12 = vld [vmem:[%s6463_s0 + $0x8] sm:$0xff]  ;;  %vm107_vm1 = vcmask 31744   ;;  %v56_v26 = vld [vmem:[%s6463_s0 + $0x10] sm:$0xff]  ;;  %vm2731_vm2 = vcmask 261120  }
   0x2   :  { %s6489_s23 = sld [smem:[#allocation29_spill]]  ;;  %v4623_v5 = vshrl.u32 %v69_v0, 7  ;;  %4089 = vset.pattern.permute.xlu0 %v6478_v4  ;;  %v4636_v13 = vld [vmem:[%s6462_s3 + $0x4] ss:$16 sps:$4 sm:$0xff]   ;;  %v4641_v18 = vld [vmem:[%s6462_s3 + $0xc] ss:$16 sps:$4 sm:$0xff]   ;;  %v63_v19 = vpack.c.bf16 %v55_v12, %v54_v11 }
   0x3   :  { %v93_v6 = vunpack.c.0.s8 %v92_v3  ;;  %v4646_v20 = vld [vmem:[%s6462_s3] ss:$16 sps:$4 sm:$0xff]   ;;  %v4651_v21 = vld [vmem:[%s6462_s3 + $0x8] ss:$16 sps:$4 sm:$0xff]   ;;  %v4658_v22 = vld [vmem:[%s6462_s3 + $0x24] ss:$16 sps:$4 sm:$0xff]  }
   0x4   :  { %v4663_v23 = vld [vmem:[%s6462_s3 + $0x2c] ss:$16 sps:$4 sm:$0xff]   ;;  %v4668_v24 = vld [vmem:[%s6462_s3 + $0x20] ss:$16 sps:$4 sm:$0xff]   ;;  %v4673_v25 = vld [vmem:[%s6462_s3 + $0x28] ss:$16 sps:$4 sm:$0xff]  }
   0x5   :  { %v96_v8 = vsub.s32 %v93_v6, %v4623_v5  ;;  %v57_v27 = vld [vmem:[%s6463_s0 + $0x18] sm:$0xff]  ;;  %v4688_v28 = vld [vmem:[%s6462_s3 + $0x44] ss:$16 sps:$4 sm:$0xff]   ;;  %v4702_v31 = vld [vmem:[%s6462_s3 + $0x40] ss:$16 sps:$4 sm:$0xff]   ;;  %v4898_v59 = vsub.s32 2, %v4623_v5 }
   0x6   :  { %v4695_v29 = vld [vmem:[%s6462_s3 + $0x4c] ss:$16 sps:$4 sm:$0xff]   ;;  %v64_v30 = vpack.c.bf16 %v57_v27, %v56_v26  ;;  %v4707_v32 = vld [vmem:[%s6462_s3 + $0x48] ss:$16 sps:$4 sm:$0xff]   ;;  %v4714_v33 = vld [vmem:[%s6462_s3 + $0x64] ss:$16 sps:$4 sm:$0xff]  }
   0x7   :  { %v4721_v34 = vld [vmem:[%s6462_s3 + $0x6c] ss:$16 sps:$4 sm:$0xff]   ;;  %v4726_v35 = vld [vmem:[%s6462_s3 + $0x60] ss:$16 sps:$4 sm:$0xff]   ;;  %v4733_v36 = vld [vmem:[%s6462_s3 + $0x68] ss:$16 sps:$4 sm:$0xff]  }
   0x8   :  { %v62_v1 = vld [vmem:[%s6489_s23] sm:$0xff]  ;;  %v59_v38 = vld [vmem:[%s6463_s0 + $0x28] sm:$0xff]  ;;  %v60_v48 = vld [vmem:[%s6463_s0 + $0x30] sm:$0xff]  ;;  %6490 = vst [vmem:[#allocation2_spill] sm:$0xff] %v4898_v59  ;;  %v4901_v60 = vsub.s32 3, %v4623_v5  ;;  %v4904_v61 = vsub.s32 0, %v4623_v5 }
   0x9   :  { %v90_v7 = vcombine.high %v62_v1, %v62_v1  ;;  %v97_v9 = vrot.slane %v62_v1, %v96_v8  ;;  %v58_v37 = vld [vmem:[%s6463_s0 + $0x20] sm:$0xff]  ;;  %v4753_v40 = vld [vmem:[%s6462_s3 + $0x8c] ss:$16 sps:$4 sm:$0xff]   ;;  %v4765_v42 = vld [vmem:[%s6462_s3 + $0x88] ss:$16 sps:$4 sm:$0xff]   ;;  %v4910_v63 = vsub.s32 1, %v4623_v5 }
   0xa   :  { %v4748_v39 = vld [vmem:[%s6462_s3 + $0x84] ss:$16 sps:$4 sm:$0xff]   ;;  %v4760_v41 = vld [vmem:[%s6462_s3 + $0x80] ss:$16 sps:$4 sm:$0xff]   ;;  %v65_v43 = vpack.c.bf16 %v59_v38, %v58_v37  ;;  %v4775_v45 = vld [vmem:[%s6462_s3 + $0xac] ss:$16 sps:$4 sm:$0xff]  }
   0xb   :  { %v104_v10 = vrot.slane %v90_v7, %v96_v8  ;;  %v105_v14 = vcombine.high %v97_v9, %v97_v9  ;;  %v122_v16 = vsel %vm120_vm0, %v97_v9, 0  ;;  %v4770_v44 = vld [vmem:[%s6462_s3 + $0xa4] ss:$16 sps:$4 sm:$0xff]   ;;  %v4784_v46 = vld [vmem:[%s6462_s3 + $0xa0] ss:$16 sps:$4 sm:$0xff]   ;;  %v61_v49 = vld [vmem:[%s6463_s0 + $0x38] sm:$0xff] }
   0xc   :  { %v4789_v47 = vld [vmem:[%s6462_s3 + $0xa8] ss:$16 sps:$4 sm:$0xff]   ;;  %v4802_v50 = vld [vmem:[%s6462_s3 + $0xc4] ss:$16 sps:$4 sm:$0xff]   ;;  %v4807_v51 = vld [vmem:[%s6462_s3 + $0xcc] ss:$16 sps:$4 sm:$0xff]   ;;  %v66_v52 = vpack.c.bf16 %v61_v49, %v60_v48 }
   0xd   :  { %v106_v15 = vcombine.high %v104_v10, %v104_v10  ;;  %v128_v17 = vsel %vm120_vm0, %v104_v10, 0  ;;  %3667 = vmatprep.subr.msk.bf16.mxu0 %vm120_vm0, %v105_v14  ;;  %v4820_v53 = vld [vmem:[%s6462_s3 + $0xc0] ss:$16 sps:$4 sm:$0xff]   ;;  %v4825_v54 = vld [vmem:[%s6462_s3 + $0xc8] ss:$16 sps:$4 sm:$0xff]   ;;  %6491 = vst [vmem:[#allocation3_spill] sm:$0xff] %v4901_v60 }
   0xe   :  { %134 = vmatpush1.bf16.msra.mxu0 %v122_v16  ;;  %v4832_v55 = vld [vmem:[%s6462_s3 + $0xe4] ss:$16 sps:$4 sm:$0xff]   ;;  %v4837_v56 = vld [vmem:[%s6462_s3 + $0xec] ss:$16 sps:$4 sm:$0xff]   ;;  %v4846_v57 = vld [vmem:[%s6462_s3 + $0xe0] ss:$16 sps:$4 sm:$0xff]  }
   0xf   :  { %3672 = vmatprep.subr.msk.bf16.mxu1 %vm120_vm0, %v106_v15  ;;  %471 = vmatprep.subr.bf16.mxu0 %v4636_v13  ;;  %v4851_v58 = vld [vmem:[%s6462_s3 + $0xe8] ss:$16 sps:$4 sm:$0xff]   ;;  %6492 = vst [vmem:[#allocation4_spill] sm:$0xff] %v4904_v61  ;;  %v67_v62 = vld [vmem:[%s6464_s4] sm:$0xf]  ;;  %6493 = vst [vmem:[#allocation5_spill] sm:$0xff] %v4910_v63 }
  0x10   :  { %207 = vmatpush1.bf16.msra.mxu1 %v128_v17  ;;  %v4913_v0 = vrot.slane %v67_v62, %v4898_v59  ;;  %v4920_v3 = vrot.slane %v67_v62, %v4901_v60  ;;  %v72_v6 = vrot.slane %v67_v62, %v4904_v61  ;;  %v76_v9 = vrot.slane %v67_v62, %v4910_v63 }
  0x11   :  { %512 = vmatprep.subr.bf16.mxu1 %v4641_v18  ;;  %3668 = vmatmul.mubr.msk.bf16.vlgmr.msra.gmra.mrb[0].mxu0 %vm107_vm1, %v63_v19  ;;  %vm4529_vm3 = vmmov 0   ;;  %vm2958_vm4 = vcmask 64512   ;;  %vm3578_vm5 = vcmask 1042432   ;;  %vm3574_vm6 = vcmask 23552  }
  0x12   :  { %472 = vmatpush1.bf16.msra.mxu0 %v4646_v20  ;;  %175 = vmatprep.mubr.bf16.mxu0 %v6478_v4 }
  0x13   :  { %3673 = vmatmul.mubr.msk.bf16.vlgmr.msra.gmra.mrb[0].mxu1 %vm107_vm1, %v63_v19  ;;  %473 = vmatprep.subr.bf16.mxu0 %v4658_v22 }
  0x14   :  { %513 = vmatpush1.bf16.msra.mxu1 %v4651_v21  ;;  %248 = vmatprep.mubr.bf16.mxu1 %v6478_v4 }
  0x15   :  { %514 = vmatprep.subr.bf16.mxu1 %v4663_v23 }
  0x16   :  { %474 = vmatpush1.bf16.msra.mxu0 %v4668_v24 }
  0x17   :  { %475 = vmatprep.subr.bf16.mxu0 %v4688_v28 }
  0x18   :  { %515 = vmatpush1.bf16.msra.mxu1 %v4673_v25 }
  0x19   :  { %516 = vmatprep.subr.bf16.mxu1 %v4695_v29  ;;  %3669 = vmatmul.mubr.msk.bf16.gmra.mrb[4].mxu0 %vm107_vm1, %v64_v30 }
  0x1a   :  { %476 = vmatpush1.bf16.msra.mxu0 %v4702_v31  ;;  %185 = vmatprep.mubr.bf16.mxu0 %v6478_v4 }
  0x1b   :  { %3674 = vmatmul.mubr.msk.bf16.gmra.mrb[4].mxu1 %vm107_vm1, %v64_v30  ;;  %477 = vmatprep.subr.bf16.mxu0 %v4714_v33 }
  0x1c   :  { %517 = vmatpush1.bf16.msra.mxu1 %v4707_v32  ;;  %258 = vmatprep.mubr.bf16.mxu1 %v6478_v4 }
  0x1d   :  { %518 = vmatprep.subr.bf16.mxu1 %v4721_v34 }
  0x1e   :  { %478 = vmatpush1.bf16.msra.mxu0 %v4726_v35 }
  0x1f   :  { %479 = vmatprep.subr.bf16.mxu0 %v4748_v39 }
  0x20   :  { %519 = vmatpush1.bf16.msra.mxu1 %v4733_v36 }
  0x21   :  { %520 = vmatprep.subr.bf16.mxu1 %v4753_v40  ;;  %3670 = vmatmul.mubr.msk.bf16.gmra.mrb[8].mxu0 %vm107_vm1, %v65_v43 }
  0x22   :  { %480 = vmatpush1.bf16.msra.mxu0 %v4760_v41  ;;  %195 = vmatprep.mubr.bf16.mxu0 %v6478_v4 }
  0x23   :  { %3675 = vmatmul.mubr.msk.bf16.gmra.mrb[8].mxu1 %vm107_vm1, %v65_v43  ;;  %481 = vmatprep.subr.bf16.mxu0 %v4770_v44 }
  0x24   :  { %521 = vmatpush1.bf16.msra.mxu1 %v4765_v42  ;;  %268 = vmatprep.mubr.bf16.mxu1 %v6478_v4 }
  0x25   :  { %522 = vmatprep.subr.bf16.mxu1 %v4775_v45 }
  0x26   :  { %482 = vmatpush1.bf16.msra.mxu0 %v4784_v46 }
  0x27   :  { %483 = vmatprep.subr.bf16.mxu0 %v4802_v50 }
  0x28   :  { %523 = vmatpush1.bf16.msra.mxu1 %v4789_v47 }
  0x29   :  { %524 = vmatprep.subr.bf16.mxu1 %v4807_v51  ;;  %3671 = vmatmul.mubr.msk.bf16.gmra.mrb[12].mxu0 %vm107_vm1, %v66_v52 }
  0x2a   :  { %484 = vmatpush1.bf16.msra.mxu0 %v4820_v53  ;;  %503 = vmatprep.mubr.bf16.mxu0 %v6478_v4 }
  0x2b   :  { %3676 = vmatmul.mubr.msk.bf16.gmra.mrb[12].mxu1 %vm107_vm1, %v66_v52  ;;  %485 = vmatprep.subr.bf16.mxu0 %v4832_v55 }
  0x2c   :  { %525 = vmatpush1.bf16.msra.mxu1 %v4825_v54  ;;  %544 = vmatprep.mubr.bf16.mxu1 %v6478_v4 }
  0x2d   :  { %526 = vmatprep.subr.bf16.mxu1 %v4837_v56 }
  0x2e   :  { %486 = vmatpush1.bf16.msra.mxu0 %v4846_v57 }
  0x2f   :  { %573 = vmatprep.subr.bf16.mxu0 %v4636_v13 }
  0x30   :  { %527 = vmatpush1.bf16.msra.mxu1 %v4851_v58 }
  0x31   :  { %614 = vmatprep.subr.bf16.mxu1 %v4641_v18  ;;  %504 = vmatmul.mubr.bf16.vlgmr.msra.gmra.mrb[16].mxu0 %v6478_v4 }
  0x32   :  { %574 = vmatpush1.bf16.msra.mxu0 %v4646_v20  ;;  %605 = vmatprep.mubr.bf16.mxu0 %v6478_v4 }
  0x33   :  { %545 = vmatmul.mubr.bf16.vlgmr.msra.gmra.mrb[16].mxu1 %v6478_v4  ;;  %575 = vmatprep.subr.bf16.mxu0 %v4658_v22 }
  0x34   :  { %615 = vmatpush1.bf16.msra.mxu1 %v4651_v21  ;;  %646 = vmatprep.mubr.bf16.mxu1 %v6478_v4 }
  0x35   :  { %616 = vmatprep.subr.bf16.mxu1 %v4663_v23 }
  0x36   :  { %576 = vmatpush1.bf16.msra.mxu0 %v4668_v24 }
  0x37   :  { %577 = vmatprep.subr.bf16.mxu0 %v4688_v28 }
  0x38   :  { %617 = vmatpush1.bf16.msra.mxu1 %v4673_v25 }
  0x39   :  { %618 = vmatprep.subr.bf16.mxu1 %v4695_v29 }
  0x3a   :  { %578 = vmatpush1.bf16.msra.mxu0 %v4702_v31 }
  0x3b   :  { %579 = vmatprep.subr.bf16.mxu0 %v4714_v33 }
  0x3c   :  { %619 = vmatpush1.bf16.msra.mxu1 %v4707_v32 }
  0x3d   :  { %620 = vmatprep.subr.bf16.mxu1 %v4721_v34 }
  0x3e   :  { %580 = vmatpush1.bf16.msra.mxu0 %v4726_v35 }
  0x3f   :  { %581 = vmatprep.subr.bf16.mxu0 %v4748_v39 }
  0x40   :  { %621 = vmatpush1.bf16.msra.mxu1 %v4733_v36 }
  0x41   :  { %622 = vmatprep.subr.bf16.mxu1 %v4753_v40 }
  0x42   :  { %582 = vmatpush1.bf16.msra.mxu0 %v4760_v41 }
  0x43   :  { %583 = vmatprep.subr.bf16.mxu0 %v4770_v44 }
  0x44   :  { %623 = vmatpush1.bf16.msra.mxu1 %v4765_v42 }
  0x45   :  { %624 = vmatprep.subr.bf16.mxu1 %v4775_v45 }
  0x46   :  { %584 = vmatpush1.bf16.msra.mxu0 %v4784_v46 }
  0x47   :  { %585 = vmatprep.subr.bf16.mxu0 %v4802_v50 }
  0x48   :  { %625 = vmatpush1.bf16.msra.mxu1 %v4789_v47 }
  0x49   :  { %626 = vmatprep.subr.bf16.mxu1 %v4807_v51 }
  0x4a   :  { %586 = vmatpush1.bf16.msra.mxu0 %v4820_v53 }
  0x4b   :  { %587 = vmatprep.subr.bf16.mxu0 %v4832_v55 }
  0x4c   :  { %627 = vmatpush1.bf16.msra.mxu1 %v4825_v54 }
  0x4d   :  { %628 = vmatprep.subr.bf16.mxu1 %v4837_v56 }
  0x4e   :  { %588 = vmatpush1.bf16.msra.mxu0 %v4846_v57 }
  0x4f   :  { %675 = vmatprep.subr.bf16.mxu0 %v4636_v13 }
  0x50   :  { %629 = vmatpush1.bf16.msra.mxu1 %v4851_v58 }
  0x51   :  { %716 = vmatprep.subr.bf16.mxu1 %v4641_v18 }
  0xe4   :  { %v4915_v1 = vpop.f32.mrb[0].mxu0 }
  0xe5   :  { %v169_v7 = vpop.f32.mrb[1].mxu0 }
  0xe6   :  { %v4917_v2 = vpop.f32.mrb[0].mxu1  ;;  %v171_v10 = vpop.f32.mrb[2].mxu0 }
  0xe7   :  { %v242_v8 = vpop.f32.mrb[1].mxu1  ;;  %v4924_v5 = vadd.f32 %v171_v10, %v72_v6  ;;  %v173_v12 = vpop.f32.mrb[3].mxu0 }
  0xe8   :  { %v244_v11 = vpop.f32.mrb[2].mxu1  ;;  %v4929_v16 = vadd.f32 %v173_v12, %v76_v9 }
  0xe9   :  { %v4927_v14 = vadd.f32 %v244_v11, %v4913_v0  ;;  %v246_v15 = vpop.f32.mrb[3].mxu1 }
  0xea   :  { %v4932_v17 = vadd.f32 %v246_v15, %v4920_v3 }
  0xec   :  { %v177_v19 = vpop.f32.mrb[4].mxu0 }
  0xed   :  { %v4934_v27 = vadd.f32 %v177_v19, %v72_v6  ;;  %v179_v30 = vpop.f32.mrb[5].mxu0 }
  0xee   :  { %v250_v26 = vpop.f32.mrb[4].mxu1  ;;  %v4939_v43 = vadd.f32 %v179_v30, %v76_v9  ;;  %v181_v48 = vpop.f32.mrb[6].mxu0 }
  0xef   :  { %v4937_v37 = vadd.f32 %v250_v26, %v4913_v0  ;;  %v252_v38 = vpop.f32.mrb[5].mxu1  ;;  %v4944_v62 = vadd.f32 %v181_v48, %v72_v6  ;;  %v183_v10 = vpop.f32.mrb[7].mxu0 }
  0xf0   :  { %v4942_v49 = vadd.f32 %v252_v38, %v4920_v3  ;;  %v254_v52 = vpop.f32.mrb[6].mxu1  ;;  %v4949_v15 = vadd.f32 %v183_v10, %v76_v9 }
  0xf1   :  { %6494 = vst [vmem:[#allocation6_spill] sm:$0xff] %v4944_v62  ;;  %v4947_v11 = vadd.f32 %v254_v52, %v4913_v0  ;;  %v256_v12 = vpop.f32.mrb[7].mxu1 }
  0xf2   :  { %6496 = vst [vmem:[#allocation8_spill] sm:$0xff] %v4949_v15  ;;  %v4952_v19 = vadd.f32 %v256_v12, %v4920_v3 }
  0xf3   :  { %6495 = vst [vmem:[#allocation7_spill] sm:$0xff] %v4947_v11 }
  0xf4   :  { %6497 = vst [vmem:[#allocation9_spill] sm:$0xff] %v4952_v19  ;;  %v187_v26 = vpop.f32.mrb[8].mxu0 }
  0xf5   :  { %v4954_v4 = vadd.f32 %v187_v26, %v72_v6  ;;  %v189_v60 = vpop.f32.mrb[9].mxu0 }
  0xf6   :  { %v260_v30 = vpop.f32.mrb[8].mxu1  ;;  %v4959_v63 = vadd.f32 %v189_v60, %v76_v9  ;;  %v191_v59 = vpop.f32.mrb[10].mxu0 }
  0xf7   :  { %6498 = vst [vmem:[#allocation10_spill] sm:$0xff] %v4954_v4  ;;  %v4957_v38 = vadd.f32 %v260_v30, %v4913_v0  ;;  %v262_v48 = vpop.f32.mrb[9].mxu1  ;;  %v4964_v61 = vadd.f32 %v191_v59, %v72_v6  ;;  %v193_v12 = vpop.f32.mrb[11].mxu0 }
  0xf8   :  { %6500 = vst [vmem:[#allocation12_spill] sm:$0xff] %v4959_v63  ;;  %v4962_v52 = vadd.f32 %v262_v48, %v4920_v3  ;;  %v264_v10 = vpop.f32.mrb[10].mxu1  ;;  %v4969_v4 = vadd.f32 %v193_v12, %v76_v9 }
  0xf9   :  { %6499 = vst [vmem:[#allocation11_spill] sm:$0xff] %v4957_v38  ;;  %6502 = vst [vmem:[#allocation14_spill] sm:$0xff] %v4964_v61  ;;  %v4967_v19 = vadd.f32 %v264_v10, %v4913_v0  ;;  %v266_v26 = vpop.f32.mrb[11].mxu1 }
  0xfa   :  { %6501 = vst [vmem:[#allocation13_spill] sm:$0xff] %v4962_v52  ;;  %6504 = vst [vmem:[#allocation16_spill] sm:$0xff] %v4969_v4  ;;  %v4972_v30 = vadd.f32 %v266_v26, %v4920_v3 }
  0xfb   :  { %6503 = vst [vmem:[#allocation15_spill] sm:$0xff] %v4967_v19 }
  0xfc   :  { %6505 = vst [vmem:[#allocation17_spill] sm:$0xff] %v4972_v30  ;;  %v197_v38 = vpop.f32.mrb[12].mxu0 }
  0xfd   :  { %v4974_v63 = vadd.f32 %v197_v38, %v72_v6  ;;  %v199_v15 = vpop.f32.mrb[13].mxu0 }
  0xfe   :  { %v270_v60 = vpop.f32.mrb[12].mxu1  ;;  %v4979_v61 = vadd.f32 %v199_v15, %v76_v9  ;;  %v201_v52 = vpop.f32.mrb[14].mxu0  ;;  %v168_v15 = vadd.f32 %v4915_v1, %v72_v6 }
  0xff   :  { %6506 = vst [vmem:[#allocation18_spill] sm:$0xff] %v4974_v63  ;;  %v4977_v48 = vadd.f32 %v270_v60, %v4913_v0  ;;  %v272_v59 = vpop.f32.mrb[13].mxu1  ;;  %v4984_v4 = vadd.f32 %v201_v52, %v72_v6  ;;  %v203_v26 = vpop.f32.mrb[15].mxu0 }
 0x100   :  { %6508 = vst [vmem:[#allocation20_spill] sm:$0xff] %v4979_v61  ;;  %v4982_v10 = vadd.f32 %v272_v59, %v4920_v3  ;;  %v274_v12 = vpop.f32.mrb[14].mxu1  ;;  %v4989_v63 = vadd.f32 %v203_v26, %v76_v9  ;;  %v241_v61 = vadd.f32 %v4917_v2, %v4913_v0  ;;  %v170_v59 = vadd.f32 %v169_v7, %v76_v9 }
 0x101   :  { %6507 = vst [vmem:[#allocation19_spill] sm:$0xff] %v4977_v48  ;;  %6510 = vst [vmem:[#allocation22_spill] sm:$0xff] %v4984_v4  ;;  %v4987_v30 = vadd.f32 %v274_v12, %v4913_v0  ;;  %v276_v38 = vpop.f32.mrb[15].mxu1 }
 0x102   :  { %6509 = vst [vmem:[#allocation21_spill] sm:$0xff] %v4982_v10  ;;  %6512 = vst [vmem:[#allocation24_spill] sm:$0xff] %v4989_v63  ;;  %v4992_v60 = vadd.f32 %v276_v38, %v4920_v3  ;;  %v243_v10 = vadd.f32 %v242_v8, %v4920_v3 }
 0x103   :  { %6511 = vst [vmem:[#allocation23_spill] sm:$0xff] %v4987_v30 }
 0x104   :  { %6513 = vst [vmem:[#allocation25_spill] sm:$0xff] %v4992_v60  ;;  %v505_v52 = vpop.f32.mrb[16].mxu0 }
 0x105   :  { %v553_v48 = vadd.f32 %v505_v52, %v168_v15  ;;  %v507_v12 = vpop.f32.mrb[17].mxu0 }
 0x106   :  { %v546_v4 = vpop.f32.mrb[16].mxu1  ;;  %v554_v11 = vadd.f32 %v507_v12, %v170_v59  ;;  %v509_v63 = vpop.f32.mrb[18].mxu0 }
 0x107   :  { %v555_v19 = vadd.f32 %v546_v4, %v241_v61  ;;  %v548_v30 = vpop.f32.mrb[17].mxu1  ;;  %4274 = vtanh.f32 %v553_v48  ;;  %v510_v38 = vpop.f32.mrb[19].mxu0 }
 0x108   :  { %v556_v26 = vadd.f32 %v548_v30, %v243_v10  ;;  %v550_v62 = vpop.f32.mrb[18].mxu1  ;;  %4276 = vtanh.f32 %v554_v11  ;;  %v6514_v10 = vmov 0  }
 0x109   :  { %v551_v60 = vpop.f32.mrb[19].mxu1  ;;  %4278 = vtanh.f32 %v555_v19 }
 0x10a   :  { %4280 = vtanh.f32 %v556_v26 }
 0x111   :  { %v4275_v1 = vpop.eup %4274 }
 0x112   :  { %v558_v0 = vmul.f32 0.5, %v4275_v1  ;;  %v4277_v2 = vpop.eup %4276 }
 0x113   :  { %v561_v3 = vmul.f32 0.5, %v4277_v2  ;;  %v4279_v7 = vpop.eup %4278 }
 0x114   :  { %v559_v6 = vadd.f32 0.5, %v558_v0  ;;  %v4281_v63 = vpop.eup %4280 }
 0x115   :  { %v562_v8 = vadd.f32 0.5, %v561_v3  ;;  %v565_v62 = vmul.f32 0.5, %v4281_v63 }
 0x116   :  { %v568_v4 = vmul.f32 %v4279_v7, %v559_v6 }
 0x117   :  { %v567_v61 = vmul.f32 0.0, %v562_v8  ;;  %v566_v30 = vadd.f32 0.5, %v565_v62 }
 0x119   :  { %v4998_v9 = vadd.f32 %v568_v4, %v567_v61 }
 0x11b   :  { %4282 = vtanh.f32 %v4998_v9 }
 0x125   :  { %v4283_v48 = vpop.eup %4282 }
 0x126   :  { %v5001_v11 = vmul.f32 %v4283_v48, %v566_v30 }
 0x128   :  { %v572_v19 = vpack.c.bf16 %v5001_v11, %v5001_v11 }
 0x12a   :  { %606 = vmatmul.mubr.bf16.vlgmr.msra.gmra.mrb[20].mxu0 %v572_v19  ;;  %647 = vmatmul.mubr.bf16.vlgmr.msra.gmra.mrb[20].mxu1 %v572_v19 }
 0x12b   :  { %676 = vmatpush1.bf16.msra.mxu0 %v4646_v20  ;;  %717 = vmatpush1.bf16.msra.mxu1 %v4651_v21 }
 0x12c   :  { %677 = vmatprep.subr.bf16.mxu0 %v4658_v22  ;;  %718 = vmatprep.subr.bf16.mxu1 %v4663_v23 }
 0x12d   :  { %707 = vmatprep.mubr.bf16.mxu0 %v6514_v10  ;;  %748 = vmatprep.mubr.bf16.mxu1 %v6514_v10 }
 0x12f   :  { %678 = vmatpush1.bf16.msra.mxu0 %v4668_v24  ;;  %719 = vmatpush1.bf16.msra.mxu1 %v4673_v25 }
 0x130   :  { %679 = vmatprep.subr.bf16.mxu0 %v4688_v28  ;;  %720 = vmatprep.subr.bf16.mxu1 %v4695_v29 }
 0x133   :  { %680 = vmatpush1.bf16.msra.mxu0 %v4702_v31  ;;  %721 = vmatpush1.bf16.msra.mxu1 %v4707_v32 }
 0x134   :  { %681 = vmatprep.subr.bf16.mxu0 %v4714_v33  ;;  %722 = vmatprep.subr.bf16.mxu1 %v4721_v34 }
 0x137   :  { %682 = vmatpush1.bf16.msra.mxu0 %v4726_v35  ;;  %723 = vmatpush1.bf16.msra.mxu1 %v4733_v36 }
 0x138   :  { %683 = vmatprep.subr.bf16.mxu0 %v4748_v39  ;;  %724 = vmatprep.subr.bf16.mxu1 %v4753_v40 }
 0x13b   :  { %684 = vmatpush1.bf16.msra.mxu0 %v4760_v41  ;;  %725 = vmatpush1.bf16.msra.mxu1 %v4765_v42 }
 0x13c   :  { %685 = vmatprep.subr.bf16.mxu0 %v4770_v44  ;;  %726 = vmatprep.subr.bf16.mxu1 %v4775_v45 }
 0x13f   :  { %686 = vmatpush1.bf16.msra.mxu0 %v4784_v46  ;;  %727 = vmatpush1.bf16.msra.mxu1 %v4789_v47 }
 0x140   :  { %687 = vmatprep.subr.bf16.mxu0 %v4802_v50  ;;  %728 = vmatprep.subr.bf16.mxu1 %v4807_v51 }
 0x143   :  { %688 = vmatpush1.bf16.msra.mxu0 %v4820_v53  ;;  %729 = vmatpush1.bf16.msra.mxu1 %v4825_v54 }
 0x144   :  { %689 = vmatprep.subr.bf16.mxu0 %v4832_v55  ;;  %730 = vmatprep.subr.bf16.mxu1 %v4837_v56 }
 0x147   :  { %690 = vmatpush1.bf16.msra.mxu0 %v4846_v57  ;;  %731 = vmatpush1.bf16.msra.mxu1 %v4851_v58 }
 0x148   :  { %777 = vmatprep.subr.bf16.mxu0 %v4636_v13  ;;  %818 = vmatprep.subr.bf16.mxu1 %v4641_v18 }
 0x1fd   :  { %v607_v60 = vpop.f32.mrb[20].mxu0  ;;  %v648_v15 = vpop.f32.mrb[20].mxu1 }
 0x1fe   :  { %v655_v59 = vadd.f32 %v607_v60, %v4924_v5  ;;  %v657_v52 = vadd.f32 %v648_v15, %v4927_v14  ;;  %v609_v12 = vpop.f32.mrb[21].mxu0  ;;  %v650_v26 = vpop.f32.mrb[21].mxu1 }
 0x1ff   :  { %v656_v38 = vadd.f32 %v609_v12, %v4929_v16  ;;  %v658_v1 = vadd.f32 %v650_v26, %v4932_v17  ;;  %v611_v0 = vpop.f32.mrb[22].mxu0  ;;  %v652_v2 = vpop.f32.mrb[22].mxu1 }
 0x200   :  { %4284 = vtanh.f32 %v655_v59  ;;  %v612_v6 = vpop.f32.mrb[23].mxu0  ;;  %v653_v3 = vpop.f32.mrb[23].mxu1 }
 0x201   :  { %4286 = vtanh.f32 %v656_v38 }
 0x202   :  { %4288 = vtanh.f32 %v657_v52 }
 0x203   :  { %4290 = vtanh.f32 %v658_v1 }
 0x20a   :  { %v4285_v7 = vpop.eup %4284 }
 0x20b   :  { %v660_v8 = vmul.f32 0.5, %v4285_v7  ;;  %v4287_v4 = vpop.eup %4286 }
 0x20c   :  { %v663_v5 = vmul.f32 0.5, %v4287_v4  ;;  %v4289_v14 = vpop.eup %4288 }
 0x20d   :  { %v661_v61 = vadd.f32 0.5, %v660_v8  ;;  %v4291_v17 = vpop.eup %4290 }
 0x20e   :  { %v664_v63 = vadd.f32 0.5, %v663_v5  ;;  %v667_v48 = vmul.f32 0.5, %v4291_v17 }
 0x20f   :  { %v670_v62 = vmul.f32 %v4289_v14, %v661_v61 }
 0x210   :  { %v669_v16 = vmul.f32 %v664_v63, %v4998_v9  ;;  %v668_v19 = vadd.f32 0.5, %v667_v48 }
 0x212   :  { %v5044_v30 = vadd.f32 %v670_v62, %v669_v16 }
 0x214   :  { %4292 = vtanh.f32 %v5044_v30 }
 0x21e   :  { %v4293_v60 = vpop.eup %4292 }
 0x21f   :  { %v5047_v15 = vmul.f32 %v4293_v60, %v668_v19 }
 0x221   :  { %v674_v59 = vpack.c.bf16 %v5047_v15, %v5047_v15 }
 0x223   :  { %708 = vmatmul.mubr.bf16.vlgmr.msra.gmra.mrb[24].mxu0 %v674_v59  ;;  %749 = vmatmul.mubr.bf16.vlgmr.msra.gmra.mrb[24].mxu1 %v674_v59 }
 0x224   :  { %778 = vmatpush1.bf16.msra.mxu0 %v4646_v20  ;;  %819 = vmatpush1.bf16.msra.mxu1 %v4651_v21 }
 0x225   :  { %779 = vmatprep.subr.bf16.mxu0 %v4658_v22  ;;  %820 = vmatprep.subr.bf16.mxu1 %v4663_v23 }
 0x226   :  { %809 = vmatprep.mubr.bf16.mxu0 %v6514_v10  ;;  %850 = vmatprep.mubr.bf16.mxu1 %v6514_v10 }
 0x228   :  { %780 = vmatpush1.bf16.msra.mxu0 %v4668_v24  ;;  %821 = vmatpush1.bf16.msra.mxu1 %v4673_v25 }
 0x229   :  { %781 = vmatprep.subr.bf16.mxu0 %v4688_v28  ;;  %822 = vmatprep.subr.bf16.mxu1 %v4695_v29 }
 0x22c   :  { %782 = vmatpush1.bf16.msra.mxu0 %v4702_v31  ;;  %823 = vmatpush1.bf16.msra.mxu1 %v4707_v32 }
 0x22d   :  { %783 = vmatprep.subr.bf16.mxu0 %v4714_v33  ;;  %824 = vmatprep.subr.bf16.mxu1 %v4721_v34 }
 0x230   :  { %784 = vmatpush1.bf16.msra.mxu0 %v4726_v35  ;;  %825 = vmatpush1.bf16.msra.mxu1 %v4733_v36 }
 0x231   :  { %785 = vmatprep.subr.bf16.mxu0 %v4748_v39  ;;  %826 = vmatprep.subr.bf16.mxu1 %v4753_v40 }
 0x234   :  { %786 = vmatpush1.bf16.msra.mxu0 %v4760_v41  ;;  %827 = vmatpush1.bf16.msra.mxu1 %v4765_v42 }
 0x235   :  { %787 = vmatprep.subr.bf16.mxu0 %v4770_v44  ;;  %828 = vmatprep.subr.bf16.mxu1 %v4775_v45 }
 0x238   :  { %788 = vmatpush1.bf16.msra.mxu0 %v4784_v46  ;;  %829 = vmatpush1.bf16.msra.mxu1 %v4789_v47 }
 0x239   :  { %789 = vmatprep.subr.bf16.mxu0 %v4802_v50  ;;  %830 = vmatprep.subr.bf16.mxu1 %v4807_v51 }
 0x23c   :  { %790 = vmatpush1.bf16.msra.mxu0 %v4820_v53  ;;  %831 = vmatpush1.bf16.msra.mxu1 %v4825_v54 }
 0x23d   :  { %791 = vmatprep.subr.bf16.mxu0 %v4832_v55  ;;  %832 = vmatprep.subr.bf16.mxu1 %v4837_v56 }
 0x240   :  { %792 = vmatpush1.bf16.msra.mxu0 %v4846_v57  ;;  %833 = vmatpush1.bf16.msra.mxu1 %v4851_v58 }
 0x241   :  { %879 = vmatprep.subr.bf16.mxu0 %v4636_v13  ;;  %920 = vmatprep.subr.bf16.mxu1 %v4641_v18 }
 0x2f6   :  { %v709_v9 = vpop.f32.mrb[24].mxu0  ;;  %v750_v52 = vpop.f32.mrb[24].mxu1 }
 0x2f7   :  { %v757_v12 = vadd.f32 %v709_v9, %v4934_v27  ;;  %v759_v26 = vadd.f32 %v750_v52, %v4937_v37  ;;  %v711_v38 = vpop.f32.mrb[25].mxu0  ;;  %v752_v1 = vpop.f32.mrb[25].mxu1  ;;  %v6515_v52 = vld [vmem:[#allocation6_spill] sm:$0xff] }
 0x2f8   :  { %v758_v0 = vadd.f32 %v711_v38, %v4939_v43  ;;  %v760_v2 = vadd.f32 %v752_v1, %v4942_v49  ;;  %v713_v6 = vpop.f32.mrb[26].mxu0  ;;  %v754_v3 = vpop.f32.mrb[26].mxu1 }
 0x2f9   :  { %4294 = vtanh.f32 %v757_v12  ;;  %v714_v7 = vpop.f32.mrb[27].mxu0  ;;  %v755_v8 = vpop.f32.mrb[27].mxu1  ;;  %v6518_v3 = vld [vmem:[#allocation9_spill] sm:$0xff] }
 0x2fa   :  { %4296 = vtanh.f32 %v758_v0 }
 0x2fb   :  { %4298 = vtanh.f32 %v759_v26  ;;  %v6516_v26 = vld [vmem:[#allocation7_spill] sm:$0xff] }
 0x2fc   :  { %4300 = vtanh.f32 %v760_v2  ;;  %v6517_v2 = vld [vmem:[#allocation8_spill] sm:$0xff] }
 0x303   :  { %v4295_v4 = vpop.eup %4294 }
 0x304   :  { %v762_v61 = vmul.f32 0.5, %v4295_v4  ;;  %v4297_v5 = vpop.eup %4296 }
 0x305   :  { %v765_v27 = vmul.f32 0.5, %v4297_v5  ;;  %v4299_v37 = vpop.eup %4298 }
 0x306   :  { %v763_v14 = vadd.f32 0.5, %v762_v61  ;;  %v4301_v49 = vpop.eup %4300 }
 0x307   :  { %v766_v63 = vadd.f32 0.5, %v765_v27  ;;  %v769_v17 = vmul.f32 0.5, %v4301_v49 }
 0x308   :  { %v772_v62 = vmul.f32 %v4299_v37, %v763_v14 }
 0x309   :  { %v771_v43 = vmul.f32 %v766_v63, %v5044_v30  ;;  %v770_v48 = vadd.f32 0.5, %v769_v17 }
 0x30b   :  { %v5090_v16 = vadd.f32 %v772_v62, %v771_v43 }
 0x30d   :  { %4302 = vtanh.f32 %v5090_v16 }
 0x317   :  { %v4303_v19 = vpop.eup %4302 }
 0x318   :  { %v5093_v60 = vmul.f32 %v4303_v19, %v770_v48 }
 0x31a   :  { %v776_v59 = vpack.c.bf16 %v5093_v60, %v5093_v60 }
 0x31c   :  { %810 = vmatmul.mubr.bf16.vlgmr.msra.gmra.mrb[28].mxu0 %v776_v59  ;;  %851 = vmatmul.mubr.bf16.vlgmr.msra.gmra.mrb[28].mxu1 %v776_v59 }
 0x31d   :  { %880 = vmatpush1.bf16.msra.mxu0 %v4646_v20  ;;  %921 = vmatpush1.bf16.msra.mxu1 %v4651_v21 }
 0x31e   :  { %881 = vmatprep.subr.bf16.mxu0 %v4658_v22  ;;  %922 = vmatprep.subr.bf16.mxu1 %v4663_v23 }
 0x31f   :  { %911 = vmatprep.mubr.bf16.mxu0 %v6514_v10  ;;  %952 = vmatprep.mubr.bf16.mxu1 %v6514_v10 }
 0x321   :  { %882 = vmatpush1.bf16.msra.mxu0 %v4668_v24  ;;  %923 = vmatpush1.bf16.msra.mxu1 %v4673_v25 }
 0x322   :  { %883 = vmatprep.subr.bf16.mxu0 %v4688_v28  ;;  %924 = vmatprep.subr.bf16.mxu1 %v4695_v29 }
 0x325   :  { %884 = vmatpush1.bf16.msra.mxu0 %v4702_v31  ;;  %925 = vmatpush1.bf16.msra.mxu1 %v4707_v32 }
 0x326   :  { %885 = vmatprep.subr.bf16.mxu0 %v4714_v33  ;;  %926 = vmatprep.subr.bf16.mxu1 %v4721_v34 }
 0x329   :  { %886 = vmatpush1.bf16.msra.mxu0 %v4726_v35  ;;  %927 = vmatpush1.bf16.msra.mxu1 %v4733_v36 }
 0x32a   :  { %887 = vmatprep.subr.bf16.mxu0 %v4748_v39  ;;  %928 = vmatprep.subr.bf16.mxu1 %v4753_v40 }
 0x32d   :  { %888 = vmatpush1.bf16.msra.mxu0 %v4760_v41  ;;  %929 = vmatpush1.bf16.msra.mxu1 %v4765_v42 }
 0x32e   :  { %889 = vmatprep.subr.bf16.mxu0 %v4770_v44  ;;  %930 = vmatprep.subr.bf16.mxu1 %v4775_v45 }
 0x331   :  { %890 = vmatpush1.bf16.msra.mxu0 %v4784_v46  ;;  %931 = vmatpush1.bf16.msra.mxu1 %v4789_v47 }
 0x332   :  { %891 = vmatprep.subr.bf16.mxu0 %v4802_v50  ;;  %932 = vmatprep.subr.bf16.mxu1 %v4807_v51 }
 0x335   :  { %892 = vmatpush1.bf16.msra.mxu0 %v4820_v53  ;;  %933 = vmatpush1.bf16.msra.mxu1 %v4825_v54 }
 0x336   :  { %893 = vmatprep.subr.bf16.mxu0 %v4832_v55  ;;  %934 = vmatprep.subr.bf16.mxu1 %v4837_v56 }
 0x339   :  { %894 = vmatpush1.bf16.msra.mxu0 %v4846_v57  ;;  %935 = vmatpush1.bf16.msra.mxu1 %v4851_v58 }
 0x33a   :  { %981 = vmatprep.subr.bf16.mxu0 %v4636_v13  ;;  %1022 = vmatprep.subr.bf16.mxu1 %v4641_v18 }
 0x3ef   :  { %v811_v30 = vpop.f32.mrb[28].mxu0  ;;  %v852_v9 = vpop.f32.mrb[28].mxu1 }
 0x3f0   :  { %v859_v12 = vadd.f32 %v811_v30, %v6515_v52  ;;  %v861_v38 = vadd.f32 %v852_v9, %v6516_v26  ;;  %v813_v1 = vpop.f32.mrb[29].mxu0  ;;  %v854_v0 = vpop.f32.mrb[29].mxu1 }
 0x3f1   :  { %v860_v6 = vadd.f32 %v813_v1, %v6517_v2  ;;  %v862_v7 = vadd.f32 %v854_v0, %v6518_v3  ;;  %v815_v8 = vpop.f32.mrb[30].mxu0  ;;  %v856_v4 = vpop.f32.mrb[30].mxu1 }
 0x3f2   :  { %4304 = vtanh.f32 %v859_v12  ;;  %v816_v61 = vpop.f32.mrb[31].mxu0  ;;  %v857_v5 = vpop.f32.mrb[31].mxu1 }
 0x3f3   :  { %4306 = vtanh.f32 %v860_v6 }
 0x3f4   :  { %4308 = vtanh.f32 %v861_v38 }
 0x3f5   :  { %4310 = vtanh.f32 %v862_v7 }
 0x3fc   :  { %v4305_v13 = vpop.eup %4304 }
 0x3fd   :  { %v864_v18 = vmul.f32 0.5, %v4305_v13  ;;  %v4307_v14 = vpop.eup %4306  ;;  %v5202_v13 = vld [vmem:[%s6462_s3] ss:$16 sps:$4 sm:$0xff]  }
 0x3fe   :  { %v867_v37 = vmul.f32 0.5, %v4307_v14  ;;  %v4309_v63 = vpop.eup %4308  ;;  %v5214_v14 = vld [vmem:[%s6462_s3 + $0x24] ss:$16 sps:$4 sm:$0xff]  }
 0x3ff   :  { %v865_v27 = vadd.f32 0.5, %v864_v18  ;;  %v4311_v48 = vpop.eup %4310  ;;  %v5208_v18 = vld [vmem:[%s6462_s3 + $0x8] ss:$16 sps:$4 sm:$0xff]  }
 0x400   :  { %v868_v62 = vadd.f32 0.5, %v867_v37  ;;  %v871_v19 = vmul.f32 0.5, %v4311_v48  ;;  %v5228_v37 = vld [vmem:[%s6462_s3 + $0x20] ss:$16 sps:$4 sm:$0xff]   ;;  %v5264_v48 = vld [vmem:[%s6462_s3 + $0x64] ss:$16 sps:$4 sm:$0xff]  }
 0x401   :  { %v874_v43 = vmul.f32 %v4309_v63, %v865_v27  ;;  %v5220_v27 = vld [vmem:[%s6462_s3 + $0x2c] ss:$16 sps:$4 sm:$0xff]   ;;  %v5234_v63 = vld [vmem:[%s6462_s3 + $0x28] ss:$16 sps:$4 sm:$0xff]  }
 0x402   :  { %v873_v49 = vmul.f32 %v868_v62, %v5090_v16  ;;  %v872_v59 = vadd.f32 0.5, %v871_v19  ;;  %v5240_v62 = vld [vmem:[%s6462_s3 + $0x44] ss:$16 sps:$4 sm:$0xff]   ;;  %v5270_v19 = vld [vmem:[%s6462_s3 + $0x6c] ss:$16 sps:$4 sm:$0xff]  }
 0x404   :  { %v5136_v17 = vadd.f32 %v874_v43, %v873_v49  ;;  %v5246_v43 = vld [vmem:[%s6462_s3 + $0x4c] ss:$16 sps:$4 sm:$0xff]   ;;  %v5252_v49 = vld [vmem:[%s6462_s3 + $0x40] ss:$16 sps:$4 sm:$0xff]  }
 0x406   :  { %4312 = vtanh.f32 %v5136_v17 }
 0x410   :  { %v4313_v30 = vpop.eup %4312 }
 0x411   :  { %v5139_v9 = vmul.f32 %v4313_v30, %v872_v59  ;;  %v5276_v59 = vld [vmem:[%s6462_s3 + $0x60] ss:$16 sps:$4 sm:$0xff]   ;;  %v5282_v30 = vld [vmem:[%s6462_s3 + $0x68] ss:$16 sps:$4 sm:$0xff]  }
 0x413   :  { %v878_v52 = vpack.c.bf16 %v5139_v9, %v5139_v9 }
 0x415   :  { %912 = vmatmul.mubr.bf16.vlgmr.msra.gmra.mrb[32].mxu0 %v878_v52  ;;  %953 = vmatmul.mubr.bf16.vlgmr.msra.gmra.mrb[32].mxu1 %v878_v52  ;;  %v5288_v52 = vld [vmem:[%s6462_s3 + $0x84] ss:$16 sps:$4 sm:$0xff]  }
 0x416   :  { %982 = vmatpush1.bf16.msra.mxu0 %v4646_v20  ;;  %1023 = vmatpush1.bf16.msra.mxu1 %v4651_v21  ;;  %v5178_v20 = vld [vmem:[%s6462_s3 + $0x4] ss:$16 sps:$4 sm:$0xff]   ;;  %v5184_v21 = vld [vmem:[%s6462_s3 + $0xc] ss:$16 sps:$4 sm:$0xff]  }
 0x417   :  { %983 = vmatprep.subr.bf16.mxu0 %v4658_v22  ;;  %1024 = vmatprep.subr.bf16.mxu1 %v4663_v23 }
 0x418   :  { %1013 = vmatprep.mubr.bf16.mxu0 %v6514_v10  ;;  %1054 = vmatprep.mubr.bf16.mxu1 %v6514_v10 }
 0x41a   :  { %984 = vmatpush1.bf16.msra.mxu0 %v4668_v24  ;;  %1025 = vmatpush1.bf16.msra.mxu1 %v4673_v25  ;;  %v6519_v24 = vld [vmem:[#allocation10_spill] sm:$0xff] }
 0x41b   :  { %985 = vmatprep.subr.bf16.mxu0 %v4688_v28  ;;  %1026 = vmatprep.subr.bf16.mxu1 %v4695_v29  ;;  %v6520_v28 = vld [vmem:[#allocation11_spill] sm:$0xff] }
 0x41e   :  { %986 = vmatpush1.bf16.msra.mxu0 %v4702_v31  ;;  %1027 = vmatpush1.bf16.msra.mxu1 %v4707_v32 }
 0x41f   :  { %987 = vmatprep.subr.bf16.mxu0 %v4714_v33  ;;  %1028 = vmatprep.subr.bf16.mxu1 %v4721_v34  ;;  %v6521_v33 = vld [vmem:[#allocation12_spill] sm:$0xff] }
 0x422   :  { %988 = vmatpush1.bf16.msra.mxu0 %v4726_v35  ;;  %1029 = vmatpush1.bf16.msra.mxu1 %v4733_v36  ;;  %v6522_v35 = vld [vmem:[#allocation13_spill] sm:$0xff] }
 0x423   :  { %989 = vmatprep.subr.bf16.mxu0 %v4748_v39  ;;  %1030 = vmatprep.subr.bf16.mxu1 %v4753_v40 }
 0x426   :  { %990 = vmatpush1.bf16.msra.mxu0 %v4760_v41  ;;  %1031 = vmatpush1.bf16.msra.mxu1 %v4765_v42 }
 0x427   :  { %991 = vmatprep.subr.bf16.mxu0 %v4770_v44  ;;  %1032 = vmatprep.subr.bf16.mxu1 %v4775_v45 }
 0x42a   :  { %992 = vmatpush1.bf16.msra.mxu0 %v4784_v46  ;;  %1033 = vmatpush1.bf16.msra.mxu1 %v4789_v47 }
 0x42b   :  { %993 = vmatprep.subr.bf16.mxu0 %v4802_v50  ;;  %1034 = vmatprep.subr.bf16.mxu1 %v4807_v51 }
 0x42e   :  { %994 = vmatpush1.bf16.msra.mxu0 %v4820_v53  ;;  %1035 = vmatpush1.bf16.msra.mxu1 %v4825_v54 }
 0x42f   :  { %995 = vmatprep.subr.bf16.mxu0 %v4832_v55  ;;  %1036 = vmatprep.subr.bf16.mxu1 %v4837_v56 }
 0x432   :  { %996 = vmatpush1.bf16.msra.mxu0 %v4846_v57  ;;  %1037 = vmatpush1.bf16.msra.mxu1 %v4851_v58 }
 0x433   :  { %1083 = vmatprep.subr.bf16.mxu0 %v5178_v20  ;;  %1124 = vmatprep.subr.bf16.mxu1 %v5184_v21 }
 0x4e8   :  { %v913_v22 = vpop.f32.mrb[32].mxu0  ;;  %v954_v23 = vpop.f32.mrb[32].mxu1 }
 0x4e9   :  { %v961_v25 = vadd.f32 %v913_v22, %v6519_v24  ;;  %v963_v29 = vadd.f32 %v954_v23, %v6520_v28  ;;  %v915_v31 = vpop.f32.mrb[33].mxu0  ;;  %v956_v32 = vpop.f32.mrb[33].mxu1  ;;  %v5294_v22 = vld [vmem:[%s6462_s3 + $0x8c] ss:$16 sps:$4 sm:$0xff]   ;;  %v5300_v23 = vld [vmem:[%s6462_s3 + $0x80] ss:$16 sps:$4 sm:$0xff]  }
 0x4ea   :  { %v962_v34 = vadd.f32 %v915_v31, %v6521_v33  ;;  %v964_v36 = vadd.f32 %v956_v32, %v6522_v35  ;;  %v917_v39 = vpop.f32.mrb[34].mxu0  ;;  %v958_v40 = vpop.f32.mrb[34].mxu1  ;;  %v5306_v24 = vld [vmem:[%s6462_s3 + $0x88] ss:$16 sps:$4 sm:$0xff]   ;;  %v5318_v28 = vld [vmem:[%s6462_s3 + $0xac] ss:$16 sps:$4 sm:$0xff]  }
 0x4eb   :  { %4314 = vtanh.f32 %v961_v25  ;;  %v918_v41 = vpop.f32.mrb[35].mxu0  ;;  %v959_v42 = vpop.f32.mrb[35].mxu1  ;;  %v5312_v25 = vld [vmem:[%s6462_s3 + $0xa4] ss:$16 sps:$4 sm:$0xff]   ;;  %v6526_v33 = vld [vmem:[#allocation17_spill] sm:$0xff] }
 0x4ec   :  { %4316 = vtanh.f32 %v962_v34  ;;  %v6525_v32 = vld [vmem:[#allocation16_spill] sm:$0xff] }
 0x4ed   :  { %4318 = vtanh.f32 %v963_v29  ;;  %v6524_v29 = vld [vmem:[#allocation15_spill] sm:$0xff] }
 0x4ee   :  { %4320 = vtanh.f32 %v964_v36 }
 0x4f5   :  { %v4315_v44 = vpop.eup %4314 }
 0x4f6   :  { %v966_v45 = vmul.f32 0.5, %v4315_v44  ;;  %v4317_v16 = vpop.eup %4316 }
 0x4f7   :  { %v969_v26 = vmul.f32 0.5, %v4317_v16  ;;  %v4319_v38 = vpop.eup %4318 }
 0x4f8   :  { %v967_v12 = vadd.f32 0.5, %v966_v45  ;;  %v4321_v3 = vpop.eup %4320 }
 0x4f9   :  { %v970_v1 = vadd.f32 0.5, %v969_v26  ;;  %v973_v7 = vmul.f32 0.5, %v4321_v3  ;;  %v4485_v3 = vld [vmem:[%s6462_s3 + $0xa8] ss:$16 sps:$4 sm:$0xff]  }
 0x4fa   :  { %v976_v0 = vmul.f32 %v4319_v38, %v967_v12 }
 0x4fb   :  { %v975_v2 = vmul.f32 %v970_v1, %v5136_v17  ;;  %v974_v8 = vadd.f32 0.5, %v973_v7  ;;  %v5258_v17 = vld [vmem:[%s6462_s3 + $0x48] ss:$16 sps:$4 sm:$0xff]   ;;  %v4486_v7 = vld [vmem:[%s6462_s3 + $0xc4] ss:$16 sps:$4 sm:$0xff]  }
 0x4fd   :  { %v5192_v6 = vadd.f32 %v976_v0, %v975_v2 }
 0x4ff   :  { %4322 = vtanh.f32 %v5192_v6 }
 0x509   :  { %v4323_v4 = vpop.eup %4322 }
 0x50a   :  { %v5195_v61 = vmul.f32 %v4323_v4, %v974_v8  ;;  %v4487_v8 = vld [vmem:[%s6462_s3 + $0xcc] ss:$16 sps:$4 sm:$0xff]   ;;  %v4488_v4 = vld [vmem:[%s6462_s3 + $0xc0] ss:$16 sps:$4 sm:$0xff]  }
 0x50c   :  { %v980_v5 = vpack.c.bf16 %v5195_v61, %v5195_v61 }
 0x50e   :  { %1014 = vmatmul.mubr.bf16.vlgmr.msra.gmra.mrb[36].mxu0 %v980_v5  ;;  %1055 = vmatmul.mubr.bf16.vlgmr.msra.gmra.mrb[36].mxu1 %v980_v5  ;;  %v4489_v5 = vld [vmem:[%s6462_s3 + $0xc8] ss:$16 sps:$4 sm:$0xff]  }
 0x50f   :  { %1084 = vmatpush1.bf16.msra.mxu0 %v5202_v13  ;;  %1125 = vmatpush1.bf16.msra.mxu1 %v5208_v18 }
 0x510   :  { %1085 = vmatprep.subr.bf16.mxu0 %v5214_v14  ;;  %1126 = vmatprep.subr.bf16.mxu1 %v5220_v27 }
 0x511   :  { %1115 = vmatprep.mubr.bf16.mxu0 %v6514_v10  ;;  %1156 = vmatprep.mubr.bf16.mxu1 %v6514_v10 }
 0x513   :  { %1086 = vmatpush1.bf16.msra.mxu0 %v5228_v37  ;;  %1127 = vmatpush1.bf16.msra.mxu1 %v5234_v63 }
 0x514   :  { %1087 = vmatprep.subr.bf16.mxu0 %v5240_v62  ;;  %1128 = vmatprep.subr.bf16.mxu1 %v5246_v43 }
 0x517   :  { %1088 = vmatpush1.bf16.msra.mxu0 %v5252_v49  ;;  %1129 = vmatpush1.bf16.msra.mxu1 %v5258_v17 }
 0x518   :  { %1089 = vmatprep.subr.bf16.mxu0 %v5264_v48  ;;  %1130 = vmatprep.subr.bf16.mxu1 %v5270_v19 }
 0x51b   :  { %1090 = vmatpush1.bf16.msra.mxu0 %v5276_v59  ;;  %1131 = vmatpush1.bf16.msra.mxu1 %v5282_v30 }
 0x51c   :  { %1091 = vmatprep.subr.bf16.mxu0 %v5288_v52  ;;  %1132 = vmatprep.subr.bf16.mxu1 %v5294_v22 }
 0x51f   :  { %1092 = vmatpush1.bf16.msra.mxu0 %v5300_v23  ;;  %1133 = vmatpush1.bf16.msra.mxu1 %v5306_v24 }
 0x520   :  { %1093 = vmatprep.subr.bf16.mxu0 %v5312_v25  ;;  %1134 = vmatprep.subr.bf16.mxu1 %v5318_v28 }
 0x523   :  { %1094 = vmatpush1.bf16.msra.mxu0 %v4784_v46  ;;  %1135 = vmatpush1.bf16.msra.mxu1 %v4789_v47 }
 0x524   :  { %1095 = vmatprep.subr.bf16.mxu0 %v4802_v50  ;;  %1136 = vmatprep.subr.bf16.mxu1 %v4807_v51  ;;  %v6523_v50 = vld [vmem:[#allocation14_spill] sm:$0xff] }
 0x527   :  { %1096 = vmatpush1.bf16.msra.mxu0 %v4820_v53  ;;  %1137 = vmatpush1.bf16.msra.mxu1 %v4825_v54 }
 0x528   :  { %1097 = vmatprep.subr.bf16.mxu0 %v4832_v55  ;;  %1138 = vmatprep.subr.bf16.mxu1 %v4837_v56 }
 0x52b   :  { %1098 = vmatpush1.bf16.msra.mxu0 %v4846_v57  ;;  %1139 = vmatpush1.bf16.msra.mxu1 %v4851_v58 }
 0x52c   :  { %1185 = vmatprep.subr.bf16.mxu0 %v5178_v20  ;;  %1226 = vmatprep.subr.bf16.mxu1 %v5184_v21 }
 0x5e1   :  { %v1015_v46 = vpop.f32.mrb[36].mxu0  ;;  %v1056_v47 = vpop.f32.mrb[36].mxu1 }
 0x5e2   :  { %v1063_v51 = vadd.f32 %v1015_v46, %v6523_v50  ;;  %v1065_v53 = vadd.f32 %v1056_v47, %v6524_v29  ;;  %v1017_v31 = vpop.f32.mrb[37].mxu0  ;;  %v1058_v54 = vpop.f32.mrb[37].mxu1 }
 0x5e3   :  { %v1064_v55 = vadd.f32 %v1017_v31, %v6525_v32  ;;  %v1066_v56 = vadd.f32 %v1058_v54, %v6526_v33  ;;  %v1019_v34 = vpop.f32.mrb[38].mxu0  ;;  %v1060_v57 = vpop.f32.mrb[38].mxu1 }
 0x5e4   :  { %4324 = vtanh.f32 %v1063_v51  ;;  %v1020_v58 = vpop.f32.mrb[39].mxu0  ;;  %v1061_v35 = vpop.f32.mrb[39].mxu1 }
 0x5e5   :  { %4326 = vtanh.f32 %v1064_v55 }
 0x5e6   :  { %4328 = vtanh.f32 %v1065_v53 }
 0x5e7   :  { %4330 = vtanh.f32 %v1066_v56 }
 0x5ee   :  { %v4325_v20 = vpop.eup %4324 }
 0x5ef   :  { %v1068_v21 = vmul.f32 0.5, %v4325_v20  ;;  %v4327_v36 = vpop.eup %4326 }
 0x5f0   :  { %v1071_v40 = vmul.f32 0.5, %v4327_v36  ;;  %v4329_v41 = vpop.eup %4328  ;;  %v4145_v36 = vld [vmem:[%s6465_s5 + $0x8] ss:$16 sps:$4 sm:$0xff]  }
 0x5f1   :  { %v1069_v39 = vadd.f32 0.5, %v1068_v21  ;;  %v4331_v12 = vpop.eup %4330  ;;  %v4142_v21 = vld [vmem:[%s6465_s5] ss:$16 sps:$4 sm:$0xff]  }
 0x5f2   :  { %v1072_v42 = vadd.f32 0.5, %v1071_v40  ;;  %v1075_v26 = vmul.f32 0.5, %v4331_v12  ;;  %v4150_v40 = vld [vmem:[%s6465_s5 + $0x24] ss:$16 sps:$4 sm:$0xff]   ;;  %v4154_v12 = vld [vmem:[%s6465_s5 + $0x40] ss:$16 sps:$4 sm:$0xff]  }
 0x5f3   :  { %v1078_v44 = vmul.f32 %v4329_v41, %v1069_v39  ;;  %v4153_v41 = vld [vmem:[%s6465_s5 + $0x2c] ss:$16 sps:$4 sm:$0xff]  }
 0x5f4   :  { %v1077_v45 = vmul.f32 %v1072_v42, %v5192_v6  ;;  %v1076_v38 = vadd.f32 0.5, %v1075_v26  ;;  %v4484_v6 = vld [vmem:[%s6462_s3 + $0xa0] ss:$16 sps:$4 sm:$0xff]   ;;  %v4157_v26 = vld [vmem:[%s6465_s5 + $0x48] ss:$16 sps:$4 sm:$0xff]  }
 0x5f5   :  { %v4148_v42 = vld [vmem:[%s6465_s5 + $0x20] ss:$16 sps:$4 sm:$0xff]  }
 0x5f6   :  { %v5338_v16 = vadd.f32 %v1078_v44, %v1077_v45  ;;  %v4151_v44 = vld [vmem:[%s6465_s5 + $0x28] ss:$16 sps:$4 sm:$0xff]   ;;  %v4156_v45 = vld [vmem:[%s6465_s5 + $0x44] ss:$16 sps:$4 sm:$0xff]  }
 0x5f8   :  { %4332 = vtanh.f32 %v5338_v16 }
 0x602   :  { %v4333_v1 = vpop.eup %4332 }
 0x603   :  { %v5341_v0 = vmul.f32 %v4333_v1, %v1076_v38  ;;  %v4162_v38 = vld [vmem:[%s6465_s5 + $0x64] ss:$16 sps:$4 sm:$0xff]   ;;  %v4165_v1 = vld [vmem:[%s6465_s5 + $0x6c] ss:$16 sps:$4 sm:$0xff]  }
 0x605   :  { %v1082_v2 = vpack.c.bf16 %v5341_v0, %v5341_v0 }
 0x607   :  { %1116 = vmatmul.mubr.bf16.vlgmr.msra.gmra.mrb[40].mxu0 %v1082_v2  ;;  %1157 = vmatmul.mubr.bf16.vlgmr.msra.gmra.mrb[40].mxu1 %v1082_v2  ;;  %v4160_v2 = vld [vmem:[%s6465_s5 + $0x60] ss:$16 sps:$4 sm:$0xff]  }
 0x608   :  { %1186 = vmatpush1.bf16.msra.mxu0 %v5202_v13  ;;  %1227 = vmatpush1.bf16.msra.mxu1 %v5208_v18  ;;  %v4490_v13 = vld [vmem:[%s6462_s3 + $0xe4] ss:$16 sps:$4 sm:$0xff]   ;;  %v4491_v18 = vld [vmem:[%s6462_s3 + $0xec] ss:$16 sps:$4 sm:$0xff]  }
 0x609   :  { %1187 = vmatprep.subr.bf16.mxu0 %v5214_v14  ;;  %1228 = vmatprep.subr.bf16.mxu1 %v5220_v27  ;;  %v4492_v14 = vld [vmem:[%s6462_s3 + $0xe0] ss:$16 sps:$4 sm:$0xff]   ;;  %v4493_v27 = vld [vmem:[%s6462_s3 + $0xe8] ss:$16 sps:$4 sm:$0xff]  }
 0x60a   :  { %1217 = vmatprep.mubr.bf16.mxu0 %v6514_v10  ;;  %1258 = vmatprep.mubr.bf16.mxu1 %v6514_v10 }
 0x60c   :  { %1188 = vmatpush1.bf16.msra.mxu0 %v5228_v37  ;;  %1229 = vmatpush1.bf16.msra.mxu1 %v5234_v63  ;;  %v4144_v37 = vld [vmem:[%s6465_s5 + $0x4] ss:$16 sps:$4 sm:$0xff]   ;;  %v4147_v63 = vld [vmem:[%s6465_s5 + $0xc] ss:$16 sps:$4 sm:$0xff]  }
 0x60d   :  { %1189 = vmatprep.subr.bf16.mxu0 %v5240_v62  ;;  %1230 = vmatprep.subr.bf16.mxu1 %v5246_v43 }
 0x610   :  { %1190 = vmatpush1.bf16.msra.mxu0 %v5252_v49  ;;  %1231 = vmatpush1.bf16.msra.mxu1 %v5258_v17  ;;  %v6527_v49 = vld [vmem:[#allocation18_spill] sm:$0xff] }
 0x611   :  { %1191 = vmatprep.subr.bf16.mxu0 %v5264_v48  ;;  %1232 = vmatprep.subr.bf16.mxu1 %v5270_v19  ;;  %v6528_v48 = vld [vmem:[#allocation19_spill] sm:$0xff] }
 0x614   :  { %1192 = vmatpush1.bf16.msra.mxu0 %v5276_v59  ;;  %1233 = vmatpush1.bf16.msra.mxu1 %v5282_v30 }
 0x615   :  { %1193 = vmatprep.subr.bf16.mxu0 %v5288_v52  ;;  %1234 = vmatprep.subr.bf16.mxu1 %v5294_v22  ;;  %v6529_v52 = vld [vmem:[#allocation20_spill] sm:$0xff] }
 0x618   :  { %1194 = vmatpush1.bf16.msra.mxu0 %v5300_v23  ;;  %1235 = vmatpush1.bf16.msra.mxu1 %v5306_v24  ;;  %v6530_v23 = vld [vmem:[#allocation21_spill] sm:$0xff] }
 0x619   :  { %1195 = vmatprep.subr.bf16.mxu0 %v5312_v25  ;;  %1236 = vmatprep.subr.bf16.mxu1 %v5318_v28 }
 0x61c   :  { %1196 = vmatpush1.bf16.msra.mxu0 %v4484_v6  ;;  %1237 = vmatpush1.bf16.msra.mxu1 %v4485_v3  ;;  %v4163_v6 = vld [vmem:[%s6465_s5 + $0x68] ss:$16 sps:$4 sm:$0xff]   ;;  %v4168_v3 = vld [vmem:[%s6465_s5 + $0x84] ss:$16 sps:$4 sm:$0xff]  }
 0x61d   :  { %1197 = vmatprep.subr.bf16.mxu0 %v4486_v7  ;;  %1238 = vmatprep.subr.bf16.mxu1 %v4487_v8  ;;  %v4171_v7 = vld [vmem:[%s6465_s5 + $0x8c] ss:$16 sps:$4 sm:$0xff]   ;;  %v4166_v8 = vld [vmem:[%s6465_s5 + $0x80] ss:$16 sps:$4 sm:$0xff]  }
 0x620   :  { %1198 = vmatpush1.bf16.msra.mxu0 %v4488_v4  ;;  %1239 = vmatpush1.bf16.msra.mxu1 %v4489_v5  ;;  %v4169_v4 = vld [vmem:[%s6465_s5 + $0x88] ss:$16 sps:$4 sm:$0xff]   ;;  %v4174_v5 = vld [vmem:[%s6465_s5 + $0xa4] ss:$16 sps:$4 sm:$0xff]  }
 0x621   :  { %1199 = vmatprep.subr.bf16.mxu0 %v4490_v13  ;;  %1240 = vmatprep.subr.bf16.mxu1 %v4491_v18  ;;  %v4177_v13 = vld [vmem:[%s6465_s5 + $0xac] ss:$16 sps:$4 sm:$0xff]   ;;  %v4172_v18 = vld [vmem:[%s6465_s5 + $0xa0] ss:$16 sps:$4 sm:$0xff]  }
 0x624   :  { %1200 = vmatpush1.bf16.msra.mxu0 %v4492_v14  ;;  %1241 = vmatpush1.bf16.msra.mxu1 %v4493_v27  ;;  %v4175_v14 = vld [vmem:[%s6465_s5 + $0xa8] ss:$16 sps:$4 sm:$0xff]   ;;  %v4180_v27 = vld [vmem:[%s6465_s5 + $0xc4] ss:$16 sps:$4 sm:$0xff]  }
 0x625   :  { %1505 = vmatprep.subr.bf16.mxu0 %v4144_v37  ;;  %1578 = vmatprep.subr.bf16.mxu1 %v4147_v63  ;;  %v4183_v37 = vld [vmem:[%s6465_s5 + $0xcc] ss:$16 sps:$4 sm:$0xff]   ;;  %v4178_v63 = vld [vmem:[%s6465_s5 + $0xc0] ss:$16 sps:$4 sm:$0xff]  }
 0x6da   :  { %v1117_v62 = vpop.f32.mrb[40].mxu0  ;;  %v1158_v43 = vpop.f32.mrb[40].mxu1 }
 0x6db   :  { %v1165_v17 = vadd.f32 %v1117_v62, %v6527_v49  ;;  %v1167_v19 = vadd.f32 %v1158_v43, %v6528_v48  ;;  %v1119_v59 = vpop.f32.mrb[41].mxu0  ;;  %v1160_v30 = vpop.f32.mrb[41].mxu1  ;;  %v4181_v62 = vld [vmem:[%s6465_s5 + $0xc8] ss:$16 sps:$4 sm:$0xff]   ;;  %v4186_v43 = vld [vmem:[%s6465_s5 + $0xe4] ss:$16 sps:$4 sm:$0xff]  }
 0x6dc   :  { %v1166_v22 = vadd.f32 %v1119_v59, %v6529_v52  ;;  %v1168_v24 = vadd.f32 %v1160_v30, %v6530_v23  ;;  %v1121_v25 = vpop.f32.mrb[42].mxu0  ;;  %v1162_v28 = vpop.f32.mrb[42].mxu1  ;;  %v4189_v49 = vld [vmem:[%s6465_s5 + $0xec] ss:$16 sps:$4 sm:$0xff]   ;;  %v4187_v48 = vld [vmem:[%s6465_s5 + $0xe8] ss:$16 sps:$4 sm:$0xff]   ;;  %v1319_v59 = vpack.c.bf16 %v5139_v9, %v5093_v60  ;;  %v1320_v30 = vpack.c.bf16 %v5341_v0, %v5195_v61 }
 0x6dd   :  { %4334 = vtanh.f32 %v1165_v17  ;;  %v1122_v46 = vpop.f32.mrb[43].mxu0  ;;  %v1163_v47 = vpop.f32.mrb[43].mxu1  ;;  %v4184_v17 = vld [vmem:[%s6465_s5 + $0xe0] ss:$16 sps:$4 sm:$0xff]   ;;  %v5537_v9 = vld [vmem:[%s6462_s3 + $0x108] ss:$16 sps:$4 sm:$0xff]  }
 0x6de   :  { %4336 = vtanh.f32 %v1166_v22  ;;  %v5532_v60 = vld [vmem:[%s6462_s3 + $0x100] ss:$16 sps:$4 sm:$0xff]   ;;  %v5546_v61 = vld [vmem:[%s6462_s3 + $0x124] ss:$16 sps:$4 sm:$0xff]   ;;  %v5551_v0 = vld [vmem:[%s6462_s3 + $0x12c] ss:$16 sps:$4 sm:$0xff]  }
 0x6df   :  { %4338 = vtanh.f32 %v1167_v19  ;;  %v1318_v19 = vpack.c.bf16 %v5047_v15, %v5001_v11  ;;  %v5522_v11 = vld [vmem:[%s6462_s3 + $0x104] ss:$16 sps:$4 sm:$0xff]   ;;  %v5527_v15 = vld [vmem:[%s6462_s3 + $0x10c] ss:$16 sps:$4 sm:$0xff]   ;;  %v5556_v52 = vld [vmem:[%s6462_s3 + $0x120] ss:$16 sps:$4 sm:$0xff]  }
 0x6e0   :  { %4340 = vtanh.f32 %v1168_v24  ;;  %v5561_v22 = vld [vmem:[%s6462_s3 + $0x128] ss:$16 sps:$4 sm:$0xff]   ;;  %v5570_v23 = vld [vmem:[%s6462_s3 + $0x144] ss:$16 sps:$4 sm:$0xff]   ;;  %v5575_v24 = vld [vmem:[%s6462_s3 + $0x14c] ss:$16 sps:$4 sm:$0xff]  }
 0x6e1   :  { %v5580_v25 = vld [vmem:[%s6462_s3 + $0x140] ss:$16 sps:$4 sm:$0xff]   ;;  %v5585_v28 = vld [vmem:[%s6462_s3 + $0x148] ss:$16 sps:$4 sm:$0xff]   ;;  %v5592_v46 = vld [vmem:[%s6462_s3 + $0x164] ss:$16 sps:$4 sm:$0xff]  }
 0x6e2   :  { %v5597_v47 = vld [vmem:[%s6462_s3 + $0x16c] ss:$16 sps:$4 sm:$0xff]  }
 0x6e7   :  { %v4335_v50 = vpop.eup %4334 }
 0x6e8   :  { %v1170_v51 = vmul.f32 0.5, %v4335_v50  ;;  %v4337_v29 = vpop.eup %4336  ;;  %v5604_v50 = vld [vmem:[%s6462_s3 + $0x160] ss:$16 sps:$4 sm:$0xff]  }
 0x6e9   :  { %v1173_v31 = vmul.f32 0.5, %v4337_v29  ;;  %v4339_v54 = vpop.eup %4338  ;;  %v5616_v29 = vld [vmem:[%s6462_s3 + $0x184] ss:$16 sps:$4 sm:$0xff]  }
 0x6ea   :  { %v1171_v53 = vadd.f32 0.5, %v1170_v51  ;;  %v4341_v34 = vpop.eup %4340  ;;  %v5609_v51 = vld [vmem:[%s6462_s3 + $0x168] ss:$16 sps:$4 sm:$0xff]  }
 0x6eb   :  { %v1174_v32 = vadd.f32 0.5, %v1173_v31  ;;  %v1177_v57 = vmul.f32 0.5, %v4341_v34  ;;  %v5630_v31 = vld [vmem:[%s6462_s3 + $0x180] ss:$16 sps:$4 sm:$0xff]   ;;  %v5657_v34 = vld [vmem:[%s6462_s3 + $0x1a8] ss:$16 sps:$4 sm:$0xff]  }
 0x6ec   :  { %v1180_v55 = vmul.f32 %v4339_v54, %v1171_v53  ;;  %v5621_v53 = vld [vmem:[%s6462_s3 + $0x18c] ss:$16 sps:$4 sm:$0xff]   ;;  %v5635_v54 = vld [vmem:[%s6462_s3 + $0x188] ss:$16 sps:$4 sm:$0xff]  }
 0x6ed   :  { %v1179_v33 = vmul.f32 %v1174_v32, %v5338_v16  ;;  %v1178_v58 = vadd.f32 0.5, %v1177_v57  ;;  %v4159_v16 = vld [vmem:[%s6465_s5 + $0x4c] ss:$16 sps:$4 sm:$0xff]   ;;  %v5642_v32 = vld [vmem:[%s6462_s3 + $0x1a4] ss:$16 sps:$4 sm:$0xff]  }
 0x6ee   :  { %v5666_v57 = vld [vmem:[%s6462_s3 + $0x1c4] ss:$16 sps:$4 sm:$0xff]  }
 0x6ef   :  { %v5408_v56 = vadd.f32 %v1180_v55, %v1179_v33  ;;  %v5647_v55 = vld [vmem:[%s6462_s3 + $0x1ac] ss:$16 sps:$4 sm:$0xff]   ;;  %v5652_v33 = vld [vmem:[%s6462_s3 + $0x1a0] ss:$16 sps:$4 sm:$0xff]  }
 0x6f1   :  { %4342 = vtanh.f32 %v5408_v56 }
 0x6fb   :  { %v4343_v35 = vpop.eup %4342 }
 0x6fc   :  { %v5411_v20 = vmul.f32 %v4343_v35, %v1178_v58  ;;  %v5671_v58 = vld [vmem:[%s6462_s3 + $0x1cc] ss:$16 sps:$4 sm:$0xff]   ;;  %v5676_v35 = vld [vmem:[%s6462_s3 + $0x1c0] ss:$16 sps:$4 sm:$0xff]  }
 0x6fe   :  { %v1184_v39 = vpack.c.bf16 %v5411_v20, %v5411_v20 }
 0x700   :  { %1218 = vmatmul.mubr.bf16.vlgmr.msra.gmra.mrb[44].mxu0 %v1184_v39  ;;  %1259 = vmatmul.mubr.bf16.vlgmr.msra.gmra.mrb[44].mxu1 %v1184_v39  ;;  %v5695_v39 = vld [vmem:[%s6462_s3 + $0x1ec] ss:$16 sps:$4 sm:$0xff]  }
 0x701   :  { %1506 = vmatpush1.bf16.msra.mxu0 %v4142_v21  ;;  %1579 = vmatpush1.bf16.msra.mxu1 %v4145_v36  ;;  %v5681_v21 = vld [vmem:[%s6462_s3 + $0x1c8] ss:$16 sps:$4 sm:$0xff]   ;;  %v5690_v36 = vld [vmem:[%s6462_s3 + $0x1e4] ss:$16 sps:$4 sm:$0xff]  }
 0x702   :  { %1507 = vmatprep.subr.bf16.mxu0 %v4150_v40  ;;  %1580 = vmatprep.subr.bf16.mxu1 %v4153_v41  ;;  %v5700_v40 = vld [vmem:[%s6462_s3 + $0x1e0] ss:$16 sps:$4 sm:$0xff]   ;;  %v5705_v41 = vld [vmem:[%s6462_s3 + $0x1e8] ss:$16 sps:$4 sm:$0xff]  }
 0x703   :  { %1537 = vmatprep.mubr.bf16.mxu0 %v6514_v10  ;;  %1610 = vmatprep.mubr.bf16.mxu1 %v6514_v10 }
 0x705   :  { %1508 = vmatpush1.bf16.msra.mxu0 %v4148_v42  ;;  %1581 = vmatpush1.bf16.msra.mxu1 %v4151_v44 }
 0x706   :  { %1509 = vmatprep.subr.bf16.mxu0 %v4156_v45  ;;  %1582 = vmatprep.subr.bf16.mxu1 %v4159_v16  ;;  %v6531_v45 = vld [vmem:[#allocation22_spill] sm:$0xff] }
 0x709   :  { %1510 = vmatpush1.bf16.msra.mxu0 %v4154_v12  ;;  %1583 = vmatpush1.bf16.msra.mxu1 %v4157_v26  ;;  %v6532_v12 = vld [vmem:[#allocation23_spill] sm:$0xff] }
 0x70a   :  { %1511 = vmatprep.subr.bf16.mxu0 %v4162_v38  ;;  %1584 = vmatprep.subr.bf16.mxu1 %v4165_v1 }
 0x70d   :  { %1512 = vmatpush1.bf16.msra.mxu0 %v4160_v2  ;;  %1585 = vmatpush1.bf16.msra.mxu1 %v4163_v6  ;;  %v6533_v2 = vld [vmem:[#allocation24_spill] sm:$0xff] }
 0x70e   :  { %1513 = vmatprep.subr.bf16.mxu0 %v4168_v3  ;;  %1586 = vmatprep.subr.bf16.mxu1 %v4171_v7  ;;  %v6534_v3 = vld [vmem:[#allocation25_spill] sm:$0xff] }
 0x711   :  { %1514 = vmatpush1.bf16.msra.mxu0 %v4166_v8  ;;  %1587 = vmatpush1.bf16.msra.mxu1 %v4169_v4 }
 0x712   :  { %1515 = vmatprep.subr.bf16.mxu0 %v4174_v5  ;;  %1588 = vmatprep.subr.bf16.mxu1 %v4177_v13 }
 0x715   :  { %1516 = vmatpush1.bf16.msra.mxu0 %v4172_v18  ;;  %1589 = vmatpush1.bf16.msra.mxu1 %v4175_v14 }
 0x716   :  { %1517 = vmatprep.subr.bf16.mxu0 %v4180_v27  ;;  %1590 = vmatprep.subr.bf16.mxu1 %v4183_v37 }
 0x719   :  { %1518 = vmatpush1.bf16.msra.mxu0 %v4178_v63  ;;  %1591 = vmatpush1.bf16.msra.mxu1 %v4181_v62 }
 0x71a   :  { %1519 = vmatprep.subr.bf16.mxu0 %v4186_v43  ;;  %1592 = vmatprep.subr.bf16.mxu1 %v4189_v49 }
 0x71d   :  { %1520 = vmatpush1.bf16.msra.mxu0 %v4184_v17  ;;  %1593 = vmatpush1.bf16.msra.mxu1 %v4187_v48 }
 0x71e   :  { %1844 = vmatprep.subr.bf16.mxu0 %v5522_v11  ;;  %1885 = vmatprep.subr.bf16.mxu1 %v5527_v15 }
 0x720   :  { %1538 = vmatmul.mubr.bf16.vlgmr.msra.gmra.mrb[48].mxu0 %v1318_v19  ;;  %1611 = vmatmul.mubr.bf16.vlgmr.msra.gmra.mrb[48].mxu1 %v1318_v19 }
 0x721   :  { %1547 = vmatprep.mubr.bf16.mxu0 %v6514_v10  ;;  %1620 = vmatprep.mubr.bf16.mxu1 %v6514_v10 }
 0x722   :  { %1845 = vmatpush1.bf16.msra.mxu0 %v5532_v60  ;;  %1886 = vmatpush1.bf16.msra.mxu1 %v5537_v9 }
 0x723   :  { %1846 = vmatprep.subr.bf16.mxu0 %v5546_v61  ;;  %1887 = vmatprep.subr.bf16.mxu1 %v5551_v0 }
 0x726   :  { %1847 = vmatpush1.bf16.msra.mxu0 %v5556_v52  ;;  %1888 = vmatpush1.bf16.msra.mxu1 %v5561_v22 }
 0x727   :  { %1848 = vmatprep.subr.bf16.mxu0 %v5570_v23  ;;  %1889 = vmatprep.subr.bf16.mxu1 %v5575_v24 }
 0x728   :  { %1548 = vmatmul.mubr.bf16.gmra.mrb[52].mxu0 %v1319_v59  ;;  %1621 = vmatmul.mubr.bf16.gmra.mrb[52].mxu1 %v1319_v59 }
 0x729   :  { %1557 = vmatprep.mubr.bf16.mxu0 %v6514_v10  ;;  %1630 = vmatprep.mubr.bf16.mxu1 %v6514_v10 }
 0x72a   :  { %1849 = vmatpush1.bf16.msra.mxu0 %v5580_v25  ;;  %1890 = vmatpush1.bf16.msra.mxu1 %v5585_v28 }
 0x72b   :  { %1850 = vmatprep.subr.bf16.mxu0 %v5592_v46  ;;  %1891 = vmatprep.subr.bf16.mxu1 %v5597_v47 }
 0x72e   :  { %1851 = vmatpush1.bf16.msra.mxu0 %v5604_v50  ;;  %1892 = vmatpush1.bf16.msra.mxu1 %v5609_v51 }
 0x72f   :  { %1852 = vmatprep.subr.bf16.mxu0 %v5616_v29  ;;  %1893 = vmatprep.subr.bf16.mxu1 %v5621_v53 }
 0x730   :  { %1558 = vmatmul.mubr.bf16.gmra.mrb[56].mxu0 %v1320_v30  ;;  %1631 = vmatmul.mubr.bf16.gmra.mrb[56].mxu1 %v1320_v30 }
 0x731   :  { %1567 = vmatprep.mubr.bf16.mxu0 %v6514_v10  ;;  %1640 = vmatprep.mubr.bf16.mxu1 %v6514_v10 }
 0x732   :  { %1853 = vmatpush1.bf16.msra.mxu0 %v5630_v31  ;;  %1894 = vmatpush1.bf16.msra.mxu1 %v5635_v54 }
 0x733   :  { %1854 = vmatprep.subr.bf16.mxu0 %v5642_v32  ;;  %1895 = vmatprep.subr.bf16.mxu1 %v5647_v55 }
 0x736   :  { %1855 = vmatpush1.bf16.msra.mxu0 %v5652_v33  ;;  %1896 = vmatpush1.bf16.msra.mxu1 %v5657_v34 }
 0x737   :  { %1856 = vmatprep.subr.bf16.mxu0 %v5666_v57  ;;  %1897 = vmatprep.subr.bf16.mxu1 %v5671_v58 }
 0x73a   :  { %1857 = vmatpush1.bf16.msra.mxu0 %v5676_v35  ;;  %1898 = vmatpush1.bf16.msra.mxu1 %v5681_v21 }
 0x73b   :  { %1858 = vmatprep.subr.bf16.mxu0 %v5690_v36  ;;  %1899 = vmatprep.subr.bf16.mxu1 %v5695_v39 }
 0x73e   :  { %1859 = vmatpush1.bf16.msra.mxu0 %v5700_v40  ;;  %1900 = vmatpush1.bf16.msra.mxu1 %v5705_v41 }
 0x73f   :  { %1946 = vmatprep.subr.bf16.mxu0 %v5522_v11  ;;  %1987 = vmatprep.subr.bf16.mxu1 %v5527_v15 }
 0x7d3   :  { %v1219_v42 = vpop.f32.mrb[44].mxu0  ;;  %v1260_v44 = vpop.f32.mrb[44].mxu1 }
 0x7d4   :  { %v1267_v16 = vadd.f32 %v1219_v42, %v6531_v45  ;;  %v1269_v26 = vadd.f32 %v1260_v44, %v6532_v12  ;;  %v1221_v38 = vpop.f32.mrb[45].mxu0  ;;  %v1262_v1 = vpop.f32.mrb[45].mxu1 }
 0x7d5   :  { %v1268_v6 = vadd.f32 %v1221_v38, %v6533_v2  ;;  %v1270_v7 = vadd.f32 %v1262_v1, %v6534_v3  ;;  %v1223_v8 = vpop.f32.mrb[46].mxu0  ;;  %v1264_v4 = vpop.f32.mrb[46].mxu1 }
 0x7d6   :  { %4344 = vtanh.f32 %v1267_v16  ;;  %v1224_v5 = vpop.f32.mrb[47].mxu0  ;;  %v1265_v13 = vpop.f32.mrb[47].mxu1 }
 0x7d7   :  { %4346 = vtanh.f32 %v1268_v6 }
 0x7d8   :  { %4348 = vtanh.f32 %v1269_v26 }
 0x7d9   :  { %4350 = vtanh.f32 %v1270_v7 }
 0x7e0   :  { %v4345_v18 = vpop.eup %4344 }
 0x7e1   :  { %v1272_v14 = vmul.f32 0.5, %v4345_v18  ;;  %v4347_v27 = vpop.eup %4346 }
 0x7e2   :  { %v1275_v63 = vmul.f32 0.5, %v4347_v27  ;;  %v4349_v62 = vpop.eup %4348 }
 0x7e3   :  { %v1273_v37 = vadd.f32 0.5, %v1272_v14  ;;  %v4351_v19 = vpop.eup %4350 }
 0x7e4   :  { %v1276_v43 = vadd.f32 0.5, %v1275_v63  ;;  %v1279_v59 = vmul.f32 0.5, %v4351_v19 }
 0x7e5   :  { %v1282_v49 = vmul.f32 %v4349_v62, %v1273_v37 }
 0x7e6   :  { %v1281_v17 = vmul.f32 %v1276_v43, %v5408_v56  ;;  %v1280_v44 = vadd.f32 0.5, %v1279_v59 }
 0x7e8   :  { %v1283_v48 = vadd.f32 %v1282_v49, %v1281_v17 }
 0x7ea   :  { %4352 = vtanh.f32 %v1283_v48  ;;  %v3709_v48 = vld [vmem:[%s6464_s4 + $0x4] sm:$0xf] }
 0x7f3   :  { %v5718_v30 = vpop.f32.mrb[48].mxu0  ;;  %v5720_v42 = vpop.f32.mrb[48].mxu1 }
 0x7f4   :  { %v5722_v45 = vpop.f32.mrb[49].mxu0  ;;  %v5724_v16 = vpop.f32.mrb[49].mxu1 }
 0x7f5   :  { %v4353_v12 = vpop.eup %4352  ;;  %v5726_v26 = vpop.f32.mrb[50].mxu0 }
 0x7f6   :  { %v5728_v38 = vpop.f32.mrb[50].mxu1  ;;  %v5730_v1 = vpop.f32.mrb[51].mxu0  ;;  %v1285_v2 = vmul.f32 %v4353_v12, %v1280_v44 }
 0x7f7   :  { %v5732_v56 = vpop.f32.mrb[51].mxu1 }
 0x7f8   :  { %v1321_v6 = vpack.c.bf16 %v1285_v2, %v5411_v20 }
 0x7fa   :  { %1568 = vmatmul.mubr.bf16.gmra.mrb[60].mxu0 %v1321_v6  ;;  %1641 = vmatmul.mubr.bf16.gmra.mrb[60].mxu1 %v1321_v6 }
 0x7fb   :  { %v5735_v3 = vpop.f32.mrb[52].mxu0  ;;  %v5737_v7 = vpop.f32.mrb[52].mxu1  ;;  %1876 = vmatprep.mubr.bf16.mxu0 %v6514_v10  ;;  %1917 = vmatprep.mubr.bf16.mxu1 %v6514_v10 }
 0x7fc   :  { %6535 = vst [vmem:[#allocation6_spill] sm:$0xff] %v5737_v7  ;;  %v5741_v8 = vpop.f32.mrb[53].mxu0  ;;  %v5743_v4 = vpop.f32.mrb[53].mxu1 }
 0x7fd   :  { %6536 = vst [vmem:[#allocation7_spill] sm:$0xff] %v5741_v8  ;;  %6537 = vst [vmem:[#allocation8_spill] sm:$0xff] %v5743_v4  ;;  %v5745_v5 = vpop.f32.mrb[54].mxu0  ;;  %v5747_v13 = vpop.f32.mrb[54].mxu1 }
 0x7fe   :  { %6538 = vst [vmem:[#allocation9_spill] sm:$0xff] %v5745_v5  ;;  %6539 = vst [vmem:[#allocation10_spill] sm:$0xff] %v5747_v13  ;;  %v5749_v18 = vpop.f32.mrb[55].mxu0  ;;  %v5751_v20 = vpop.f32.mrb[55].mxu1 }
 0x7ff   :  { %6540 = vst [vmem:[#allocation11_spill] sm:$0xff] %v5749_v18  ;;  %6541 = vst [vmem:[#allocation12_spill] sm:$0xff] %v5751_v20 }
 0x802   :  { %1877 = vmatmul.mubr.bf16.vlgmr.msra.gmra.mrb[64].mxu0 %v6514_v10  ;;  %1918 = vmatmul.mubr.bf16.vlgmr.msra.gmra.mrb[64].mxu1 %v6514_v10 }
 0x803   :  { %v5755_v14 = vpop.f32.mrb[56].mxu0  ;;  %v5757_v27 = vpop.f32.mrb[56].mxu1  ;;  %1947 = vmatpush1.bf16.msra.mxu0 %v5532_v60  ;;  %1988 = vmatpush1.bf16.msra.mxu1 %v5537_v9 }
 0x804   :  { %6542 = vst [vmem:[#allocation13_spill] sm:$0xff] %v5755_v14  ;;  %6543 = vst [vmem:[#allocation14_spill] sm:$0xff] %v5757_v27  ;;  %v5761_v37 = vpop.f32.mrb[57].mxu0  ;;  %v5763_v63 = vpop.f32.mrb[57].mxu1  ;;  %1948 = vmatprep.subr.bf16.mxu0 %v5546_v61  ;;  %1989 = vmatprep.subr.bf16.mxu1 %v5551_v0 }
 0x805   :  { %6544 = vst [vmem:[#allocation15_spill] sm:$0xff] %v5761_v37  ;;  %6545 = vst [vmem:[#allocation16_spill] sm:$0xff] %v5763_v63  ;;  %v5767_v62 = vpop.f32.mrb[58].mxu0  ;;  %v5769_v43 = vpop.f32.mrb[58].mxu1  ;;  %1978 = vmatprep.mubr.bf16.mxu0 %v6514_v10  ;;  %2019 = vmatprep.mubr.bf16.mxu1 %v6514_v10 }
 0x806   :  { %6546 = vst [vmem:[#allocation17_spill] sm:$0xff] %v5767_v62  ;;  %6547 = vst [vmem:[#allocation18_spill] sm:$0xff] %v5769_v43  ;;  %v5773_v49 = vpop.f32.mrb[59].mxu0  ;;  %v5775_v17 = vpop.f32.mrb[59].mxu1  ;;  %v6557_v43 = vld [vmem:[#allocation2_spill] sm:$0xff] }
 0x807   :  { %6548 = vst [vmem:[#allocation19_spill] sm:$0xff] %v5773_v49  ;;  %6549 = vst [vmem:[#allocation20_spill] sm:$0xff] %v5775_v17  ;;  %1949 = vmatpush1.bf16.msra.mxu0 %v5556_v52  ;;  %1990 = vmatpush1.bf16.msra.mxu1 %v5561_v22  ;;  %v6556_v17 = vld [vmem:[#allocation4_spill] sm:$0xff]  ;;  %v5824_v62 = vrot.slane %v3709_v48, %v6557_v43 }
 0x808   :  { %1950 = vmatprep.subr.bf16.mxu0 %v5570_v23  ;;  %1991 = vmatprep.subr.bf16.mxu1 %v5575_v24  ;;  %v5821_v49 = vrot.slane %v3709_v48, %v6556_v17 }
 0x809   :  { %v1613_v17 = vadd.f32 %v5720_v42, %v5824_v62 }
 0x80b   :  { %1951 = vmatpush1.bf16.msra.mxu0 %v5580_v25  ;;  %1992 = vmatpush1.bf16.msra.mxu1 %v5585_v28 }
 0x80c   :  { %1952 = vmatprep.subr.bf16.mxu0 %v5592_v46  ;;  %1993 = vmatprep.subr.bf16.mxu1 %v5597_v47 }
 0x80f   :  { %1953 = vmatpush1.bf16.msra.mxu0 %v5604_v50  ;;  %1994 = vmatpush1.bf16.msra.mxu1 %v5609_v51 }
 0x810   :  { %1954 = vmatprep.subr.bf16.mxu0 %v5616_v29  ;;  %1995 = vmatprep.subr.bf16.mxu1 %v5621_v53 }
 0x813   :  { %1955 = vmatpush1.bf16.msra.mxu0 %v5630_v31  ;;  %1996 = vmatpush1.bf16.msra.mxu1 %v5635_v54 }
 0x814   :  { %1956 = vmatprep.subr.bf16.mxu0 %v5642_v32  ;;  %1997 = vmatprep.subr.bf16.mxu1 %v5647_v55 }
 0x817   :  { %1957 = vmatpush1.bf16.msra.mxu0 %v5652_v33  ;;  %1998 = vmatpush1.bf16.msra.mxu1 %v5657_v34 }
 0x818   :  { %1958 = vmatprep.subr.bf16.mxu0 %v5666_v57  ;;  %1999 = vmatprep.subr.bf16.mxu1 %v5671_v58 }
 0x81b   :  { %1959 = vmatpush1.bf16.msra.mxu0 %v5676_v35  ;;  %2000 = vmatpush1.bf16.msra.mxu1 %v5681_v21 }
 0x81c   :  { %1960 = vmatprep.subr.bf16.mxu0 %v5690_v36  ;;  %2001 = vmatprep.subr.bf16.mxu1 %v5695_v39 }
 0x81f   :  { %1961 = vmatpush1.bf16.msra.mxu0 %v5700_v40  ;;  %2002 = vmatpush1.bf16.msra.mxu1 %v5705_v41 }
 0x820   :  { %2048 = vmatprep.subr.bf16.mxu0 %v5522_v11  ;;  %2089 = vmatprep.subr.bf16.mxu1 %v5527_v15 }
 0x8cd   :  { %v5808_v19 = vpop.f32.mrb[60].mxu0  ;;  %v5810_v59 = vpop.f32.mrb[60].mxu1 }
 0x8ce   :  { %6550 = vst [vmem:[#allocation21_spill] sm:$0xff] %v5808_v19  ;;  %6551 = vst [vmem:[#allocation22_spill] sm:$0xff] %v5810_v59  ;;  %v5812_v44 = vpop.f32.mrb[61].mxu0  ;;  %v5814_v12 = vpop.f32.mrb[61].mxu1  ;;  %v6560_v19 = vld [vmem:[#allocation5_spill] sm:$0xff] }
 0x8cf   :  { %6552 = vst [vmem:[#allocation23_spill] sm:$0xff] %v5812_v44  ;;  %6553 = vst [vmem:[#allocation24_spill] sm:$0xff] %v5814_v12  ;;  %v5816_v2 = vpop.f32.mrb[62].mxu0  ;;  %v5818_v6 = vpop.f32.mrb[62].mxu1  ;;  %v5831_v59 = vrot.slane %v3709_v48, %v6560_v19  ;;  %v6561_v44 = vld [vmem:[#allocation3_spill] sm:$0xff] }
 0x8d0   :  { %6554 = vst [vmem:[#allocation25_spill] sm:$0xff] %v5816_v2  ;;  %6555 = vst [vmem:[#allocation26_spill] sm:$0xff] %v5818_v6  ;;  %v5826_v63 = vpop.f32.mrb[63].mxu0  ;;  %v5828_v37 = vpop.f32.mrb[63].mxu1  ;;  %v5834_v27 = vrot.slane %v3709_v48, %v6561_v44  ;;  %v1540_v2 = vadd.f32 %v5718_v30, %v5821_v49 }
 0x8d1   :  { %6558 = vst [vmem:[#allocation27_spill] sm:$0xff] %v5826_v63  ;;  %6559 = vst [vmem:[#allocation28_spill] sm:$0xff] %v5828_v37  ;;  %v1542_v43 = vadd.f32 %v5722_v45, %v5831_v59 }
 0x8d2   :  { %v1615_v63 = vadd.f32 %v5724_v16, %v5834_v27 }
 0x8d5   :  { %v1878_v6 = vpop.f32.mrb[64].mxu0  ;;  %v1919_v37 = vpop.f32.mrb[64].mxu1 }
 0x8d6   :  { %v1926_v12 = vadd.f32 %v1878_v6, %v1540_v2  ;;  %v1928_v19 = vadd.f32 %v1919_v37, %v1613_v17  ;;  %v1880_v14 = vpop.f32.mrb[65].mxu0  ;;  %v1921_v20 = vpop.f32.mrb[65].mxu1 }
 0x8d7   :  { %v1927_v48 = vadd.f32 %v1880_v14, %v1542_v43  ;;  %v1929_v44 = vadd.f32 %v1921_v20, %v1615_v63  ;;  %v1882_v18 = vpop.f32.mrb[66].mxu0  ;;  %v1923_v13 = vpop.f32.mrb[66].mxu1  ;;  %v1619_v43 = vadd.f32 %v5732_v56, %v5834_v27 }
 0x8d8   :  { %4354 = vtanh.f32 %v1926_v12  ;;  %v1883_v30 = vpop.f32.mrb[67].mxu0  ;;  %v1924_v5 = vpop.f32.mrb[67].mxu1 }
 0x8d9   :  { %4356 = vtanh.f32 %v1927_v48 }
 0x8da   :  { %4358 = vtanh.f32 %v1928_v19 }
 0x8db   :  { %4360 = vtanh.f32 %v1929_v44 }
 0x8e2   :  { %v4355_v42 = vpop.eup %4354 }
 0x8e3   :  { %v1931_v45 = vmul.f32 0.5, %v4355_v42  ;;  %v4357_v4 = vpop.eup %4356 }
 0x8e4   :  { %v1934_v16 = vmul.f32 0.5, %v4357_v4  ;;  %v4359_v7 = vpop.eup %4358  ;;  %v1546_v4 = vadd.f32 %v5730_v1, %v5831_v59 }
 0x8e5   :  { %v1932_v8 = vadd.f32 0.5, %v1931_v45  ;;  %v4361_v13 = vpop.eup %4360 }
 0x8e6   :  { %v1935_v2 = vadd.f32 0.5, %v1934_v16  ;;  %v1938_v18 = vmul.f32 0.5, %v4361_v13 }
 0x8e7   :  { %v1941_v37 = vmul.f32 %v4359_v7, %v1932_v8  ;;  %v1544_v7 = vadd.f32 %v5726_v26, %v5821_v49  ;;  %v1617_v8 = vadd.f32 %v5728_v38, %v5824_v62 }
 0x8e8   :  { %v1940_v17 = vmul.f32 0.0, %v1935_v2  ;;  %v1939_v20 = vadd.f32 0.5, %v1938_v18 }
 0x8ea   :  { %v5844_v6 = vadd.f32 %v1941_v37, %v1940_v17 }
 0x8ec   :  { %4362 = vtanh.f32 %v5844_v6 }
 0x8f6   :  { %v4363_v5 = vpop.eup %4362 }
 0x8f7   :  { %v1944_v14 = vmul.f32 %v4363_v5, %v1939_v20 }
 0x8f9   :  { %v1945_v63 = vpack.c.bf16 %v1944_v14, %v1944_v14 }
 0x8fb   :  { %1979 = vmatmul.mubr.bf16.vlgmr.msra.gmra.mrb[68].mxu0 %v1945_v63  ;;  %2020 = vmatmul.mubr.bf16.vlgmr.msra.gmra.mrb[68].mxu1 %v1945_v63 }
 0x8fc   :  { %2049 = vmatpush1.bf16.msra.mxu0 %v5532_v60  ;;  %2090 = vmatpush1.bf16.msra.mxu1 %v5537_v9 }
 0x8fd   :  { %2050 = vmatprep.subr.bf16.mxu0 %v5546_v61  ;;  %2091 = vmatprep.subr.bf16.mxu1 %v5551_v0 }
 0x8fe   :  { %2080 = vmatprep.mubr.bf16.mxu0 %v6514_v10  ;;  %2121 = vmatprep.mubr.bf16.mxu1 %v6514_v10 }
 0x900   :  { %2051 = vmatpush1.bf16.msra.mxu0 %v5556_v52  ;;  %2092 = vmatpush1.bf16.msra.mxu1 %v5561_v22 }
 0x901   :  { %2052 = vmatprep.subr.bf16.mxu0 %v5570_v23  ;;  %2093 = vmatprep.subr.bf16.mxu1 %v5575_v24 }
 0x904   :  { %2053 = vmatpush1.bf16.msra.mxu0 %v5580_v25  ;;  %2094 = vmatpush1.bf16.msra.mxu1 %v5585_v28 }
 0x905   :  { %2054 = vmatprep.subr.bf16.mxu0 %v5592_v46  ;;  %2095 = vmatprep.subr.bf16.mxu1 %v5597_v47 }
 0x908   :  { %2055 = vmatpush1.bf16.msra.mxu0 %v5604_v50  ;;  %2096 = vmatpush1.bf16.msra.mxu1 %v5609_v51 }
 0x909   :  { %2056 = vmatprep.subr.bf16.mxu0 %v5616_v29  ;;  %2097 = vmatprep.subr.bf16.mxu1 %v5621_v53 }
 0x90c   :  { %2057 = vmatpush1.bf16.msra.mxu0 %v5630_v31  ;;  %2098 = vmatpush1.bf16.msra.mxu1 %v5635_v54 }
 0x90d   :  { %2058 = vmatprep.subr.bf16.mxu0 %v5642_v32  ;;  %2099 = vmatprep.subr.bf16.mxu1 %v5647_v55 }
 0x910   :  { %2059 = vmatpush1.bf16.msra.mxu0 %v5652_v33  ;;  %2100 = vmatpush1.bf16.msra.mxu1 %v5657_v34 }
 0x911   :  { %2060 = vmatprep.subr.bf16.mxu0 %v5666_v57  ;;  %2101 = vmatprep.subr.bf16.mxu1 %v5671_v58 }
 0x914   :  { %2061 = vmatpush1.bf16.msra.mxu0 %v5676_v35  ;;  %2102 = vmatpush1.bf16.msra.mxu1 %v5681_v21 }
 0x915   :  { %2062 = vmatprep.subr.bf16.mxu0 %v5690_v36  ;;  %2103 = vmatprep.subr.bf16.mxu1 %v5695_v39 }
 0x918   :  { %2063 = vmatpush1.bf16.msra.mxu0 %v5700_v40  ;;  %2104 = vmatpush1.bf16.msra.mxu1 %v5705_v41 }
 0x919   :  { %2150 = vmatprep.subr.bf16.mxu0 %v5522_v11  ;;  %2191 = vmatprep.subr.bf16.mxu1 %v5527_v15 }
 0x9ce   :  { %v1980_v19 = vpop.f32.mrb[68].mxu0  ;;  %v2021_v44 = vpop.f32.mrb[68].mxu1 }
 0x9cf   :  { %v2028_v12 = vadd.f32 %v1980_v19, %v1544_v7  ;;  %v2030_v48 = vadd.f32 %v2021_v44, %v1617_v8  ;;  %v1982_v30 = vpop.f32.mrb[69].mxu0  ;;  %v2023_v42 = vpop.f32.mrb[69].mxu1 }
 0x9d0   :  { %v2029_v45 = vadd.f32 %v1982_v30, %v1546_v4  ;;  %v2031_v16 = vadd.f32 %v2023_v42, %v1619_v43  ;;  %v1984_v2 = vpop.f32.mrb[70].mxu0  ;;  %v2025_v37 = vpop.f32.mrb[70].mxu1  ;;  %v6563_v42 = vld [vmem:[#allocation7_spill] sm:$0xff] }
 0x9d1   :  { %4364 = vtanh.f32 %v2028_v12  ;;  %v1985_v26 = vpop.f32.mrb[71].mxu0  ;;  %v2026_v17 = vpop.f32.mrb[71].mxu1 }
 0x9d2   :  { %4366 = vtanh.f32 %v2029_v45  ;;  %v1552_v45 = vadd.f32 %v6563_v42, %v5831_v59 }
 0x9d3   :  { %4368 = vtanh.f32 %v2030_v48  ;;  %v6562_v48 = vld [vmem:[#allocation6_spill] sm:$0xff] }
 0x9d4   :  { %4370 = vtanh.f32 %v2031_v16  ;;  %v1623_v30 = vadd.f32 %v6562_v48, %v5824_v62  ;;  %v6564_v16 = vld [vmem:[#allocation8_spill] sm:$0xff] }
 0x9d5   :  { %v1625_v2 = vadd.f32 %v6564_v16, %v5834_v27 }
 0x9db   :  { %v4365_v38 = vpop.eup %4364 }
 0x9dc   :  { %v2033_v1 = vmul.f32 0.5, %v4365_v38  ;;  %v4367_v13 = vpop.eup %4366 }
 0x9dd   :  { %v2036_v56 = vmul.f32 0.5, %v4367_v13  ;;  %v4369_v20 = vpop.eup %4368 }
 0x9de   :  { %v2034_v18 = vadd.f32 0.5, %v2033_v1  ;;  %v4371_v8 = vpop.eup %4370 }
 0x9df   :  { %v2037_v5 = vadd.f32 0.5, %v2036_v56  ;;  %v2040_v4 = vmul.f32 0.5, %v4371_v8 }
 0x9e0   :  { %v2043_v14 = vmul.f32 %v4369_v20, %v2034_v18 }
 0x9e1   :  { %v2042_v63 = vmul.f32 %v2037_v5, %v5844_v6  ;;  %v2041_v43 = vadd.f32 0.5, %v2040_v4  ;;  %v1550_v6 = vadd.f32 %v5735_v3, %v5821_v49 }
 0x9e3   :  { %v5890_v7 = vadd.f32 %v2043_v14, %v2042_v63 }
 0x9e5   :  { %4372 = vtanh.f32 %v5890_v7 }
 0x9ef   :  { %v4373_v19 = vpop.eup %4372 }
 0x9f0   :  { %v2046_v44 = vmul.f32 %v4373_v19, %v2041_v43 }
 0x9f2   :  { %v2047_v12 = vpack.c.bf16 %v2046_v44, %v2046_v44 }
 0x9f4   :  { %2081 = vmatmul.mubr.bf16.vlgmr.msra.gmra.mrb[72].mxu0 %v2047_v12  ;;  %2122 = vmatmul.mubr.bf16.vlgmr.msra.gmra.mrb[72].mxu1 %v2047_v12 }
 0x9f5   :  { %2151 = vmatpush1.bf16.msra.mxu0 %v5532_v60  ;;  %2192 = vmatpush1.bf16.msra.mxu1 %v5537_v9 }
 0x9f6   :  { %2152 = vmatprep.subr.bf16.mxu0 %v5546_v61  ;;  %2193 = vmatprep.subr.bf16.mxu1 %v5551_v0 }
 0x9f7   :  { %2182 = vmatprep.mubr.bf16.mxu0 %v6514_v10  ;;  %2223 = vmatprep.mubr.bf16.mxu1 %v6514_v10 }
 0x9f9   :  { %2153 = vmatpush1.bf16.msra.mxu0 %v5556_v52  ;;  %2194 = vmatpush1.bf16.msra.mxu1 %v5561_v22 }
 0x9fa   :  { %2154 = vmatprep.subr.bf16.mxu0 %v5570_v23  ;;  %2195 = vmatprep.subr.bf16.mxu1 %v5575_v24 }
 0x9fd   :  { %2155 = vmatpush1.bf16.msra.mxu0 %v5580_v25  ;;  %2196 = vmatpush1.bf16.msra.mxu1 %v5585_v28 }
 0x9fe   :  { %2156 = vmatprep.subr.bf16.mxu0 %v5592_v46  ;;  %2197 = vmatprep.subr.bf16.mxu1 %v5597_v47 }
 0xa01   :  { %2157 = vmatpush1.bf16.msra.mxu0 %v5604_v50  ;;  %2198 = vmatpush1.bf16.msra.mxu1 %v5609_v51 }
 0xa02   :  { %2158 = vmatprep.subr.bf16.mxu0 %v5616_v29  ;;  %2199 = vmatprep.subr.bf16.mxu1 %v5621_v53 }
 0xa05   :  { %2159 = vmatpush1.bf16.msra.mxu0 %v5630_v31  ;;  %2200 = vmatpush1.bf16.msra.mxu1 %v5635_v54 }
 0xa06   :  { %2160 = vmatprep.subr.bf16.mxu0 %v5642_v32  ;;  %2201 = vmatprep.subr.bf16.mxu1 %v5647_v55 }
 0xa09   :  { %2161 = vmatpush1.bf16.msra.mxu0 %v5652_v33  ;;  %2202 = vmatpush1.bf16.msra.mxu1 %v5657_v34 }
 0xa0a   :  { %2162 = vmatprep.subr.bf16.mxu0 %v5666_v57  ;;  %2203 = vmatprep.subr.bf16.mxu1 %v5671_v58 }
 0xa0d   :  { %2163 = vmatpush1.bf16.msra.mxu0 %v5676_v35  ;;  %2204 = vmatpush1.bf16.msra.mxu1 %v5681_v21 }
 0xa0e   :  { %2164 = vmatprep.subr.bf16.mxu0 %v5690_v36  ;;  %2205 = vmatprep.subr.bf16.mxu1 %v5695_v39 }
 0xa11   :  { %2165 = vmatpush1.bf16.msra.mxu0 %v5700_v40  ;;  %2206 = vmatpush1.bf16.msra.mxu1 %v5705_v41 }
 0xa12   :  { %2252 = vmatprep.subr.bf16.mxu0 %v5522_v11  ;;  %2293 = vmatprep.subr.bf16.mxu1 %v5527_v15 }
 0xac7   :  { %v2082_v37 = vpop.f32.mrb[72].mxu0  ;;  %v2123_v26 = vpop.f32.mrb[72].mxu1 }
 0xac8   :  { %v2130_v17 = vadd.f32 %v2082_v37, %v1550_v6  ;;  %v2132_v38 = vadd.f32 %v2123_v26, %v1623_v30  ;;  %v2084_v1 = vpop.f32.mrb[73].mxu0  ;;  %v2125_v13 = vpop.f32.mrb[73].mxu1 }
 0xac9   :  { %v2131_v18 = vadd.f32 %v2084_v1, %v1552_v45  ;;  %v2133_v56 = vadd.f32 %v2125_v13, %v1625_v2  ;;  %v2086_v20 = vpop.f32.mrb[74].mxu0  ;;  %v2127_v5 = vpop.f32.mrb[74].mxu1  ;;  %v6567_v13 = vld [vmem:[#allocation11_spill] sm:$0xff] }
 0xaca   :  { %4374 = vtanh.f32 %v2130_v17  ;;  %v2087_v3 = vpop.f32.mrb[75].mxu0  ;;  %v2128_v14 = vpop.f32.mrb[75].mxu1 }
 0xacb   :  { %4376 = vtanh.f32 %v2131_v18  ;;  %v1556_v18 = vadd.f32 %v6567_v13, %v5831_v59 }
 0xacc   :  { %4378 = vtanh.f32 %v2132_v38  ;;  %v6566_v38 = vld [vmem:[#allocation10_spill] sm:$0xff] }
 0xacd   :  { %4380 = vtanh.f32 %v2133_v56  ;;  %v1627_v1 = vadd.f32 %v6566_v38, %v5824_v62  ;;  %v6568_v56 = vld [vmem:[#allocation12_spill] sm:$0xff] }
 0xace   :  { %v1629_v20 = vadd.f32 %v6568_v56, %v5834_v27 }
 0xad4   :  { %v4375_v63 = vpop.eup %4374 }
 0xad5   :  { %v2135_v8 = vmul.f32 0.5, %v4375_v63  ;;  %v4377_v4 = vpop.eup %4376 }
 0xad6   :  { %v2138_v19 = vmul.f32 0.5, %v4377_v4  ;;  %v4379_v44 = vpop.eup %4378 }
 0xad7   :  { %v2136_v43 = vadd.f32 0.5, %v2135_v8  ;;  %v4381_v42 = vpop.eup %4380 }
 0xad8   :  { %v2139_v12 = vadd.f32 0.5, %v2138_v19  ;;  %v2142_v45 = vmul.f32 0.5, %v4381_v42 }
 0xad9   :  { %v2145_v6 = vmul.f32 %v4379_v44, %v2136_v43 }
 0xada   :  { %v2144_v48 = vmul.f32 %v2139_v12, %v5890_v7  ;;  %v2143_v16 = vadd.f32 0.5, %v2142_v45  ;;  %v6565_v7 = vld [vmem:[#allocation9_spill] sm:$0xff] }
 0xadb   :  { %v1554_v17 = vadd.f32 %v6565_v7, %v5821_v49 }
 0xadc   :  { %v5936_v30 = vadd.f32 %v2145_v6, %v2144_v48 }
 0xade   :  { %4382 = vtanh.f32 %v5936_v30 }
 0xae8   :  { %v4383_v2 = vpop.eup %4382 }
 0xae9   :  { %v2148_v37 = vmul.f32 %v4383_v2, %v2143_v16 }
 0xaeb   :  { %v2149_v26 = vpack.c.bf16 %v2148_v37, %v2148_v37 }
 0xaed   :  { %2183 = vmatmul.mubr.bf16.vlgmr.msra.gmra.mrb[76].mxu0 %v2149_v26  ;;  %2224 = vmatmul.mubr.bf16.vlgmr.msra.gmra.mrb[76].mxu1 %v2149_v26 }
 0xaee   :  { %2253 = vmatpush1.bf16.msra.mxu0 %v5532_v60  ;;  %2294 = vmatpush1.bf16.msra.mxu1 %v5537_v9 }
 0xaef   :  { %2254 = vmatprep.subr.bf16.mxu0 %v5546_v61  ;;  %2295 = vmatprep.subr.bf16.mxu1 %v5551_v0 }
 0xaf0   :  { %2284 = vmatprep.mubr.bf16.mxu0 %v6514_v10  ;;  %2325 = vmatprep.mubr.bf16.mxu1 %v6514_v10 }
 0xaf2   :  { %2255 = vmatpush1.bf16.msra.mxu0 %v5556_v52  ;;  %2296 = vmatpush1.bf16.msra.mxu1 %v5561_v22 }
 0xaf3   :  { %2256 = vmatprep.subr.bf16.mxu0 %v5570_v23  ;;  %2297 = vmatprep.subr.bf16.mxu1 %v5575_v24 }
 0xaf6   :  { %2257 = vmatpush1.bf16.msra.mxu0 %v5580_v25  ;;  %2298 = vmatpush1.bf16.msra.mxu1 %v5585_v28 }
 0xaf7   :  { %2258 = vmatprep.subr.bf16.mxu0 %v5592_v46  ;;  %2299 = vmatprep.subr.bf16.mxu1 %v5597_v47 }
 0xafa   :  { %2259 = vmatpush1.bf16.msra.mxu0 %v5604_v50  ;;  %2300 = vmatpush1.bf16.msra.mxu1 %v5609_v51 }
 0xafb   :  { %2260 = vmatprep.subr.bf16.mxu0 %v5616_v29  ;;  %2301 = vmatprep.subr.bf16.mxu1 %v5621_v53 }
 0xafe   :  { %2261 = vmatpush1.bf16.msra.mxu0 %v5630_v31  ;;  %2302 = vmatpush1.bf16.msra.mxu1 %v5635_v54 }
 0xaff   :  { %2262 = vmatprep.subr.bf16.mxu0 %v5642_v32  ;;  %2303 = vmatprep.subr.bf16.mxu1 %v5647_v55 }
 0xb02   :  { %2263 = vmatpush1.bf16.msra.mxu0 %v5652_v33  ;;  %2304 = vmatpush1.bf16.msra.mxu1 %v5657_v34 }
 0xb03   :  { %2264 = vmatprep.subr.bf16.mxu0 %v5666_v57  ;;  %2305 = vmatprep.subr.bf16.mxu1 %v5671_v58 }
 0xb06   :  { %2265 = vmatpush1.bf16.msra.mxu0 %v5676_v35  ;;  %2306 = vmatpush1.bf16.msra.mxu1 %v5681_v21 }
 0xb07   :  { %2266 = vmatprep.subr.bf16.mxu0 %v5690_v36  ;;  %2307 = vmatprep.subr.bf16.mxu1 %v5695_v39 }
 0xb0a   :  { %2267 = vmatpush1.bf16.msra.mxu0 %v5700_v40  ;;  %2308 = vmatpush1.bf16.msra.mxu1 %v5705_v41 }
 0xb0b   :  { %2354 = vmatprep.subr.bf16.mxu0 %v5522_v11  ;;  %2395 = vmatprep.subr.bf16.mxu1 %v5527_v15 }
 0xbc0   :  { %v2184_v5 = vpop.f32.mrb[76].mxu0  ;;  %v2225_v3 = vpop.f32.mrb[76].mxu1 }
 0xbc1   :  { %v2232_v14 = vadd.f32 %v2184_v5, %v1554_v17  ;;  %v2234_v63 = vadd.f32 %v2225_v3, %v1627_v1  ;;  %v2186_v8 = vpop.f32.mrb[77].mxu0  ;;  %v2227_v4 = vpop.f32.mrb[77].mxu1 }
 0xbc2   :  { %v2233_v43 = vadd.f32 %v2186_v8, %v1556_v18  ;;  %v2235_v19 = vadd.f32 %v2227_v4, %v1629_v20  ;;  %v2188_v44 = vpop.f32.mrb[78].mxu0  ;;  %v2229_v12 = vpop.f32.mrb[78].mxu1  ;;  %v6571_v4 = vld [vmem:[#allocation15_spill] sm:$0xff] }
 0xbc3   :  { %4384 = vtanh.f32 %v2232_v14  ;;  %v2189_v6 = vpop.f32.mrb[79].mxu0  ;;  %v2230_v48 = vpop.f32.mrb[79].mxu1 }
 0xbc4   :  { %4386 = vtanh.f32 %v2233_v43  ;;  %v1562_v43 = vadd.f32 %v6571_v4, %v5831_v59 }
 0xbc5   :  { %4388 = vtanh.f32 %v2234_v63  ;;  %v6570_v63 = vld [vmem:[#allocation14_spill] sm:$0xff] }
 0xbc6   :  { %4390 = vtanh.f32 %v2235_v19  ;;  %v1633_v8 = vadd.f32 %v6570_v63, %v5824_v62  ;;  %v6572_v19 = vld [vmem:[#allocation16_spill] sm:$0xff] }
 0xbc7   :  { %v1635_v44 = vadd.f32 %v6572_v19, %v5834_v27 }
 0xbcd   :  { %v4385_v42 = vpop.eup %4384 }
 0xbce   :  { %v2237_v45 = vmul.f32 0.5, %v4385_v42  ;;  %v4387_v16 = vpop.eup %4386 }
 0xbcf   :  { %v2240_v37 = vmul.f32 0.5, %v4387_v16  ;;  %v4389_v26 = vpop.eup %4388 }
 0xbd0   :  { %v2238_v2 = vadd.f32 0.5, %v2237_v45  ;;  %v4391_v13 = vpop.eup %4390 }
 0xbd1   :  { %v2241_v7 = vadd.f32 0.5, %v2240_v37  ;;  %v2244_v18 = vmul.f32 0.5, %v4391_v13 }
 0xbd2   :  { %v2247_v17 = vmul.f32 %v4389_v26, %v2238_v2 }
 0xbd3   :  { %v2246_v38 = vmul.f32 %v2241_v7, %v5936_v30  ;;  %v2245_v56 = vadd.f32 0.5, %v2244_v18  ;;  %v6569_v30 = vld [vmem:[#allocation13_spill] sm:$0xff] }
 0xbd4   :  { %v1560_v14 = vadd.f32 %v6569_v30, %v5821_v49 }
 0xbd5   :  { %v5982_v1 = vadd.f32 %v2247_v17, %v2246_v38 }
 0xbd7   :  { %4392 = vtanh.f32 %v5982_v1 }
 0xbe1   :  { %v4393_v20 = vpop.eup %4392 }
 0xbe2   :  { %v2250_v5 = vmul.f32 %v4393_v20, %v2245_v56 }
 0xbe4   :  { %v2251_v3 = vpack.c.bf16 %v2250_v5, %v2250_v5 }
 0xbe6   :  { %2285 = vmatmul.mubr.bf16.vlgmr.msra.gmra.mrb[80].mxu0 %v2251_v3  ;;  %2326 = vmatmul.mubr.bf16.vlgmr.msra.gmra.mrb[80].mxu1 %v2251_v3 }
 0xbe7   :  { %2355 = vmatpush1.bf16.msra.mxu0 %v5532_v60  ;;  %2396 = vmatpush1.bf16.msra.mxu1 %v5537_v9 }
 0xbe8   :  { %2356 = vmatprep.subr.bf16.mxu0 %v5546_v61  ;;  %2397 = vmatprep.subr.bf16.mxu1 %v5551_v0 }
 0xbe9   :  { %2386 = vmatprep.mubr.bf16.mxu0 %v6514_v10  ;;  %2427 = vmatprep.mubr.bf16.mxu1 %v6514_v10 }
 0xbeb   :  { %2357 = vmatpush1.bf16.msra.mxu0 %v5556_v52  ;;  %2398 = vmatpush1.bf16.msra.mxu1 %v5561_v22 }
 0xbec   :  { %2358 = vmatprep.subr.bf16.mxu0 %v5570_v23  ;;  %2399 = vmatprep.subr.bf16.mxu1 %v5575_v24 }
 0xbef   :  { %2359 = vmatpush1.bf16.msra.mxu0 %v5580_v25  ;;  %2400 = vmatpush1.bf16.msra.mxu1 %v5585_v28 }
 0xbf0   :  { %2360 = vmatprep.subr.bf16.mxu0 %v5592_v46  ;;  %2401 = vmatprep.subr.bf16.mxu1 %v5597_v47 }
 0xbf3   :  { %2361 = vmatpush1.bf16.msra.mxu0 %v5604_v50  ;;  %2402 = vmatpush1.bf16.msra.mxu1 %v5609_v51 }
 0xbf4   :  { %2362 = vmatprep.subr.bf16.mxu0 %v5616_v29  ;;  %2403 = vmatprep.subr.bf16.mxu1 %v5621_v53 }
 0xbf7   :  { %2363 = vmatpush1.bf16.msra.mxu0 %v5630_v31  ;;  %2404 = vmatpush1.bf16.msra.mxu1 %v5635_v54 }
 0xbf8   :  { %2364 = vmatprep.subr.bf16.mxu0 %v5642_v32  ;;  %2405 = vmatprep.subr.bf16.mxu1 %v5647_v55 }
 0xbfb   :  { %2365 = vmatpush1.bf16.msra.mxu0 %v5652_v33  ;;  %2406 = vmatpush1.bf16.msra.mxu1 %v5657_v34 }
 0xbfc   :  { %2366 = vmatprep.subr.bf16.mxu0 %v5666_v57  ;;  %2407 = vmatprep.subr.bf16.mxu1 %v5671_v58 }
 0xbff   :  { %2367 = vmatpush1.bf16.msra.mxu0 %v5676_v35  ;;  %2408 = vmatpush1.bf16.msra.mxu1 %v5681_v21 }
 0xc00   :  { %2368 = vmatprep.subr.bf16.mxu0 %v5690_v36  ;;  %2409 = vmatprep.subr.bf16.mxu1 %v5695_v39 }
 0xc03   :  { %2369 = vmatpush1.bf16.msra.mxu0 %v5700_v40  ;;  %2410 = vmatpush1.bf16.msra.mxu1 %v5705_v41 }
 0xc04   :  { %2456 = vmatprep.subr.bf16.mxu0 %v5522_v11  ;;  %2497 = vmatprep.subr.bf16.mxu1 %v5527_v15 }
 0xcb9   :  { %v2286_v12 = vpop.f32.mrb[80].mxu0  ;;  %v2327_v6 = vpop.f32.mrb[80].mxu1 }
 0xcba   :  { %v2334_v48 = vadd.f32 %v2286_v12, %v1560_v14  ;;  %v2336_v42 = vadd.f32 %v2327_v6, %v1633_v8  ;;  %v2288_v45 = vpop.f32.mrb[81].mxu0  ;;  %v2329_v11 = vpop.f32.mrb[81].mxu1 }
 0xcbb   :  { %v2335_v16 = vadd.f32 %v2288_v45, %v1562_v43  ;;  %v2337_v15 = vadd.f32 %v2329_v11, %v1635_v44  ;;  %v2290_v2 = vpop.f32.mrb[82].mxu0  ;;  %v2331_v37 = vpop.f32.mrb[82].mxu1 }
 0xcbc   :  { %4394 = vtanh.f32 %v2334_v48  ;;  %v2291_v26 = vpop.f32.mrb[83].mxu0  ;;  %v2332_v7 = vpop.f32.mrb[83].mxu1  ;;  %v4497_v2 = vld [vmem:[%s6462_s3 + $0x108] ss:$16 sps:$4 sm:$0xff]   ;;  %v4498_v37 = vld [vmem:[%s6462_s3 + $0x124] ss:$16 sps:$4 sm:$0xff]  }
 0xcbd   :  { %4396 = vtanh.f32 %v2335_v16  ;;  %v4499_v26 = vld [vmem:[%s6462_s3 + $0x12c] ss:$16 sps:$4 sm:$0xff]   ;;  %v4500_v7 = vld [vmem:[%s6462_s3 + $0x120] ss:$16 sps:$4 sm:$0xff]  }
 0xcbe   :  { %4398 = vtanh.f32 %v2336_v42 }
 0xcbf   :  { %4400 = vtanh.f32 %v2337_v15  ;;  %v4496_v15 = vld [vmem:[%s6462_s3 + $0x100] ss:$16 sps:$4 sm:$0xff]  }
 0xcc6   :  { %v4395_v17 = vpop.eup %4394 }
 0xcc7   :  { %v2339_v38 = vmul.f32 0.5, %v4395_v17  ;;  %v4397_v13 = vpop.eup %4396  ;;  %v4501_v17 = vld [vmem:[%s6462_s3 + $0x128] ss:$16 sps:$4 sm:$0xff]  }
 0xcc8   :  { %v2342_v56 = vmul.f32 0.5, %v4397_v13  ;;  %v4399_v20 = vpop.eup %4398  ;;  %v4503_v13 = vld [vmem:[%s6462_s3 + $0x14c] ss:$16 sps:$4 sm:$0xff]  }
 0xcc9   :  { %v2340_v18 = vadd.f32 0.5, %v2339_v38  ;;  %v4401_v63 = vpop.eup %4400  ;;  %v4502_v38 = vld [vmem:[%s6462_s3 + $0x144] ss:$16 sps:$4 sm:$0xff]  }
 0xcca   :  { %v2343_v5 = vadd.f32 0.5, %v2342_v56  ;;  %v2346_v8 = vmul.f32 0.5, %v4401_v63  ;;  %v4505_v56 = vld [vmem:[%s6462_s3 + $0x148] ss:$16 sps:$4 sm:$0xff]   ;;  %v4511_v63 = vld [vmem:[%s6462_s3 + $0x18c] ss:$16 sps:$4 sm:$0xff]  }
 0xccb   :  { %v2349_v3 = vmul.f32 %v4399_v20, %v2340_v18  ;;  %v4504_v18 = vld [vmem:[%s6462_s3 + $0x140] ss:$16 sps:$4 sm:$0xff]   ;;  %v4506_v20 = vld [vmem:[%s6462_s3 + $0x164] ss:$16 sps:$4 sm:$0xff]  }
 0xccc   :  { %v2348_v30 = vmul.f32 %v2343_v5, %v5982_v1  ;;  %v2347_v4 = vadd.f32 0.5, %v2346_v8  ;;  %v4507_v5 = vld [vmem:[%s6462_s3 + $0x16c] ss:$16 sps:$4 sm:$0xff]   ;;  %v4512_v8 = vld [vmem:[%s6462_s3 + $0x180] ss:$16 sps:$4 sm:$0xff]  }
 0xcce   :  { %v6028_v14 = vadd.f32 %v2349_v3, %v2348_v30  ;;  %v4508_v3 = vld [vmem:[%s6462_s3 + $0x160] ss:$16 sps:$4 sm:$0xff]   ;;  %v4509_v30 = vld [vmem:[%s6462_s3 + $0x168] ss:$16 sps:$4 sm:$0xff]  }
 0xcd0   :  { %4402 = vtanh.f32 %v6028_v14 }
 0xcda   :  { %v4403_v43 = vpop.eup %4402 }
 0xcdb   :  { %v2352_v19 = vmul.f32 %v4403_v43, %v2347_v4  ;;  %v4513_v4 = vld [vmem:[%s6462_s3 + $0x188] ss:$16 sps:$4 sm:$0xff]   ;;  %v4514_v43 = vld [vmem:[%s6462_s3 + $0x1a4] ss:$16 sps:$4 sm:$0xff]  }
 0xcdd   :  { %v2353_v44 = vpack.c.bf16 %v2352_v19, %v2352_v19  ;;  %v4515_v19 = vld [vmem:[%s6462_s3 + $0x1ac] ss:$16 sps:$4 sm:$0xff]  }
 0xcdf   :  { %2387 = vmatmul.mubr.bf16.vlgmr.msra.gmra.mrb[84].mxu0 %v2353_v44  ;;  %2428 = vmatmul.mubr.bf16.vlgmr.msra.gmra.mrb[84].mxu1 %v2353_v44  ;;  %v4516_v44 = vld [vmem:[%s6462_s3 + $0x1a0] ss:$16 sps:$4 sm:$0xff]  }
 0xce0   :  { %2457 = vmatpush1.bf16.msra.mxu0 %v5532_v60  ;;  %2498 = vmatpush1.bf16.msra.mxu1 %v5537_v9  ;;  %v4494_v60 = vld [vmem:[%s6462_s3 + $0x104] ss:$16 sps:$4 sm:$0xff]   ;;  %v4495_v9 = vld [vmem:[%s6462_s3 + $0x10c] ss:$16 sps:$4 sm:$0xff]  }
 0xce1   :  { %2458 = vmatprep.subr.bf16.mxu0 %v5546_v61  ;;  %2499 = vmatprep.subr.bf16.mxu1 %v5551_v0  ;;  %v6573_v61 = vld [vmem:[#allocation17_spill] sm:$0xff] }
 0xce2   :  { %2488 = vmatprep.mubr.bf16.mxu0 %v6514_v10  ;;  %2529 = vmatprep.mubr.bf16.mxu1 %v6514_v10  ;;  %v1564_v0 = vadd.f32 %v6573_v61, %v5821_v49  ;;  %v4519_v61 = vld [vmem:[%s6462_s3 + $0x1cc] ss:$16 sps:$4 sm:$0xff]  }
 0xce4   :  { %2459 = vmatpush1.bf16.msra.mxu0 %v5556_v52  ;;  %2500 = vmatpush1.bf16.msra.mxu1 %v5561_v22  ;;  %v6574_v52 = vld [vmem:[#allocation18_spill] sm:$0xff] }
 0xce5   :  { %2460 = vmatprep.subr.bf16.mxu0 %v5570_v23  ;;  %2501 = vmatprep.subr.bf16.mxu1 %v5575_v24  ;;  %v1637_v22 = vadd.f32 %v6574_v52, %v5824_v62  ;;  %v6575_v23 = vld [vmem:[#allocation19_spill] sm:$0xff] }
 0xce6   :  { %v1566_v24 = vadd.f32 %v6575_v23, %v5831_v59  ;;  %v4521_v52 = vld [vmem:[%s6462_s3 + $0x1c8] ss:$16 sps:$4 sm:$0xff]   ;;  %v4523_v23 = vld [vmem:[%s6462_s3 + $0x1ec] ss:$16 sps:$4 sm:$0xff]  }
 0xce8   :  { %2461 = vmatpush1.bf16.msra.mxu0 %v5580_v25  ;;  %2502 = vmatpush1.bf16.msra.mxu1 %v5585_v28  ;;  %v6576_v25 = vld [vmem:[#allocation20_spill] sm:$0xff] }
 0xce9   :  { %2462 = vmatprep.subr.bf16.mxu0 %v5592_v46  ;;  %2503 = vmatprep.subr.bf16.mxu1 %v5597_v47  ;;  %v1639_v28 = vadd.f32 %v6576_v25, %v5834_v27  ;;  %v4525_v25 = vld [vmem:[%s6462_s3 + $0x1e8] ss:$16 sps:$4 sm:$0xff]  }
 0xcec   :  { %2463 = vmatpush1.bf16.msra.mxu0 %v5604_v50  ;;  %2504 = vmatpush1.bf16.msra.mxu1 %v5609_v51 }
 0xced   :  { %2464 = vmatprep.subr.bf16.mxu0 %v5616_v29  ;;  %2505 = vmatprep.subr.bf16.mxu1 %v5621_v53 }
 0xcf0   :  { %2465 = vmatpush1.bf16.msra.mxu0 %v5630_v31  ;;  %2506 = vmatpush1.bf16.msra.mxu1 %v5635_v54 }
 0xcf1   :  { %2466 = vmatprep.subr.bf16.mxu0 %v5642_v32  ;;  %2507 = vmatprep.subr.bf16.mxu1 %v5647_v55 }
 0xcf4   :  { %2467 = vmatpush1.bf16.msra.mxu0 %v5652_v33  ;;  %2508 = vmatpush1.bf16.msra.mxu1 %v5657_v34 }
 0xcf5   :  { %2468 = vmatprep.subr.bf16.mxu0 %v5666_v57  ;;  %2509 = vmatprep.subr.bf16.mxu1 %v5671_v58 }
 0xcf8   :  { %2469 = vmatpush1.bf16.msra.mxu0 %v5676_v35  ;;  %2510 = vmatpush1.bf16.msra.mxu1 %v5681_v21 }
 0xcf9   :  { %2470 = vmatprep.subr.bf16.mxu0 %v5690_v36  ;;  %2511 = vmatprep.subr.bf16.mxu1 %v5695_v39 }
 0xcfc   :  { %2471 = vmatpush1.bf16.msra.mxu0 %v5700_v40  ;;  %2512 = vmatpush1.bf16.msra.mxu1 %v5705_v41 }
 0xcfd   :  { %2558 = vmatprep.subr.bf16.mxu0 %v4494_v60  ;;  %2599 = vmatprep.subr.bf16.mxu1 %v4495_v9  ;;  %v4517_v60 = vld [vmem:[%s6462_s3 + $0x1a8] ss:$16 sps:$4 sm:$0xff]   ;;  %v4518_v9 = vld [vmem:[%s6462_s3 + $0x1c4] ss:$16 sps:$4 sm:$0xff]  }
 0xdb2   :  { %v2388_v46 = vpop.f32.mrb[84].mxu0  ;;  %v2429_v47 = vpop.f32.mrb[84].mxu1 }
 0xdb3   :  { %v2436_v50 = vadd.f32 %v2388_v46, %v1564_v0  ;;  %v2438_v51 = vadd.f32 %v2429_v47, %v1637_v22  ;;  %v2390_v29 = vpop.f32.mrb[85].mxu0  ;;  %v2431_v53 = vpop.f32.mrb[85].mxu1  ;;  %v4520_v0 = vld [vmem:[%s6462_s3 + $0x1c0] ss:$16 sps:$4 sm:$0xff]   ;;  %v4522_v22 = vld [vmem:[%s6462_s3 + $0x1e4] ss:$16 sps:$4 sm:$0xff]  }
 0xdb4   :  { %v2437_v31 = vadd.f32 %v2390_v29, %v1566_v24  ;;  %v2439_v54 = vadd.f32 %v2431_v53, %v1639_v28  ;;  %v2392_v32 = vpop.f32.mrb[86].mxu0  ;;  %v2433_v55 = vpop.f32.mrb[86].mxu1  ;;  %v4524_v24 = vld [vmem:[%s6462_s3 + $0x1e0] ss:$16 sps:$4 sm:$0xff]   ;;  %v4240_v28 = vld [vmem:[%s6466_s6 + $0x4] ss:$16 sps:$4 sm:$0xff]  }
 0xdb5   :  { %4404 = vtanh.f32 %v2436_v50  ;;  %v2393_v33 = vpop.f32.mrb[87].mxu0  ;;  %v2434_v34 = vpop.f32.mrb[87].mxu1  ;;  %v4246_v46 = vld [vmem:[%s6466_s6 + $0xc] ss:$16 sps:$4 sm:$0xff]  }
 0xdb6   :  { %4406 = vtanh.f32 %v2437_v31  ;;  %v6577_v47 = vld [vmem:[#allocation21_spill] sm:$0xff]  ;;  %v6579_v53 = vld [vmem:[#allocation23_spill] sm:$0xff] }
 0xdb7   :  { %4408 = vtanh.f32 %v2438_v51  ;;  %v1570_v50 = vadd.f32 %v6577_v47, %v5821_v49  ;;  %v6578_v51 = vld [vmem:[#allocation22_spill] sm:$0xff]  ;;  %v1572_v31 = vadd.f32 %v6579_v53, %v5831_v59 }
 0xdb8   :  { %4410 = vtanh.f32 %v2439_v54  ;;  %v1643_v29 = vadd.f32 %v6578_v51, %v5824_v62  ;;  %v6580_v54 = vld [vmem:[#allocation24_spill] sm:$0xff] }
 0xdb9   :  { %v1645_v32 = vadd.f32 %v6580_v54, %v5834_v27 }
 0xdbf   :  { %v4405_v57 = vpop.eup %4404 }
 0xdc0   :  { %v2441_v58 = vmul.f32 0.5, %v4405_v57  ;;  %v4407_v35 = vpop.eup %4406 }
 0xdc1   :  { %v2444_v36 = vmul.f32 0.5, %v4407_v35  ;;  %v4409_v39 = vpop.eup %4408 }
 0xdc2   :  { %v2442_v21 = vadd.f32 0.5, %v2441_v58  ;;  %v4411_v6 = vpop.eup %4410 }
 0xdc3   :  { %v2445_v40 = vadd.f32 0.5, %v2444_v36  ;;  %v2448_v48 = vmul.f32 0.5, %v4411_v6 }
 0xdc4   :  { %v2451_v41 = vmul.f32 %v4409_v39, %v2442_v21 }
 0xdc5   :  { %v2450_v1 = vmul.f32 %v2445_v40, %v6028_v14  ;;  %v2449_v42 = vadd.f32 0.5, %v2448_v48  ;;  %v4510_v14 = vld [vmem:[%s6462_s3 + $0x184] ss:$16 sps:$4 sm:$0xff]  }
 0xdc7   :  { %v6078_v12 = vadd.f32 %v2451_v41, %v2450_v1 }
 0xdc9   :  { %4412 = vtanh.f32 %v6078_v12 }
 0xdd3   :  { %v4413_v45 = vpop.eup %4412 }
 0xdd4   :  { %v2454_v11 = vmul.f32 %v4413_v45, %v2449_v42 }
 0xdd6   :  { %v2455_v16 = vpack.c.bf16 %v2454_v11, %v2454_v11 }
 0xdd8   :  { %2489 = vmatmul.mubr.bf16.vlgmr.msra.gmra.mrb[88].mxu0 %v2455_v16  ;;  %2530 = vmatmul.mubr.bf16.vlgmr.msra.gmra.mrb[88].mxu1 %v2455_v16 }
 0xdd9   :  { %2559 = vmatpush1.bf16.msra.mxu0 %v4496_v15  ;;  %2600 = vmatpush1.bf16.msra.mxu1 %v4497_v2 }
 0xdda   :  { %2560 = vmatprep.subr.bf16.mxu0 %v4498_v37  ;;  %2601 = vmatprep.subr.bf16.mxu1 %v4499_v26 }
 0xddb   :  { %2590 = vmatprep.mubr.bf16.mxu0 %v6514_v10  ;;  %2631 = vmatprep.mubr.bf16.mxu1 %v6514_v10 }
 0xddd   :  { %2561 = vmatpush1.bf16.msra.mxu0 %v4500_v7  ;;  %2602 = vmatpush1.bf16.msra.mxu1 %v4501_v17 }
 0xdde   :  { %2562 = vmatprep.subr.bf16.mxu0 %v4502_v38  ;;  %2603 = vmatprep.subr.bf16.mxu1 %v4503_v13 }
 0xde1   :  { %2563 = vmatpush1.bf16.msra.mxu0 %v4504_v18  ;;  %2604 = vmatpush1.bf16.msra.mxu1 %v4505_v56  ;;  %v4238_v56 = vld [vmem:[%s6466_s6] ss:$16 sps:$4 sm:$0xff]  }
 0xde2   :  { %2564 = vmatprep.subr.bf16.mxu0 %v4506_v20  ;;  %2605 = vmatprep.subr.bf16.mxu1 %v4507_v5  ;;  %v4243_v5 = vld [vmem:[%s6466_s6 + $0x24] ss:$16 sps:$4 sm:$0xff]  }
 0xde5   :  { %2565 = vmatpush1.bf16.msra.mxu0 %v4508_v3  ;;  %2606 = vmatpush1.bf16.msra.mxu1 %v4509_v30  ;;  %v4249_v3 = vld [vmem:[%s6466_s6 + $0x2c] ss:$16 sps:$4 sm:$0xff]   ;;  %v4241_v30 = vld [vmem:[%s6466_s6 + $0x20] ss:$16 sps:$4 sm:$0xff]  }
 0xde6   :  { %2566 = vmatprep.subr.bf16.mxu0 %v4510_v14  ;;  %2607 = vmatprep.subr.bf16.mxu1 %v4511_v63  ;;  %v2659_v14 = vld [vmem:[%s6467_s1] sm:$0xff]  ;;  %v4247_v63 = vld [vmem:[%s6466_s6 + $0x28] ss:$16 sps:$4 sm:$0xff]  }
 0xde9   :  { %2567 = vmatpush1.bf16.msra.mxu0 %v4512_v8  ;;  %2608 = vmatpush1.bf16.msra.mxu1 %v4513_v4  ;;  %v2668_v8 = vpack.c.bf16 %v2659_v14, %v2659_v14  ;;  %v6581_v4 = vld [vmem:[#allocation25_spill] sm:$0xff] }
 0xdea   :  { %2568 = vmatprep.subr.bf16.mxu0 %v4514_v43  ;;  %2609 = vmatprep.subr.bf16.mxu1 %v4515_v19  ;;  %v1574_v43 = vadd.f32 %v6581_v4, %v5821_v49  ;;  %v6582_v19 = vld [vmem:[#allocation26_spill] sm:$0xff] }
 0xded   :  { %2569 = vmatpush1.bf16.msra.mxu0 %v4516_v44  ;;  %2610 = vmatpush1.bf16.msra.mxu1 %v4517_v60  ;;  %v1647_v44 = vadd.f32 %v6582_v19, %v5824_v62  ;;  %v6583_v60 = vld [vmem:[#allocation27_spill] sm:$0xff]  ;;  %v6225_v62 = vld [vmem:[%s6468_s7] sm:$0xf] }
 0xdee   :  { %2570 = vmatprep.subr.bf16.mxu0 %v4518_v9  ;;  %2611 = vmatprep.subr.bf16.mxu1 %v4519_v61  ;;  %v1576_v9 = vadd.f32 %v6583_v60, %v5831_v59  ;;  %v6584_v61 = vld [vmem:[#allocation28_spill] sm:$0xff]  ;;  %v4253_v60 = vld [vmem:[%s6469_s8 + $0x18] sm:$0xff]  }
 0xdf1   :  { %2571 = vmatpush1.bf16.msra.mxu0 %v4520_v0  ;;  %2612 = vmatpush1.bf16.msra.mxu1 %v4521_v52  ;;  %v1649_v0 = vadd.f32 %v6584_v61, %v5834_v27  ;;  %v6585_v27 = vld [vmem:[#allocation4_spill] sm:$0xff]  ;;  %v4255_v61 = vld [vmem:[%s6469_s8 + $0x28] sm:$0xff]  }
 0xdf2   :  { %2572 = vmatprep.subr.bf16.mxu0 %v4522_v22  ;;  %2613 = vmatprep.subr.bf16.mxu1 %v4523_v23  ;;  %v2674_v51 = vrot.slane %v6225_v62, %v6585_v27 }
 0xdf5   :  { %2573 = vmatpush1.bf16.msra.mxu0 %v4524_v24  ;;  %2614 = vmatpush1.bf16.msra.mxu1 %v4525_v25 }
 0xdf6   :  { %2735 = vmatprep.subr.bf16.mxu0 %v4240_v28  ;;  %2776 = vmatprep.subr.bf16.mxu1 %v4246_v46 }
 0xeab   :  { %v2490_v55 = vpop.f32.mrb[88].mxu0  ;;  %v2531_v33 = vpop.f32.mrb[88].mxu1 }
 0xeac   :  { %v2538_v34 = vadd.f32 %v2490_v55, %v1570_v50  ;;  %v2540_v57 = vadd.f32 %v2531_v33, %v1643_v29  ;;  %v2492_v58 = vpop.f32.mrb[89].mxu0  ;;  %v2533_v35 = vpop.f32.mrb[89].mxu1  ;;  %v6586_v29 = vld [vmem:[#allocation5_spill] sm:$0xff] }
 0xead   :  { %v2539_v21 = vadd.f32 %v2492_v58, %v1572_v31  ;;  %v2541_v36 = vadd.f32 %v2533_v35, %v1645_v32  ;;  %v2494_v39 = vpop.f32.mrb[90].mxu0  ;;  %v2535_v40 = vpop.f32.mrb[90].mxu1  ;;  %v2678_v53 = vrot.slane %v6225_v62, %v6586_v29  ;;  %v4530_v29 = vmov 1  }
 0xeae   :  { %4414 = vtanh.f32 %v2538_v34  ;;  %v2495_v41 = vpop.f32.mrb[91].mxu0  ;;  %v2536_v1 = vpop.f32.mrb[91].mxu1  ;;  %4090 = vset.pattern.permute.xlu1 %v4530_v29 }
 0xeaf   :  { %4416 = vtanh.f32 %v2539_v21 }
 0xeb0   :  { %4418 = vtanh.f32 %v2540_v57 }
 0xeb1   :  { %4420 = vtanh.f32 %v2541_v36 }
 0xeb8   :  { %v4415_v6 = vpop.eup %4414 }
 0xeb9   :  { %v2543_v48 = vmul.f32 0.5, %v4415_v6  ;;  %v4417_v42 = vpop.eup %4416 }
 0xeba   :  { %v2546_v11 = vmul.f32 0.5, %v4417_v42  ;;  %v4419_v16 = vpop.eup %4418 }
 0xebb   :  { %v2544_v45 = vadd.f32 0.5, %v2543_v48  ;;  %v4421_v7 = vpop.eup %4420 }
 0xebc   :  { %v2547_v15 = vadd.f32 0.5, %v2546_v11  ;;  %v2550_v17 = vmul.f32 0.5, %v4421_v7 }
 0xebd   :  { %v2553_v2 = vmul.f32 %v4419_v16, %v2544_v45 }
 0xebe   :  { %v2552_v37 = vmul.f32 %v2547_v15, %v6078_v12  ;;  %v2551_v38 = vadd.f32 0.5, %v2550_v17  ;;  %v4244_v12 = vld [vmem:[%s6466_s6 + $0x8] ss:$16 sps:$4 sm:$0xff]   ;;  %v4528_v17 = vmov 0.0  }
 0xec0   :  { %v6188_v26 = vadd.f32 %v2553_v2, %v2552_v37 }
 0xec2   :  { %4422 = vtanh.f32 %v6188_v26 }
 0xecc   :  { %v4423_v13 = vpop.eup %4422 }
 0xecd   :  { %v2556_v18 = vmul.f32 %v4423_v13, %v2551_v38  ;;  %v4250_v38 = vld [vmem:[%s6469_s8] sm:$0xff]   ;;  %v4252_v13 = vld [vmem:[%s6469_s8 + $0x10] sm:$0xff]  }
 0xecf   :  { %v2557_v20 = vpack.c.bf16 %v2556_v18, %v2556_v18 }
 0xed1   :  { %2591 = vmatmul.mubr.bf16.vlgmr.msra.gmra.mrb[92].mxu0 %v2557_v20  ;;  %2632 = vmatmul.mubr.bf16.vlgmr.msra.gmra.mrb[92].mxu1 %v2557_v20 }
 0xed2   :  { %2736 = vmatpush1.bf16.msra.mxu0 %v4238_v56  ;;  %2767 = vmatprep.mubr.bf16.mxu0 %v6514_v10 }
 0xed3   :  { %2737 = vmatprep.subr.bf16.mxu0 %v4243_v5  ;;  %2777 = vmatpush1.bf16.msra.mxu1 %v4244_v12 }
 0xed4   :  { %2778 = vmatprep.subr.bf16.mxu1 %v4249_v3  ;;  %2808 = vmatprep.mubr.bf16.mxu1 %v6514_v10 }
 0xed6   :  { %2738 = vmatpush1.bf16.msra.mxu0 %v4241_v30  ;;  %v6587_v30 = vld [vmem:[#allocation2_spill] sm:$0xff] }
 0xed7   :  { %2779 = vmatpush1.bf16.msra.mxu1 %v4247_v63  ;;  %3943 = vmatprep.subr.bf16.mxu0 %v4528_v17  ;;  %v2682_v14 = vrot.slane %v6225_v62, %v6587_v30 }
 0xed8   :  { %3963 = vmatprep.subr.mxu1 %v4528_v17 }
 0xed9   :  { %3814 = vmatmul.mubr.msk.bf16.vlgmr.msra.gmra.mrb[96].mxu0 %vm2731_vm2, %v2668_v8 }
 0xeda   :  { %3815 = vmatmul.mubr.msk.bf16.vlgmr.msra.gmra.mrb[96].mxu1 %vm2731_vm2, %v2668_v8  ;;  %3944 = vmatpush3.bf16.msra.mxu0 %v4250_v38 }
 0xedb   :  { %3945 = vmatprep.subr.bf16.mxu0 %v4528_v17  ;;  %3959 = vmatprep.mubr.msk.bf16.mxu0 %vm4529_vm3, %v4528_v17 }
 0xedc   :  { %3965 = vmatprep.mubr.msk.f32.mxu1 %vm4529_vm3, %v4528_v17 }
 0xfa4   :  { %v2592_v52 = vpop.f32.mrb[92].mxu0  ;;  %v2633_v10 = vpop.f32.mrb[92].mxu1 }
 0xfa5   :  { %v2640_v22 = vadd.f32 %v2592_v52, %v1574_v43  ;;  %v2642_v23 = vadd.f32 %v2633_v10, %v1647_v44  ;;  %v2594_v24 = vpop.f32.mrb[93].mxu0  ;;  %v2635_v25 = vpop.f32.mrb[93].mxu1  ;;  %v6588_v43 = vld [vmem:[#allocation3_spill] sm:$0xff]  ;;  %v4257_v52 = vld [vmem:[%s6469_s8 + $0x38] sm:$0xff]  }
 0xfa6   :  { %v2641_v28 = vadd.f32 %v2594_v24, %v1576_v9  ;;  %v2643_v46 = vadd.f32 %v2635_v25, %v1649_v0  ;;  %v2596_v47 = vpop.f32.mrb[94].mxu0  ;;  %v2637_v50 = vpop.f32.mrb[94].mxu1  ;;  %v2686_v19 = vrot.slane %v6225_v62, %v6588_v43  ;;  %v4254_v9 = vld [vmem:[%s6469_s8 + $0x20] sm:$0xff]   ;;  %v4256_v0 = vld [vmem:[%s6469_s8 + $0x30] sm:$0xff]  }
 0xfa7   :  { %4424 = vtanh.f32 %v2640_v22  ;;  %v2597_v49 = vpop.f32.mrb[95].mxu0  ;;  %v2638_v59 = vpop.f32.mrb[95].mxu1  ;;  %v4268_v43 = vld [vmem:[%s6469_s8 + $0x90] sm:$0xff]  }
 0xfa8   :  { %4426 = vtanh.f32 %v2641_v28 }
 0xfa9   :  { %4428 = vtanh.f32 %v2642_v23 }
 0xfaa   :  { %4430 = vtanh.f32 %v2643_v46 }
 0xfac   :  { %v2769_v31 = vpop.f32.mrb[96].mxu0 }
 0xfad   :  { %v2770_v54 = vadd.f32 %v2769_v31, %v2674_v51  ;;  %v2771_v32 = vpop.f32.mrb[97].mxu0  ;;  %v2810_v15 = vpop.f32.mrb[96].mxu1 }
 0xfae   :  { %v2772_v55 = vadd.f32 %v2771_v32, %v2678_v53  ;;  %v2773_v33 = vpop.f32.mrb[98].mxu0  ;;  %v2812_v2 = vpop.f32.mrb[97].mxu1  ;;  %v2811_v4 = vadd.f32 %v2810_v15, %v2682_v14  ;;  %v2950_v53 = vld [vmem:[%s6470_s10] sm:$0xff] }
 0xfaf   :  { %v2774_v34 = vpop.f32.mrb[99].mxu0  ;;  %2826 = vmax.xlane.f32.xlu0 %v2770_v54  ;;  %v2814_v37 = vpop.f32.mrb[98].mxu1  ;;  %v2813_v44 = vadd.f32 %v2812_v2, %v2686_v19  ;;  %3964 = vmatpush3.msra.mxu1 %v2950_v53  ;;  %v4264_v2 = vld [vmem:[%s6469_s8 + $0x70] sm:$0xff]   ;;  %v4269_v19 = vld [vmem:[%s6469_s8 + $0x98] sm:$0xff]  }
 0xfb0   :  { %3040 = vmax.xlane.f32.xlu1 %v2772_v55  ;;  %v2815_v7 = vpop.f32.mrb[99].mxu1  ;;  %3968 = vmatprep.subr.bf16.mxu1 %v4528_v17  ;;  %v4531_v34 = vmov 2   ;;  %v3474_v53 = vld [vmem:[%s6472_s12 + $0x10] sm:$0xff] }
 0xfb1   :  { %v4425_v57 = vpop.eup %4424  ;;  %v4265_v7 = vld [vmem:[%s6469_s8 + $0x78] sm:$0xff]  }
 0xfb2   :  { %v2645_v58 = vmul.f32 0.5, %v4425_v57  ;;  %v4427_v35 = vpop.eup %4426  ;;  %v3816_v57 = vld [vmem:[%s6471_s9] ss:$0 sm:$0xff] }
 0xfb3   :  { %v2648_v36 = vmul.f32 0.5, %v4427_v35  ;;  %v4429_v39 = vpop.eup %4428 }
 0xfb4   :  { %v2646_v21 = vadd.f32 0.5, %v2645_v58  ;;  %v4431_v48 = vpop.eup %4430 }
 0xfb5   :  { %v2649_v40 = vadd.f32 0.5, %v2648_v36  ;;  %v2652_v42 = vmul.f32 0.5, %v4431_v48  ;;  %v4261_v48 = vld [vmem:[%s6469_s8 + $0x58] sm:$0xff]  }
 0xfb6   :  { %v2655_v41 = vmul.f32 %v4429_v39, %v2646_v21 }
 0xfb7   :  { %v2654_v1 = vmul.f32 %v2649_v40, %v6188_v26  ;;  %v2653_v45 = vadd.f32 0.5, %v2652_v42  ;;  %v4251_v26 = vld [vmem:[%s6469_s8 + $0x8] sm:$0xff]   ;;  %v4258_v40 = vld [vmem:[%s6469_s8 + $0x40] sm:$0xff]  }
 0xfb8   :  { %3946 = vmatpush3.bf16.msra.mxu0 %v4251_v26  ;;  %v4262_v42 = vld [vmem:[%s6469_s8 + $0x60] sm:$0xff]  }
 0xfb9   :  { %v2656_v6 = vadd.f32 %v2655_v41, %v2654_v1  ;;  %3947 = vmatprep.subr.bf16.mxu0 %v4528_v17  ;;  %v4259_v1 = vld [vmem:[%s6469_s8 + $0x48] sm:$0xff]  }
 0xfbb   :  { %4432 = vtanh.f32 %v2656_v6  ;;  %v4260_v6 = vld [vmem:[%s6469_s8 + $0x50] sm:$0xff]  }
 0xfbc   :  { %3948 = vmatpush3.bf16.msra.mxu0 %v4252_v13  ;;  %v3853_v13 = vld [vmem:[%s6470_s10 + $0x8] sm:$0xff] }
 0xfbd   :  { %3949 = vmatprep.subr.bf16.mxu0 %v4528_v17 }
 0xfc0   :  { %3950 = vmatpush3.bf16.msra.mxu0 %v4253_v60 }
 0xfc1   :  { %3951 = vmatprep.subr.bf16.mxu0 %v4528_v17 }
 0xfc4   :  { %3952 = vmatpush3.bf16.msra.mxu0 %v4254_v9  ;;  %v4271_v9 = vld [vmem:[%s6469_s8 + $0xa8] sm:$0xff]  }
 0xfc5   :  { %v4433_v11 = vpop.eup %4432  ;;  %3953 = vmatprep.subr.bf16.mxu0 %v4528_v17 }
 0xfc6   :  { %v6232_v16 = vmul.f32 %v4433_v11, %v2653_v45  ;;  %v4263_v11 = vld [vmem:[%s6469_s8 + $0x68] sm:$0xff]  }
 0xfc8   :  { %3954 = vmatpush3.bf16.msra.mxu0 %v4255_v61 }
 0xfc9   :  { %3955 = vmatprep.subr.bf16.mxu0 %v4528_v17 }
 0xfcc   :  { %3956 = vmatpush3.bf16.msra.mxu0 %v4256_v0  ;;  %v4272_v0 = vld [vmem:[%s6469_s8 + $0xb0] sm:$0xff]  }
 0xfcd   :  { %3957 = vmatprep.subr.bf16.mxu0 %v4528_v17 }
 0xfd0   :  { %3958 = vmatpush3.bf16.msra.mxu0 %v4257_v52 }
 0xfd1   :  { %3988 = vmatprep.subr.mxu0 %v4528_v17 }
0x103c   :  { %v2827_v18 = vpop.xlane.xlu0 %2826 }
0x103d   :  { %v2828_v56 = vsub.f32 %v2770_v54, %v2827_v18  ;;  %v3041_v20 = vpop.xlane.xlu1 %3040 }
0x103e   :  { %v3042_v5 = vsub.f32 %v2772_v55, %v3041_v20  ;;  %v3844_v20 = vld [vmem:[%s6471_s9 + $0x1] ss:$0 sm:$0xff] }
0x103f   :  { %v2829_v12 = vmul.f32 1.442695, %v2828_v56 }
0x1040   :  { %v3043_v3 = vmul.f32 1.442695, %v3042_v5 }
0x1041   :  { %4434 = vpow2.f32 %v2829_v12 }
0x1042   :  { %4436 = vpow2.f32 %v3043_v3 }
0x104b   :  { %v4435_v63 = vpop.eup %4434 }
0x104c   :  { %v6250_v8 = vpop.eup %4436  ;;  %2831 = vadd.xlane.f32.xlu0 %v4435_v63 }
0x104d   :  { %3045 = vadd.xlane.f32.xlu1 %v6250_v8 }
0x1050   :  { %3256 = vmax.xlane.f32.xlu0 %v2811_v4 }
0x1054   :  { %2817 = vmax.xlane.f32.xlu0 %v2813_v44 }
0x10d9   :  { %v2832_v10 = vpop.xlane.xlu0 %2831 }
0x10da   :  { %4438 = vrcp.f32 %v2832_v10  ;;  %v3046_v31 = vpop.xlane.xlu1 %3045  ;;  %v4273_v10 = vld [vmem:[%s6469_s8 + $0xb8] sm:$0xff]  }
0x10dd   :  { %v3257_v22 = vpop.xlane.xlu0 %3256 }
0x10de   :  { %v3258_v23 = vsub.f32 %v2811_v4, %v3257_v22  ;;  %v4267_v4 = vld [vmem:[%s6469_s8 + $0x88] sm:$0xff]  }
0x10e0   :  { %v3259_v24 = vmul.f32 1.442695, %v3258_v23 }
0x10e1   :  { %v2818_v25 = vpop.xlane.xlu0 %2817 }
0x10e2   :  { %4440 = vpow2.f32 %v3259_v24  ;;  %v2819_v28 = vsub.f32 %v2813_v44, %v2818_v25  ;;  %v4270_v44 = vld [vmem:[%s6469_s8 + $0xa0] sm:$0xff]   ;;  %v3883_v24 = vld [vmem:[%s6470_s10 + $0x10] sm:$0xff]  ;;  %v4532_v25 = vmov 0.0|0.0  }
0x10e4   :  { %v4439_v46 = vpop.eup %4438  ;;  %v2820_v47 = vmul.f32 1.442695, %v2819_v28 }
0x10e5   :  { %v2834_v50 = vmul.f32 32.0, %v4439_v46 }
0x10e6   :  { %4442 = vpow2.f32 %v2820_v47 }
0x10e7   :  { %v2835_v62 = vmul.f32 %v4435_v63, %v2834_v50  ;;  %v4266_v63 = vld [vmem:[%s6469_s8 + $0x80] sm:$0xff]  }
0x10e9   :  { %v2836_v49 = vmul.f32 %v2835_v62, %v6232_v16 }
0x10eb   :  { %v2853_v59 = vpack.c.bf16 %v2836_v49, %v2836_v49 }
0x10ec   :  { %v6280_v27 = vpop.eup %4440 }
0x10ed   :  { %3960 = vmatmul.mubr.bf16.vlgmr.msra.gmra.mrb[100].mxu0 %v2853_v59  ;;  %3261 = vadd.xlane.f32.xlu1 %v6280_v27 }
0x10ee   :  { %3990 = vmatprep.mubr.msk.f32.mxu0 %vm4529_vm3, %v4528_v17  ;;  %3989 = vmatpush3.msra.mxu0 %v3853_v13 }
0x10ef   :  { %3993 = vmatprep.subr.bf16.mxu0 %v4528_v17 }
0x10f0   :  { %v4443_v51 = vpop.eup %4442 }
0x10f1   :  { %2822 = vadd.xlane.f32.xlu1 %v4443_v51 }
0x117a   :  { %v6289_v54 = vpop.xlane.xlu1 %3261 }
0x117e   :  { %v2823_v32 = vpop.xlane.xlu1 %2822 }
0x117f   :  { %4444 = vrcp.f32 %v2823_v32 }
0x1189   :  { %v4445_v55 = vpop.eup %4444 }
0x118a   :  { %v2825_v33 = vmul.f32 %v4445_v55, %v4443_v51  ;;  %v3473_v51 = vld [vmem:[%s6472_s12 + $0x8] sm:$0xff]  ;;  %v3476_v55 = vld [vmem:[%s6472_s12 + $0x20] sm:$0xff] }
0x118c   :  { %3251 = vperm.xlu1 %4090, %v2825_v33   ;;  %3035 = vperm.xlu0 %4089, %v2825_v33  }
0x1190   :  { %4091 = vset.pattern.permute.xlu1 %v4531_v34  ;;  %4092 = vset.pattern.permute.xlu0 %v4531_v34 }
0x1191   :  { %3467 = vperm.xlu1 %4091, %v2825_v33   ;;  %v3477_v33 = vld [vmem:[%s6472_s12 + $0x28] sm:$0xff] }
0x1192   :  { %v4065_v34 = vpack.c.bf16 %v3477_v33, %v3476_v55 }
0x11c0   :  { %v2943_v58 = vpop.f32.mrb[100].mxu0 }
0x11c1   :  { %v2944_v35 = vadd.f32 %v3816_v57, %v2943_v58  ;;  %v3961_v21 = vpop.f32.mrb[101].mxu0  ;;  %v3478_v57 = vld [vmem:[%s6472_s12 + $0x30] sm:$0xff] }
0x11c2   :  { %v2946_v36 = vpop.f32.mrb[102].mxu0  ;;  %v3481_v21 = vld [vmem:[%s6472_s12 + $0x48] sm:$0xff] }
0x11c3   :  { %4446 = vtanh.f32 %v2944_v35  ;;  %v3962_v39 = vpop.f32.mrb[103].mxu0  ;;  %v3480_v35 = vld [vmem:[%s6472_s12 + $0x40] sm:$0xff] }
0x11c4   :  { %4448 = vrcp.f32 %v3046_v31  ;;  %v3475_v31 = vld [vmem:[%s6472_s12 + $0x18] sm:$0xff]  ;;  %v4071_v36 = vpack.c.bf16 %v3481_v21, %v3480_v35  ;;  %v3482_v39 = vld [vmem:[%s6472_s12 + $0x50] sm:$0xff] }
0x11c5   :  { %v4062_v32 = vpack.c.bf16 %v3475_v31, %v3474_v53 }
0x11cd   :  { %v4447_v41 = vpop.eup %4446 }
0x11ce   :  { %3966 = vmatmul.mubr.msk.f32.vlgmr.msra.gmra.mrb[100].mxu1 %vm2958_vm4, %v4447_v41  ;;  %v4449_v45 = vpop.eup %4448 }
0x11cf   :  { %3969 = vmatpush3.bf16.msra.mxu1 %v4258_v40  ;;  %3984 = vmatprep.mubr.msk.bf16.mxu1 %vm4529_vm3, %v4528_v17  ;;  %v3048_v15 = vmul.f32 32.0, %v4449_v45  ;;  %v3483_v40 = vld [vmem:[%s6472_s12 + $0x58] sm:$0xff] }
0x11d0   :  { %3970 = vmatprep.subr.bf16.mxu1 %v4528_v17  ;;  %v4074_v41 = vpack.c.bf16 %v3483_v40, %v3482_v39  ;;  %v3487_v45 = vld [vmem:[%s6472_s12 + $0x78] sm:$0xff] }
0x11d1   :  { %v3049_v37 = vmul.f32 %v6250_v8, %v3048_v15  ;;  %v3855_v15 = vld [vmem:[%s6473_s11 + $0x1] ss:$0 sm:$0xff] }
0x11d3   :  { %3971 = vmatpush3.bf16.msra.mxu1 %v4259_v1  ;;  %v3050_v38 = vmul.f32 %v3049_v37, %v6232_v16  ;;  %v3484_v1 = vld [vmem:[%s6472_s12 + $0x60] sm:$0xff] }
0x11d4   :  { %3972 = vmatprep.subr.bf16.mxu1 %v4528_v17 }
0x11d5   :  { %v3068_v26 = vpack.c.bf16 %v3050_v38, %v3050_v38 }
0x11d7   :  { %3973 = vmatpush3.bf16.msra.mxu1 %v4260_v6  ;;  %v3485_v6 = vld [vmem:[%s6472_s12 + $0x68] sm:$0xff] }
0x11d8   :  { %3974 = vmatprep.subr.bf16.mxu1 %v4528_v17 }
0x11db   :  { %3975 = vmatpush3.bf16.msra.mxu1 %v4261_v48  ;;  %v4077_v48 = vpack.c.bf16 %v3485_v6, %v3484_v1 }
0x11dc   :  { %3976 = vmatprep.subr.bf16.mxu1 %v4528_v17 }
0x11df   :  { %3977 = vmatpush3.bf16.msra.mxu1 %v4262_v42  ;;  %v3486_v42 = vld [vmem:[%s6472_s12 + $0x70] sm:$0xff] }
0x11e0   :  { %3978 = vmatprep.subr.bf16.mxu1 %v4528_v17 }
0x11e3   :  { %3979 = vmatpush3.bf16.msra.mxu1 %v4263_v11  ;;  %v4080_v11 = vpack.c.bf16 %v3487_v45, %v3486_v42 }
0x11e4   :  { %3980 = vmatprep.subr.bf16.mxu1 %v4528_v17 }
0x11e7   :  { %3981 = vmatpush3.bf16.msra.mxu1 %v4264_v2  ;;  %v3825_v2 = vld [vmem:[%s6473_s11] ss:$0 sm:$0xff] }
0x11e8   :  { %3982 = vmatprep.subr.bf16.mxu1 %v4528_v17 }
0x11eb   :  { %3983 = vmatpush3.bf16.msra.mxu1 %v4265_v7 }
0x11ec   :  { %4013 = vmatprep.subr.mxu1 %v4528_v17 }
0x11ee   :  { %3985 = vmatmul.mubr.bf16.vlgmr.msra.gmra.mrb[104].mxu1 %v3068_v26  ;;  %v3885_v26 = vld [vmem:[%s6473_s11 + $0x2] ss:$0 sm:$0xff] }
0x11ef   :  { %4015 = vmatprep.mubr.msk.f32.mxu1 %vm4529_vm3, %v4528_v17  ;;  %4014 = vmatpush3.msra.mxu1 %v3883_v24 }
0x11f0   :  { %4058 = vmatprep.subr.bf16.mxu1 %v4532_v25 }
0x120b   :  { %v3252_v7 = vpop.permute.xlu1 %3251 }
0x12a1   :  { %v6337_v18 = vpop.f32.mrb[100].mxu1 }
0x12a2   :  { %v3967_v56 = vpop.f32.mrb[101].mxu1  ;;  %v3029_v38 = vadd.f32 %v3825_v2, %v6337_v18  ;;  %v3566_v18 = vld [vmem:[%s6474_s14] sm:$0x7] }
0x12a3   :  { %v3036_v56 = vpop.permute.xlu0 %3035 }
0x12c1   :  { %v3159_v5 = vpop.f32.mrb[104].mxu1 }
0x12c2   :  { %v3160_v12 = vadd.f32 %v3844_v20, %v3159_v5  ;;  %v3986_v3 = vpop.f32.mrb[105].mxu1  ;;  %v3038_v5 = vmul.f32 %v3036_v56, %v3029_v38 }
0x12c3   :  { %v3162_v30 = vpop.f32.mrb[106].mxu1 }
0x12c4   :  { %4450 = vtanh.f32 %v3160_v12  ;;  %v3987_v14 = vpop.f32.mrb[107].mxu1 }
0x12c5   :  { %4452 = vrcp.f32 %v6289_v54  ;;  %v3468_v14 = vpop.permute.xlu1 %3467 }
0x12ce   :  { %v4451_v8 = vpop.eup %4450 }
0x12cf   :  { %3991 = vmatmul.mubr.msk.f32.vlgmr.msra.gmra.mrb[104].mxu0 %vm2958_vm4, %v4451_v8  ;;  %v4453_v60 = vpop.eup %4452 }
0x12d0   :  { %3994 = vmatpush3.bf16.msra.mxu0 %v4266_v63  ;;  %4009 = vmatprep.mubr.msk.bf16.mxu0 %vm4529_vm3, %v4528_v17  ;;  %v3264_v61 = vmul.f32 32.0, %v4453_v60 }
0x12d1   :  { %3995 = vmatprep.subr.bf16.mxu0 %v4528_v17 }
0x12d2   :  { %v3265_v52 = vmul.f32 %v6280_v27, %v3264_v61  ;;  %v3472_v27 = vld [vmem:[%s6472_s12] sm:$0xff] }
0x12d3   :  { %v4059_v29 = vpack.c.bf16 %v3473_v51, %v3472_v27 }
0x12d4   :  { %3996 = vmatpush3.bf16.msra.mxu0 %v4267_v4  ;;  %v3266_v22 = vmul.f32 %v3265_v52, %v6232_v16  ;;  %v3874_v16 = vld [vmem:[%s6471_s9 + $0x2] ss:$0 sm:$0xff] }
0x12d5   :  { %3997 = vmatprep.subr.bf16.mxu0 %v4528_v17 }
0x12d6   :  { %v3284_v23 = vpack.c.bf16 %v3266_v22, %v3266_v22 }
0x12d8   :  { %3998 = vmatpush3.bf16.msra.mxu0 %v4268_v43 }
0x12d9   :  { %3999 = vmatprep.subr.bf16.mxu0 %v4528_v17 }
0x12dc   :  { %4000 = vmatpush3.bf16.msra.mxu0 %v4269_v19  ;;  %v3887_v19 = vld [vmem:[%s6475_s13] ss:$0 sm:$0xff] }
0x12dd   :  { %4001 = vmatprep.subr.bf16.mxu0 %v4528_v17 }
0x12e0   :  { %4002 = vmatpush3.bf16.msra.mxu0 %v4270_v44 }
0x12e1   :  { %4003 = vmatprep.subr.bf16.mxu0 %v4528_v17 }
0x12e4   :  { %4004 = vmatpush3.bf16.msra.mxu0 %v4271_v9 }
0x12e5   :  { %4005 = vmatprep.subr.bf16.mxu0 %v4528_v17 }
0x12e8   :  { %4006 = vmatpush3.bf16.msra.mxu0 %v4272_v0  ;;  %v3888_v0 = vld [vmem:[%s6476_s15] ss:$0 sm:$0xff] }
0x12e9   :  { %4007 = vmatprep.subr.bf16.mxu0 %v4528_v17 }
0x12ec   :  { %4008 = vmatpush3.bf16.msra.mxu0 %v4273_v10 }
0x12ed   :  { %4053 = vmatprep.subr.mxu0 %v4528_v17 }
0x12ef   :  { %4010 = vmatmul.mubr.bf16.vlgmr.msra.gmra.mrb[108].mxu0 %v3284_v23 }
0x12f0   :  { %4055 = vmatprep.mubr.msk.f32.mxu0 %vm4529_vm3, %v4528_v17  ;;  %4054 = vmatpush3.msk.msra.mxu0 %vm3578_vm5, %v3566_v18 }
0x13a2   :  { %v3245_v28 = vpop.f32.mrb[104].mxu0 }
0x13a3   :  { %v3992_v46 = vpop.f32.mrb[105].mxu0  ;;  %v3246_v37 = vadd.f32 %v3855_v15, %v3245_v28 }
0x13a5   :  { %v3254_v13 = vmul.f32 %v3252_v7, %v3246_v37  ;;  %v3249_v12 = vadd.f32 %v3246_v37, %v3029_v38 }
0x13a7   :  { %v3255_v63 = vadd.f32 %v3254_v13, %v3038_v5 }
0x13c2   :  { %v3375_v47 = vpop.f32.mrb[108].mxu0 }
0x13c3   :  { %v3376_v50 = vadd.f32 %v3874_v16, %v3375_v47  ;;  %v4011_v62 = vpop.f32.mrb[109].mxu0 }
0x13c4   :  { %v3378_v49 = vpop.f32.mrb[110].mxu0 }
0x13c5   :  { %4454 = vtanh.f32 %v3376_v50  ;;  %v4012_v59 = vpop.f32.mrb[111].mxu0 }
0x13cf   :  { %v4455_v54 = vpop.eup %4454 }
0x13d0   :  { %4016 = vmatmul.mubr.msk.f32.vlgmr.msra.gmra.mrb[102].mxu1 %vm2958_vm4, %v4455_v54 }
0x13d1   :  { %4060 = vmatpush3.bf16.msra.mxu1 %v4059_v29  ;;  %4050 = vmatprep.mubr.msk.f32.mxu1 %vm4529_vm3, %v4528_v17  ;;  %v3479_v17 = vld [vmem:[%s6472_s12 + $0x38] sm:$0xff] }
0x13d2   :  { %4061 = vmatprep.subr.bf16.mxu1 %v4532_v25  ;;  %v4068_v58 = vpack.c.bf16 %v3479_v17, %v3478_v57 }
0x13d5   :  { %4063 = vmatpush3.bf16.msra.mxu1 %v4062_v32 }
0x13d6   :  { %4064 = vmatprep.subr.bf16.mxu1 %v4532_v25 }
0x13d9   :  { %4066 = vmatpush3.bf16.msra.mxu1 %v4065_v34 }
0x13da   :  { %4067 = vmatprep.subr.bf16.mxu1 %v4532_v25 }
0x13dd   :  { %4069 = vmatpush3.bf16.msra.mxu1 %v4068_v58 }
0x13de   :  { %4070 = vmatprep.subr.bf16.mxu1 %v4532_v25 }
0x13e1   :  { %4072 = vmatpush3.bf16.msra.mxu1 %v4071_v36 }
0x13e2   :  { %4073 = vmatprep.subr.bf16.mxu1 %v4532_v25 }
0x13e5   :  { %4075 = vmatpush3.bf16.msra.mxu1 %v4074_v41 }
0x13e6   :  { %4076 = vmatprep.subr.bf16.mxu1 %v4532_v25 }
0x13e9   :  { %4078 = vmatpush3.bf16.msra.mxu1 %v4077_v48 }
0x13ea   :  { %4079 = vmatprep.subr.bf16.mxu1 %v4532_v25 }
0x13ed   :  { %4081 = vmatpush3.bf16.msra.mxu1 %v4080_v11 }
0x14a3   :  { %v3461_v20 = vpop.f32.mrb[102].mxu1 }
0x14a4   :  { %v3462_v3 = vadd.f32 %v3885_v26, %v3461_v20  ;;  %v4017_v30 = vpop.f32.mrb[103].mxu1 }
0x14a6   :  { %v3465_v8 = vadd.f32 %v3462_v3, %v3249_v12  ;;  %v3470_v4 = vmul.f32 %v3468_v14, %v3462_v3 }
0x14a8   :  { %v3471_v43 = vadd.f32 %v3470_v4, %v3255_v63 }
0x14aa   :  { %4051 = vmatmul.mubr.f32.vlgmr.msra.gmra.mrb[108].mxu1 %v3471_v43 }
0x157d   :  { %v3561_v44 = vpop.f32.mrb[108].mxu1 }
0x157e   :  { %v3562_v60 = vadd.f32 %v3887_v19, %v3561_v44  ;;  %v4052_v9 = vpop.f32.mrb[109].mxu1 }
0x1580   :  { %4456 = vtanh.f32 %v3562_v60 }
0x158a   :  { %v4457_v61 = vpop.eup %4456 }
0x158b   :  { %4056 = vmatmul.mubr.msk.f32.vlgmr.msra.gmra.mrb[106].mxu0 %vm3574_vm6, %v4457_v61 }
0x165e   :  { %v3648_v52 = vpop.f32.mrb[106].mxu0 }
0x165f   :  { %v3649_v10 = vadd.f32 %v3888_v0, %v3648_v52  ;;  %v4057_v22 = vpop.f32.mrb[107].mxu0 }
0x1661   :  { %3652 = vmax.xlane.f32.xlu1 %v3649_v10 }
0x16ee   :  { %v3653_v23 = vpop.xlane.xlu1 %3652 }
0x16ef   :  { %v3654_v24 = vsub.f32 %v3649_v10, %v3653_v23 }
0x16f1   :  { %v3655_v25 = vmul.f32 1.442695, %v3654_v24 }
0x16f3   :  { %4458 = vpow2.f32 %v3655_v25 }
0x16fd   :  { %v4459_v28 = vpop.eup %4458 }
0x16fe   :  { %3657 = vadd.xlane.f32.xlu0 %v4459_v28 }
0x178b   :  { %v3658_v46 = vpop.xlane.xlu0 %3657 }
0x178c   :  { %4460 = vrcp.f32 %v3658_v46 }
0x1796   :  { %v4461_v16 = vpop.eup %4460 }
0x1797   :  { %v3660_v47 = vmul.f32 %v4461_v16, %v4459_v28 }
0x1799   :  { %v3661_v50 = vadd.f32 %v3660_v47, %v3465_v8 }
0x179b   :  { %3662 = vst [vmem:[%s6477_s16] sm:$0xff] %v3661_v50 }

</bundles_post_ra>
